<compile_context>
chip_gen: v7x
topology: tpu7x:2x2x1
jax: 0.10.0
libtpu: 0.0.40
codegen_flags: <defaults>
</compile_context>

<pallas_src>
import functools

import jax
import jax.numpy as jnp
from jax.experimental import pallas as pl
from jax.experimental.pallas import tpu as pltpu

# ----------------------------------------------------------------------------
# Synthetic "args" (deterministic stand-ins for the argparse config)
# ----------------------------------------------------------------------------
THRESH = 0.5          # args.thresh
DECAY = 0.2           # args.decay
LAP_THRESHOLD = 0.5   # args.lap_threshold
ORIGINAL_RATIO = 0.6  # args.original_ratio
IS_MIX = 1            # args.is_mix
TIME_WINDOW = 2       # args.time_window
NUM_CLASSES = 10      # args.num_classes
BATCH = 2             # args.base_batch_size

# Scaled-down architecture (same structure/semantics as cfg_cnn/cfg_fc/cfg_kernel)
# (in_planes, out_planes, stride, padding, kernel_size)
CFG_CNN = [(3, 16, 4, 2, 11), (16, 32, 1, 2, 5), (32, 64, 1, 1, 3)]
IMG = 63                       # input spatial size (gives the 15 -> 7 -> 3 -> 1 chain)
CFG_KERNEL = [15, 7, 3]        # conv output spatial sizes (role of [56, 27, 13])
FLAT = CFG_CNN[2][1] * 1 * 1   # channels * pooled spatial after conv2 (1x1)
CFG_FC = [FLAT, 128, 32, NUM_CLASSES]   # role of [9216, 2048, 256, num_classes]

LANE = 128        # K-dim padding for im2col patches (MXU contraction axis)


def _round_up(x, m):
    return (x + m - 1) // m * m


def _row_tiling(rows):
    """Per-layer (padded_rows, row_tile).

    Rows are padded to a multiple of 16 (bf16 sublane pack) and, when possible,
    split into >=2 grid steps so dimension_semantics=("parallel",) can shard
    rows across v7x's two TensorCores.  This replaces the old fixed 256-row
    tile that wasted ~7x work/traffic on the small conv layers.
    """
    p16 = _round_up(rows, 16)
    if p16 <= 16:
        return p16, p16                     # too small to split
    p32 = _round_up(rows, 32)
    half = p32 // 2                         # multiple of 16 by construction
    if half <= 512:
        return p32, half                    # 2 grid steps, minimal padding
    p256 = _round_up(rows, 256)
    return p256, 256                        # large layers: 256-row tile


# ----------------------------------------------------------------------------
# Pallas kernels
# ----------------------------------------------------------------------------
def _conv_lif_kernel(x_ref, w_ref, b_ref, mem_ref, spk_ref, mem_o_ref, spk_o_ref):
    # y = patches @ W^T + b   (bf16 operands on the MXU, f32 accumulation)
    y = jnp.dot(x_ref[...], w_ref[...],
                preferred_element_type=jnp.float32) + b_ref[...]
    # mem_update: mem = mem * decay * (1 - spike) + ops(x); spike = (mem > thresh)
    # LIF math stays f32 (v5e VPU has no bf16); spikes stored bf16 (exact 0/1).
    mem_new = mem_ref[...] * DECAY * (1.0 - spk_ref[...].astype(jnp.float32)) + y
    spk_new = mem_new > THRESH
    mem_o_ref[...] = mem_new
    spk_o_ref[...] = spk_new.astype(spk_o_ref.dtype)


def conv_lif(x, w_t, b, mem, spike, row_tile):
    """Row-tiled fused (conv-as-matmul) + LIF membrane update + spike threshold.

    x:    (Np, Kp)   bf16 im2col patches; rows padded per-layer, K padded to 128.
    w_t:  (Kp, Cout) bf16 weights (Cout is the real channel count, full-dim lane axis).
    b:    (1, Cout)  f32 bias.
    mem:  (Np, Cout) f32   persistent membrane state (aliased in place).
    spike:(Np, Cout) bf16  persistent spike state (aliased in place).
    """
    n_pad, kp = x.shape
    cout = w_t.shape[1]
    grid_n = n_pad // row_tile
    sds = jax.ShapeDtypeStruct
    # NOTE(perf): at real channel counts (>=128) widen the output lane block to
    # 256 (v6e/v7x MXU is 256 wide) and pad Cout to a lane multiple; at the toy
    # scale (Cout<=64) the kernel is HBM-bound so narrow full-dim lanes win.
    return pl.pallas_call(
        _conv_lif_kernel,
        out_shape=(sds((n_pad, cout), jnp.float32),
                   sds((n_pad, cout), jnp.bfloat16)),
        grid=(grid_n,),
        in_specs=[
            pl.BlockSpec((row_tile, kp), lambda i: (i, 0)),
            pl.BlockSpec((kp, cout), lambda i: (0, 0)),    # grid-invariant weight
            pl.BlockSpec((1, cout), lambda i: (0, 0)),     # grid-invariant bias
            pl.BlockSpec((row_tile, cout), lambda i: (i, 0)),
            pl.BlockSpec((row_tile, cout), lambda i: (i, 0)),
        ],
        out_specs=(
            pl.BlockSpec((row_tile, cout), lambda i: (i, 0)),
            pl.BlockSpec((row_tile, cout), lambda i: (i, 0)),
        ),
        # mem/spike state updated in place (no fresh HBM buffers per time step).
        input_output_aliases={3: 0, 4: 1},
        compiler_params=pltpu.CompilerParams(
            dimension_semantics=("parallel",),             # shard rows on v7x's 2 TCs
            vmem_limit_bytes=32 * 1024 * 1024),
    )(x, w_t, b, mem, spike)


def _lif_step(x, w_ref, b_ref, m_ref, s_ref):
    y = jnp.dot(x, w_ref[...], preferred_element_type=jnp.float32) + b_ref[...]
    m_new = m_ref[...] * DECAY * (1.0 - s_ref[...]) + y
    s_new = (m_new > THRESH).astype(jnp.float32)
    return m_new, s_new


def _fc_chain_kernel(h_ref, w1_ref, b1_ref, w2_ref, b2_ref, w3_ref, b3_ref,
                     w4_ref, b4_ref,
                     m1_ref, s1_ref, m2_ref, s2_ref, m3_ref, s3_ref,
                     m4_ref, s4_ref,
                     m1_o, s1_o, m2_o, s2_o, m3_o, s3_o, m4_o, s4_o):
    # Fused fc1 -> fc2 -> fc3 -> fc4 LIF chain; everything stays in VMEM/vregs.
    # Weights + activations are bf16 on the MXU, LIF state/math in f32.
    m1, s1 = _lif_step(h_ref[...], w1_ref, b1_ref, m1_ref, s1_ref)
    m2, s2 = _lif_step(s1.astype(jnp.bfloat16), w2_ref, b2_ref, m2_ref, s2_ref)
    m3, s3 = _lif_step(s2.astype(jnp.bfloat16), w3_ref, b3_ref, m3_ref, s3_ref)
    m4, s4 = _lif_step(s3.astype(jnp.bfloat16), w4_ref, b4_ref, m4_ref, s4_ref)
    m1_o[...], s1_o[...] = m1, s1
    m2_o[...], s2_o[...] = m2, s2
    m3_o[...], s3_o[...] = m3, s3
    m4_o[...], s4_o[...] = m4, s4


def fc_chain(params, h, st):
    # TODO(synk): at real scale (fc1 = 9216x2048, ~36 MiB bf16) the fc1 weight
    # needs a K-tiled grid + VMEM accumulator to fit v7x's 64 MiB VMEM; at the
    # toy scale whole-array residency is fine.
    sds = lambda a: jax.ShapeDtypeStruct(a.shape, a.dtype)
    states = [st["h1_mem"], st["h1_spike"], st["h2_mem"], st["h2_spike"],
              st["h3_mem"], st["h3_spike"], st["h4_mem"], st["h4_spike"]]
    n_fixed = 9   # h + 4 x (weight, bias)
    return pl.pallas_call(
        _fc_chain_kernel,
        out_shape=tuple(sds(s) for s in states),
        # LIF state tensors updated in place: inputs 9..16 -> outputs 0..7.
        input_output_aliases={n_fixed + j: j for j in range(8)},
        compiler_params=pltpu.CompilerParams(
            vmem_limit_bytes=32 * 1024 * 1024),
    )(h, params["fc1_wt"], params["fc1_b"], params["fc2_wt"], params["fc2_b"],
      params["fc3_wt"], params["fc3_b"], params["fc4_wt"], params["fc4_b"],
      *states)


# ----------------------------------------------------------------------------
# Glue: spike encoding, pooling, patch extraction (im2col), parameter setup
# ----------------------------------------------------------------------------
def encode_input(data_nhwc, lap_nhwc, key):
    """Bernoulli spike encoding (+ laplacian mix), emitted directly in NHWC.

    Plain fused XLA elementwise work — no HBM slab round-trip, and no
    pltpu.prng_* (which has no CPU/interpret lowering).
    NOTE: the reference uses `source < rand` (kept verbatim).
    """
    # TODO(synk): on real hardware this could be fused into the conv0 Pallas
    # kernel with pltpu.prng_seed/prng_random_bits (VPU work hidden under MXU).
    k1, k2 = jax.random.split(key)
    x = (data_nhwc < jax.random.uniform(k1, data_nhwc.shape)).astype(jnp.float32)
    if IS_MIX == 1:
        lap_x = (lap_nhwc > LAP_THRESHOLD).astype(jnp.float32)
        mixed = ORIGINAL_RATIO * x + (1.0 - ORIGINAL_RATIO) * lap_x
        x = (mixed > jax.random.uniform(k2, data_nhwc.shape)).astype(jnp.float32)
    return x


def avg_pool_3x3_s2(x):
    """F.avg_pool2d(kernel_size=3, stride=2) on NHWC input.

    Sum of 9 strided slices in plain XLA (fuses; no (9,N,C) stack materialised,
    no extra kernel round trip per conv layer per timestep).
    """
    b, h, w, c = x.shape
    ho = (h - 3) // 2 + 1
    wo = (w - 3) // 2 + 1
    acc = None
    for kh in range(3):
        for kw in range(3):
            s = jax.lax.slice(
                x, (0, kh, kw, 0),
                (b, kh + 2 * (ho - 1) + 1, kw + 2 * (wo - 1) + 1, c),
                (1, 2, 2, 1))
            acc = s if acc is None else acc + s
    return acc * (1.0 / 9.0)


def im2col_nhwc(x, ksz, stride, pad):
    """x: (B, H, W, C) -> patches (B*Ho*Wo, C*ksz*ksz), feature order (C, kh, kw)."""
    # TODO(synk): at real scale (conv0 11x11/s4 expands the input ~7.6x in HBM)
    # gather the row strips inside the Pallas kernel with manual make_async_copy
    # (memory_space=pl.ANY) instead of materialising the patch matrix.
    b, h, w, c = x.shape
    xp = jnp.pad(x, ((0, 0), (pad, pad), (pad, pad), (0, 0)))
    hp, wp = h + 2 * pad, w + 2 * pad
    ho = (hp - ksz) // stride + 1
    wo = (wp - ksz) // stride + 1
    cols = []
    for kh in range(ksz):
        for kw in range(ksz):
            cols.append(jax.lax.slice(
                xp, (0, kh, kw, 0),
                (b, kh + stride * (ho - 1) + 1, kw + stride * (wo - 1) + 1, c),
                (1, stride, stride, 1)))                      # (B, Ho, Wo, C)
    p = jnp.stack(cols, axis=-1)                              # (B, Ho, Wo, C, k*k)
    return p.reshape(b * ho * wo, c * ksz * ksz), (b, ho, wo)


def init_params(key):
    params = {}
    k = key

    def nxt():
        nonlocal k
        k, sub = jax.random.split(k)
        return sub

    for i, (cin, cout, _stride, _pad, ksz) in enumerate(CFG_CNN):
        fan_in = cin * ksz * ksz
        w = jax.random.normal(nxt(), (cout, cin, ksz, ksz), jnp.float32) / jnp.sqrt(
            jnp.float32(fan_in))
        b = jax.random.normal(nxt(), (cout,), jnp.float32) * 0.01
        kp = _round_up(fan_in, LANE)
        wt = jnp.zeros((kp, cout), jnp.float32).at[:fan_in, :].set(
            w.reshape(cout, fan_in).T)
        params[f"conv{i}_wt"] = wt.astype(jnp.bfloat16)   # bf16 MXU operand
        params[f"conv{i}_b"] = b.reshape(1, cout)
    fc_defs = [("fc1", CFG_FC[0], CFG_FC[1]), ("fc2", CFG_FC[1], CFG_FC[1]),
               ("fc3", CFG_FC[1], CFG_FC[2]), ("fc4", CFG_FC[2], CFG_FC[3])]
    for name, fin, fout in fc_defs:
        w = jax.random.normal(nxt(), (fout, fin), jnp.float32) / jnp.sqrt(
            jnp.float32(fin))
        b = jax.random.normal(nxt(), (fout,), jnp.float32) * 0.01
        params[f"{name}_wt"] = w.T.astype(jnp.bfloat16)   # bf16 MXU operand
        params[f"{name}_b"] = b.reshape(1, fout)
    return params


def _init_state(b2):
    st = {}
    for i, (_cin, cout, _s, _p, _k) in enumerate(CFG_CNN):
        rows = b2 * CFG_KERNEL[i] * CFG_KERNEL[i]
        n_pad, _tile = _row_tiling(rows)                 # same sizing as conv_lif
        st[f"c{i}_mem"] = jnp.zeros((n_pad, cout), jnp.float32)
        st[f"c{i}_spike"] = jnp.zeros((n_pad, cout), jnp.bfloat16)
    widths = {"h1": CFG_FC[1], "h2": CFG_FC[1], "h3": CFG_FC[2], "h4": CFG_FC[3]}
    for name, d in widths.items():
        st[f"{name}_mem"] = jnp.zeros((b2, d), jnp.float32)
        st[f"{name}_spike"] = jnp.zeros((b2, d), jnp.float32)
        st[f"{name}_sum"] = jnp.zeros((b2, d), jnp.float32)
    return st


def _chain(params, x_spk, st):
    """conv0/1/2 (+pool) then fused fc1..fc4 with LIF updates for one time step."""
    new = dict(st)
    x = x_spk                                              # NHWC spikes (b2, H, W, C)
    for i, (_cin, cout, stride, pad, ksz) in enumerate(CFG_CNN):
        patches, (b, ho, wo) = im2col_nhwc(x, ksz, stride, pad)
        n, k = patches.shape
        kp = _round_up(k, LANE)
        n_pad, tile = _row_tiling(n)
        patches = jnp.pad(patches, ((0, n_pad - n), (0, kp - k))).astype(jnp.bfloat16)
        mem, spk = conv_lif(patches, params[f"conv{i}_wt"], params[f"conv{i}_b"],
                            st[f"c{i}_mem"], st[f"c{i}_spike"], tile)
        new[f"c{i}_mem"], new[f"c{i}_spike"] = mem, spk
        # Padded rows of the state receive the bias each step and may "spike";
        # they are sliced off here so results are unaffected.
        x = avg_pool_3x3_s2(spk[:n].astype(jnp.float32).reshape(b, ho, wo, cout))
    b, hp, wp, c = x.shape
    # reproduce torch .view(B, -1) on an NCHW tensor; bf16 for the fc MXU path
    h = jnp.transpose(x, (0, 3, 1, 2)).reshape(b, c * hp * wp).astype(jnp.bfloat16)
    m1, s1, m2, s2, m3, s3, m4, s4 = fc_chain(params, h, st)
    for j, (m, s) in enumerate(((m1, s1), (m2, s2), (m3, s3), (m4, s4)), start=1):
        new[f"h{j}_mem"], new[f"h{j}_spike"] = m, s
        new[f"h{j}_sum"] = st[f"h{j}_sum"] + s
    return new


@functools.partial(jax.jit, static_argnames=("training",))
def sddc_forward(params, source, source_lap, target, target_lap, key, training=True):
    # Concatenate source/target streams (states are independent) so one conv/fc
    # chain runs per time step; doubles row counts, halves kernel launches.
    if training:
        data = jnp.concatenate([source, target], axis=0)
        lap = jnp.concatenate([source_lap, target_lap], axis=0)
    else:
        data, lap = source, source_lap
    data = jnp.transpose(data, (0, 2, 3, 1))   # NCHW -> NHWC, hoisted out of the scan
    lap = jnp.transpose(lap, (0, 2, 3, 1))
    b2 = data.shape[0]
    st0 = _init_state(b2)

    def step_fn(st, step):
        # NOTE: source and target share one PRNG stream per step (distributionally
        # equivalent to the reference's independent torch.rand draws).
        x_spk = encode_input(data, lap, jax.random.fold_in(key, step))
        st = _chain(params, x_spk, st)
        return st, None

    st, _ = jax.lax.scan(step_fn, st0, jnp.arange(TIME_WINDOW, dtype=jnp.int32))
    result = st["h4_sum"][:BATCH] / TIME_WINDOW
    src_h3 = st["h3_sum"][:BATCH]
    if training:
        tgt_h3 = st["h3_sum"][BATCH:]
    else:
        tgt_h3 = jnp.zeros((BATCH, CFG_FC[2]), jnp.float32)
    # TODO(synk): args.psp == 1 SRM-kernel path (SlayerTrainer.apply_srm_kernel,
    # configured from parameters.yaml) has no clean equivalent here; returning
    # the psp == 0 outputs (result, source_h3_sumspike, target_h3_sumspike).
    return result, src_h3, tgt_h3


if __name__ == "__main__":
    root = jax.random.PRNGKey(0)
    kparam, ks, ksl, kt, ktl, kfwd = jax.random.split(root, 6)
    params = init_params(kparam)
    shape = (BATCH, 3, IMG, IMG)   # NCHW, like the PyTorch module's inputs
    source = jax.random.uniform(ks, shape, jnp.float32)
    source_lap = jax.random.uniform(ksl, shape, jnp.float32)
    target = jax.random.uniform(kt, shape, jnp.float32)
    target_lap = jax.random.uniform(ktl, shape, jnp.float32)

    result, s_h3_sum, t_h3_sum = sddc_forward(params, source, source_lap,
                                              target, target_lap, kfwd,
                                              training=True)
    jax.block_until_ready((result, s_h3_sum, t_h3_sum))
    assert result.shape == (BATCH, NUM_CLASSES)
    assert s_h3_sum.shape == (BATCH, CFG_FC[2])
    assert t_h3_sum.shape == (BATCH, CFG_FC[2])
    print("KERNEL_OK")
</pallas_src>

<mosaic_0001>
module attributes {stable_mosaic.version = 11 : i64} {
  func.func @_conv_lif_kernel(%arg0: i32, %arg1: memref<464x384xbf16, #tpu.memory_space<vmem>>, %arg2: memref<384x16xbf16, #tpu.memory_space<vmem>>, %arg3: memref<1x16xf32, #tpu.memory_space<vmem>>, %arg4: memref<464x16xf32, #tpu.memory_space<vmem>>, %arg5: memref<464x16xbf16, #tpu.memory_space<vmem>>, %arg6: memref<464x16xf32, #tpu.memory_space<vmem>>, %arg7: memref<464x16xbf16, #tpu.memory_space<vmem>>) attributes {dimension_semantics = [#tpu.dimension_semantics<parallel>], iteration_bounds = array<i64: 2>, scalar_prefetch = 0 : i64, scratch_operands = 0 : i64, tpu.core_type = #tpu.core_type<tc>, window_params = [{transform_indices = @transform_0, window_bounds = array<i64: 464, 384>}, {pipeline_mode = #tpu.pipeline_mode<synchronous>, transform_indices = @transform_1, window_bounds = array<i64: 384, 16>}, {pipeline_mode = #tpu.pipeline_mode<synchronous>, transform_indices = @transform_2, window_bounds = array<i64: 1, 16>}, {transform_indices = @transform_3, window_bounds = array<i64: 464, 16>}, {transform_indices = @transform_4, window_bounds = array<i64: 464, 16>}, {transform_indices = @transform_5, window_bounds = array<i64: 464, 16>}, {transform_indices = @transform_6, window_bounds = array<i64: 464, 16>}]} {
    %c0 = arith.constant 0 : index
    %c0_0 = arith.constant 0 : index
    %0 = vector.load %arg1[%c0, %c0_0] : memref<464x384xbf16, #tpu.memory_space<vmem>>, vector<464x384xbf16>
    %c0_1 = arith.constant 0 : index
    %c0_2 = arith.constant 0 : index
    %1 = vector.load %arg2[%c0_1, %c0_2] : memref<384x16xbf16, #tpu.memory_space<vmem>>, vector<384x16xbf16>
    %cst = arith.constant dense<0.000000e+00> : vector<464x16xf32>
    %2 = tpu.matmul %0, %1, %cst {dimension_numbers = #tpu.dot_dimension_numbers<[1], [0], [0], [1], [0, 0, 1, 1], [], []>} : vector<464x384xbf16>, vector<384x16xbf16>, vector<464x16xf32> -> vector<464x16xf32>
    %c0_3 = arith.constant 0 : index
    %c0_4 = arith.constant 0 : index
    %3 = vector.load %arg3[%c0_3, %c0_4] : memref<1x16xf32, #tpu.memory_space<vmem>>, vector<1x16xf32>
    %4 = vector.broadcast %3 : vector<1x16xf32> to vector<464x16xf32>
    %5 = arith.addf %2, %4 : vector<464x16xf32>
    %c0_5 = arith.constant 0 : index
    %c0_6 = arith.constant 0 : index
    %6 = vector.load %arg4[%c0_5, %c0_6] : memref<464x16xf32, #tpu.memory_space<vmem>>, vector<464x16xf32>
    %cst_7 = arith.constant 2.000000e-01 : f32
    %7 = vector.broadcast %cst_7 : f32 to vector<464x16xf32>
    %8 = arith.mulf %6, %7 : vector<464x16xf32>
    %c0_8 = arith.constant 0 : index
    %c0_9 = arith.constant 0 : index
    %9 = vector.load %arg5[%c0_8, %c0_9] : memref<464x16xbf16, #tpu.memory_space<vmem>>, vector<464x16xbf16>
    %10 = arith.extf %9 : vector<464x16xbf16> to vector<464x16xf32>
    %cst_10 = arith.constant 1.000000e+00 : f32
    %11 = vector.broadcast %cst_10 : f32 to vector<464x16xf32>
    %12 = arith.subf %11, %10 : vector<464x16xf32>
    %13 = arith.mulf %8, %12 : vector<464x16xf32>
    %14 = arith.addf %13, %5 : vector<464x16xf32>
    %cst_11 = arith.constant 5.000000e-01 : f32
    %15 = vector.broadcast %cst_11 : f32 to vector<464x16xf32>
    %16 = arith.cmpf ogt, %14, %15 : vector<464x16xf32>
    %c0_12 = arith.constant 0 : index
    %c0_13 = arith.constant 0 : index
    %17 = vector.load %arg6[%c0_12, %c0_13] : memref<464x16xf32, #tpu.memory_space<vmem>>, vector<464x16xf32>
    tpu.vector_store %arg6[%c0_12, %c0_13], %14 {strides = array<i32>} : memref<464x16xf32, #tpu.memory_space<vmem>>, vector<464x16xf32>,
    %18 = arith.extui %16 : vector<464x16xi1> to vector<464x16xi32>
    %19 = arith.sitofp %18 : vector<464x16xi32> to vector<464x16xf32>
    %20 = arith.truncf %19 : vector<464x16xf32> to vector<464x16xbf16>
    %c0_14 = arith.constant 0 : index
    %c0_15 = arith.constant 0 : index
    %21 = vector.load %arg7[%c0_14, %c0_15] : memref<464x16xbf16, #tpu.memory_space<vmem>>, vector<464x16xbf16>
    tpu.vector_store %arg7[%c0_14, %c0_15], %20 {strides = array<i32>} : memref<464x16xbf16, #tpu.memory_space<vmem>>, vector<464x16xbf16>,
    return
  }
  func.func @transform_0(%arg0: i32) -> (i32, i32) {
    %c0_i32 = arith.constant 0 : i32
    %c0_i32_0 = arith.constant 0 : i32
    return %arg0, %c0_i32 : i32, i32
  }
  func.func @transform_1(%arg0: i32) -> (i32, i32) {
    %c0_i32 = arith.constant 0 : i32
    %c0_i32_0 = arith.constant 0 : i32
    %c0_i32_1 = arith.constant 0 : i32
    return %c0_i32, %c0_i32_0 : i32, i32
  }
  func.func @transform_2(%arg0: i32) -> (i32, i32) {
    %c0_i32 = arith.constant 0 : i32
    %c0_i32_0 = arith.constant 0 : i32
    %c0_i32_1 = arith.constant 0 : i32
    return %c0_i32, %c0_i32_0 : i32, i32
  }
  func.func @transform_3(%arg0: i32) -> (i32, i32) {
    %c0_i32 = arith.constant 0 : i32
    %c0_i32_0 = arith.constant 0 : i32
    return %arg0, %c0_i32 : i32, i32
  }
  func.func @transform_4(%arg0: i32) -> (i32, i32) {
    %c0_i32 = arith.constant 0 : i32
    %c0_i32_0 = arith.constant 0 : i32
    return %arg0, %c0_i32 : i32, i32
  }
  func.func @transform_5(%arg0: i32) -> (i32, i32) {
    %c0_i32 = arith.constant 0 : i32
    %c0_i32_0 = arith.constant 0 : i32
    return %arg0, %c0_i32 : i32, i32
  }
  func.func @transform_6(%arg0: i32) -> (i32, i32) {
    %c0_i32 = arith.constant 0 : i32
    %c0_i32_0 = arith.constant 0 : i32
    return %arg0, %c0_i32 : i32, i32
  }
}

module attributes {stable_mosaic.version = 11 : i64} {
  func.func @_conv_lif_kernel(%arg0: i32, %arg1: memref<112x512xbf16, #tpu.memory_space<vmem>>, %arg2: memref<512x32xbf16, #tpu.memory_space<vmem>>, %arg3: memref<1x32xf32, #tpu.memory_space<vmem>>, %arg4: memref<112x32xf32, #tpu.memory_space<vmem>>, %arg5: memref<112x32xbf16, #tpu.memory_space<vmem>>, %arg6: memref<112x32xf32, #tpu.memory_space<vmem>>, %arg7: memref<112x32xbf16, #tpu.memory_space<vmem>>) attributes {dimension_semantics = [#tpu.dimension_semantics<parallel>], iteration_bounds = array<i64: 2>, scalar_prefetch = 0 : i64, scratch_operands = 0 : i64, tpu.core_type = #tpu.core_type<tc>, window_params = [{transform_indices = @transform_0, window_bounds = array<i64: 112, 512>}, {pipeline_mode = #tpu.pipeline_mode<synchronous>, transform_indices = @transform_1, window_bounds = array<i64: 512, 32>}, {pipeline_mode = #tpu.pipeline_mode<synchronous>, transform_indices = @transform_2, window_bounds = array<i64: 1, 32>}, {transform_indices = @transform_3, window_bounds = array<i64: 112, 32>}, {transform_indices = @transform_4, window_bounds = array<i64: 112, 32>}, {transform_indices = @transform_5, window_bounds = array<i64: 112, 32>}, {transform_indices = @transform_6, window_bounds = array<i64: 112, 32>}]} {
    %c0 = arith.constant 0 : index
    %c0_0 = arith.constant 0 : index
    %0 = vector.load %arg1[%c0, %c0_0] : memref<112x512xbf16, #tpu.memory_space<vmem>>, vector<112x512xbf16>
    %c0_1 = arith.constant 0 : index
    %c0_2 = arith.constant 0 : index
    %1 = vector.load %arg2[%c0_1, %c0_2] : memref<512x32xbf16, #tpu.memory_space<vmem>>, vector<512x32xbf16>
    %cst = arith.constant dense<0.000000e+00> : vector<112x32xf32>
    %2 = tpu.matmul %0, %1, %cst {dimension_numbers = #tpu.dot_dimension_numbers<[1], [0], [0], [1], [0, 0, 1, 1], [], []>} : vector<112x512xbf16>, vector<512x32xbf16>, vector<112x32xf32> -> vector<112x32xf32>
    %c0_3 = arith.constant 0 : index
    %c0_4 = arith.constant 0 : index
    %3 = vector.load %arg3[%c0_3, %c0_4] : memref<1x32xf32, #tpu.memory_space<vmem>>, vector<1x32xf32>
    %4 = vector.broadcast %3 : vector<1x32xf32> to vector<112x32xf32>
    %5 = arith.addf %2, %4 : vector<112x32xf32>
    %c0_5 = arith.constant 0 : index
    %c0_6 = arith.constant 0 : index
    %6 = vector.load %arg4[%c0_5, %c0_6] : memref<112x32xf32, #tpu.memory_space<vmem>>, vector<112x32xf32>
    %cst_7 = arith.constant 2.000000e-01 : f32
    %7 = vector.broadcast %cst_7 : f32 to vector<112x32xf32>
    %8 = arith.mulf %6, %7 : vector<112x32xf32>
    %c0_8 = arith.constant 0 : index
    %c0_9 = arith.constant 0 : index
    %9 = vector.load %arg5[%c0_8, %c0_9] : memref<112x32xbf16, #tpu.memory_space<vmem>>, vector<112x32xbf16>
    %10 = arith.extf %9 : vector<112x32xbf16> to vector<112x32xf32>
    %cst_10 = arith.constant 1.000000e+00 : f32
    %11 = vector.broadcast %cst_10 : f32 to vector<112x32xf32>
    %12 = arith.subf %11, %10 : vector<112x32xf32>
    %13 = arith.mulf %8, %12 : vector<112x32xf32>
    %14 = arith.addf %13, %5 : vector<112x32xf32>
    %cst_11 = arith.constant 5.000000e-01 : f32
    %15 = vector.broadcast %cst_11 : f32 to vector<112x32xf32>
    %16 = arith.cmpf ogt, %14, %15 : vector<112x32xf32>
    %c0_12 = arith.constant 0 : index
    %c0_13 = arith.constant 0 : index
    %17 = vector.load %arg6[%c0_12, %c0_13] : memref<112x32xf32, #tpu.memory_space<vmem>>, vector<112x32xf32>
    tpu.vector_store %arg6[%c0_12, %c0_13], %14 {strides = array<i32>} : memref<112x32xf32, #tpu.memory_space<vmem>>, vector<112x32xf32>,
    %18 = arith.extui %16 : vector<112x32xi1> to vector<112x32xi32>
    %19 = arith.sitofp %18 : vector<112x32xi32> to vector<112x32xf32>
    %20 = arith.truncf %19 : vector<112x32xf32> to vector<112x32xbf16>
    %c0_14 = arith.constant 0 : index
    %c0_15 = arith.constant 0 : index
    %21 = vector.load %arg7[%c0_14, %c0_15] : memref<112x32xbf16, #tpu.memory_space<vmem>>, vector<112x32xbf16>
    tpu.vector_store %arg7[%c0_14, %c0_15], %20 {strides = array<i32>} : memref<112x32xbf16, #tpu.memory_space<vmem>>, vector<112x32xbf16>,
    return
  }
  func.func @transform_0(%arg0: i32) -> (i32, i32) {
    %c0_i32 = arith.constant 0 : i32
    %c0_i32_0 = arith.constant 0 : i32
    return %arg0, %c0_i32 : i32, i32
  }
  func.func @transform_1(%arg0: i32) -> (i32, i32) {
    %c0_i32 = arith.constant 0 : i32
    %c0_i32_0 = arith.constant 0 : i32
    %c0_i32_1 = arith.constant 0 : i32
    return %c0_i32, %c0_i32_0 : i32, i32
  }
  func.func @transform_2(%arg0: i32) -> (i32, i32) {
    %c0_i32 = arith.constant 0 : i32
    %c0_i32_0 = arith.constant 0 : i32
    %c0_i32_1 = arith.constant 0 : i32
    return %c0_i32, %c0_i32_0 : i32, i32
  }
  func.func @transform_3(%arg0: i32) -> (i32, i32) {
    %c0_i32 = arith.constant 0 : i32
    %c0_i32_0 = arith.constant 0 : i32
    return %arg0, %c0_i32 : i32, i32
  }
  func.func @transform_4(%arg0: i32) -> (i32, i32) {
    %c0_i32 = arith.constant 0 : i32
    %c0_i32_0 = arith.constant 0 : i32
    return %arg0, %c0_i32 : i32, i32
  }
  func.func @transform_5(%arg0: i32) -> (i32, i32) {
    %c0_i32 = arith.constant 0 : i32
    %c0_i32_0 = arith.constant 0 : i32
    return %arg0, %c0_i32 : i32, i32
  }
  func.func @transform_6(%arg0: i32) -> (i32, i32) {
    %c0_i32 = arith.constant 0 : i32
    %c0_i32_0 = arith.constant 0 : i32
    return %arg0, %c0_i32 : i32, i32
  }
}

module attributes {stable_mosaic.version = 11 : i64} {
  func.func @_conv_lif_kernel(%arg0: i32, %arg1: memref<32x384xbf16, #tpu.memory_space<vmem>>, %arg2: memref<384x64xbf16, #tpu.memory_space<vmem>>, %arg3: memref<1x64xf32, #tpu.memory_space<vmem>>, %arg4: memref<32x64xf32, #tpu.memory_space<vmem>>, %arg5: memref<32x64xbf16, #tpu.memory_space<vmem>>, %arg6: memref<32x64xf32, #tpu.memory_space<vmem>>, %arg7: memref<32x64xbf16, #tpu.memory_space<vmem>>) attributes {dimension_semantics = [#tpu.dimension_semantics<parallel>], iteration_bounds = array<i64: 2>, scalar_prefetch = 0 : i64, scratch_operands = 0 : i64, tpu.core_type = #tpu.core_type<tc>, window_params = [{transform_indices = @transform_0, window_bounds = array<i64: 32, 384>}, {pipeline_mode = #tpu.pipeline_mode<synchronous>, transform_indices = @transform_1, window_bounds = array<i64: 384, 64>}, {pipeline_mode = #tpu.pipeline_mode<synchronous>, transform_indices = @transform_2, window_bounds = array<i64: 1, 64>}, {transform_indices = @transform_3, window_bounds = array<i64: 32, 64>}, {transform_indices = @transform_4, window_bounds = array<i64: 32, 64>}, {transform_indices = @transform_5, window_bounds = array<i64: 32, 64>}, {transform_indices = @transform_6, window_bounds = array<i64: 32, 64>}]} {
    %c0 = arith.constant 0 : index
    %c0_0 = arith.constant 0 : index
    %0 = vector.load %arg1[%c0, %c0_0] : memref<32x384xbf16, #tpu.memory_space<vmem>>, vector<32x384xbf16>
    %c0_1 = arith.constant 0 : index
    %c0_2 = arith.constant 0 : index
    %1 = vector.load %arg2[%c0_1, %c0_2] : memref<384x64xbf16, #tpu.memory_space<vmem>>, vector<384x64xbf16>
    %cst = arith.constant dense<0.000000e+00> : vector<32x64xf32>
    %2 = tpu.matmul %0, %1, %cst {dimension_numbers = #tpu.dot_dimension_numbers<[1], [0], [0], [1], [0, 0, 1, 1], [], []>} : vector<32x384xbf16>, vector<384x64xbf16>, vector<32x64xf32> -> vector<32x64xf32>
    %c0_3 = arith.constant 0 : index
    %c0_4 = arith.constant 0 : index
    %3 = vector.load %arg3[%c0_3, %c0_4] : memref<1x64xf32, #tpu.memory_space<vmem>>, vector<1x64xf32>
    %4 = vector.broadcast %3 : vector<1x64xf32> to vector<32x64xf32>
    %5 = arith.addf %2, %4 : vector<32x64xf32>
    %c0_5 = arith.constant 0 : index
    %c0_6 = arith.constant 0 : index
    %6 = vector.load %arg4[%c0_5, %c0_6] : memref<32x64xf32, #tpu.memory_space<vmem>>, vector<32x64xf32>
    %cst_7 = arith.constant 2.000000e-01 : f32
    %7 = vector.broadcast %cst_7 : f32 to vector<32x64xf32>
    %8 = arith.mulf %6, %7 : vector<32x64xf32>
    %c0_8 = arith.constant 0 : index
    %c0_9 = arith.constant 0 : index
    %9 = vector.load %arg5[%c0_8, %c0_9] : memref<32x64xbf16, #tpu.memory_space<vmem>>, vector<32x64xbf16>
    %10 = arith.extf %9 : vector<32x64xbf16> to vector<32x64xf32>
    %cst_10 = arith.constant 1.000000e+00 : f32
    %11 = vector.broadcast %cst_10 : f32 to vector<32x64xf32>
    %12 = arith.subf %11, %10 : vector<32x64xf32>
    %13 = arith.mulf %8, %12 : vector<32x64xf32>
    %14 = arith.addf %13, %5 : vector<32x64xf32>
    %cst_11 = arith.constant 5.000000e-01 : f32
    %15 = vector.broadcast %cst_11 : f32 to vector<32x64xf32>
    %16 = arith.cmpf ogt, %14, %15 : vector<32x64xf32>
    %c0_12 = arith.constant 0 : index
    %c0_13 = arith.constant 0 : index
    %17 = vector.load %arg6[%c0_12, %c0_13] : memref<32x64xf32, #tpu.memory_space<vmem>>, vector<32x64xf32>
    tpu.vector_store %arg6[%c0_12, %c0_13], %14 {strides = array<i32>} : memref<32x64xf32, #tpu.memory_space<vmem>>, vector<32x64xf32>,
    %18 = arith.extui %16 : vector<32x64xi1> to vector<32x64xi32>
    %19 = arith.sitofp %18 : vector<32x64xi32> to vector<32x64xf32>
    %20 = arith.truncf %19 : vector<32x64xf32> to vector<32x64xbf16>
    %c0_14 = arith.constant 0 : index
    %c0_15 = arith.constant 0 : index
    %21 = vector.load %arg7[%c0_14, %c0_15] : memref<32x64xbf16, #tpu.memory_space<vmem>>, vector<32x64xbf16>
    tpu.vector_store %arg7[%c0_14, %c0_15], %20 {strides = array<i32>} : memref<32x64xbf16, #tpu.memory_space<vmem>>, vector<32x64xbf16>,
    return
  }
  func.func @transform_0(%arg0: i32) -> (i32, i32) {
    %c0_i32 = arith.constant 0 : i32
    %c0_i32_0 = arith.constant 0 : i32
    return %arg0, %c0_i32 : i32, i32
  }
  func.func @transform_1(%arg0: i32) -> (i32, i32) {
    %c0_i32 = arith.constant 0 : i32
    %c0_i32_0 = arith.constant 0 : i32
    %c0_i32_1 = arith.constant 0 : i32
    return %c0_i32, %c0_i32_0 : i32, i32
  }
  func.func @transform_2(%arg0: i32) -> (i32, i32) {
    %c0_i32 = arith.constant 0 : i32
    %c0_i32_0 = arith.constant 0 : i32
    %c0_i32_1 = arith.constant 0 : i32
    return %c0_i32, %c0_i32_0 : i32, i32
  }
  func.func @transform_3(%arg0: i32) -> (i32, i32) {
    %c0_i32 = arith.constant 0 : i32
    %c0_i32_0 = arith.constant 0 : i32
    return %arg0, %c0_i32 : i32, i32
  }
  func.func @transform_4(%arg0: i32) -> (i32, i32) {
    %c0_i32 = arith.constant 0 : i32
    %c0_i32_0 = arith.constant 0 : i32
    return %arg0, %c0_i32 : i32, i32
  }
  func.func @transform_5(%arg0: i32) -> (i32, i32) {
    %c0_i32 = arith.constant 0 : i32
    %c0_i32_0 = arith.constant 0 : i32
    return %arg0, %c0_i32 : i32, i32
  }
  func.func @transform_6(%arg0: i32) -> (i32, i32) {
    %c0_i32 = arith.constant 0 : i32
    %c0_i32_0 = arith.constant 0 : i32
    return %arg0, %c0_i32 : i32, i32
  }
}

module attributes {stable_mosaic.version = 11 : i64} {
  func.func @_fc_chain_kernel(%arg0: memref<4x64xbf16, #tpu.memory_space<vmem>>, %arg1: memref<64x128xbf16, #tpu.memory_space<vmem>>, %arg2: memref<1x128xf32, #tpu.memory_space<vmem>>, %arg3: memref<128x128xbf16, #tpu.memory_space<vmem>>, %arg4: memref<1x128xf32, #tpu.memory_space<vmem>>, %arg5: memref<128x32xbf16, #tpu.memory_space<vmem>>, %arg6: memref<1x32xf32, #tpu.memory_space<vmem>>, %arg7: memref<32x10xbf16, #tpu.memory_space<vmem>>, %arg8: memref<1x10xf32, #tpu.memory_space<vmem>>, %arg9: memref<4x128xf32, #tpu.memory_space<vmem>>, %arg10: memref<4x128xf32, #tpu.memory_space<vmem>>, %arg11: memref<4x128xf32, #tpu.memory_space<vmem>>, %arg12: memref<4x128xf32, #tpu.memory_space<vmem>>, %arg13: memref<4x32xf32, #tpu.memory_space<vmem>>, %arg14: memref<4x32xf32, #tpu.memory_space<vmem>>, %arg15: memref<4x10xf32, #tpu.memory_space<vmem>>, %arg16: memref<4x10xf32, #tpu.memory_space<vmem>>, %arg17: memref<4x128xf32, #tpu.memory_space<vmem>>, %arg18: memref<4x128xf32, #tpu.memory_space<vmem>>, %arg19: memref<4x128xf32, #tpu.memory_space<vmem>>, %arg20: memref<4x128xf32, #tpu.memory_space<vmem>>, %arg21: memref<4x32xf32, #tpu.memory_space<vmem>>, %arg22: memref<4x32xf32, #tpu.memory_space<vmem>>, %arg23: memref<4x10xf32, #tpu.memory_space<vmem>>, %arg24: memref<4x10xf32, #tpu.memory_space<vmem>>) attributes {dimension_semantics = [], scalar_prefetch = 0 : i64, scratch_operands = 0 : i64, tpu.core_type = #tpu.core_type<tc>} {
    %c0 = arith.constant 0 : index
    %c0_0 = arith.constant 0 : index
    %0 = vector.load %arg0[%c0, %c0_0] : memref<4x64xbf16, #tpu.memory_space<vmem>>, vector<4x64xbf16>
    %c0_1 = arith.constant 0 : index
    %c0_2 = arith.constant 0 : index
    %1 = vector.load %arg1[%c0_1, %c0_2] : memref<64x128xbf16, #tpu.memory_space<vmem>>, vector<64x128xbf16>
    %cst = arith.constant dense<0.000000e+00> : vector<4x128xf32>
    %2 = tpu.matmul %0, %1, %cst {dimension_numbers = #tpu.dot_dimension_numbers<[1], [0], [0], [1], [0, 0, 1, 1], [], []>} : vector<4x64xbf16>, vector<64x128xbf16>, vector<4x128xf32> -> vector<4x128xf32>
    %c0_3 = arith.constant 0 : index
    %c0_4 = arith.constant 0 : index
    %3 = vector.load %arg2[%c0_3, %c0_4] : memref<1x128xf32, #tpu.memory_space<vmem>>, vector<1x128xf32>
    %4 = vector.broadcast %3 : vector<1x128xf32> to vector<4x128xf32>
    %5 = arith.addf %2, %4 : vector<4x128xf32>
    %c0_5 = arith.constant 0 : index
    %c0_6 = arith.constant 0 : index
    %6 = vector.load %arg9[%c0_5, %c0_6] : memref<4x128xf32, #tpu.memory_space<vmem>>, vector<4x128xf32>
    %cst_7 = arith.constant 2.000000e-01 : f32
    %7 = vector.broadcast %cst_7 : f32 to vector<4x128xf32>
    %8 = arith.mulf %6, %7 : vector<4x128xf32>
    %c0_8 = arith.constant 0 : index
    %c0_9 = arith.constant 0 : index
    %9 = vector.load %arg10[%c0_8, %c0_9] : memref<4x128xf32, #tpu.memory_space<vmem>>, vector<4x128xf32>
    %cst_10 = arith.constant 1.000000e+00 : f32
    %10 = vector.broadcast %cst_10 : f32 to vector<4x128xf32>
    %11 = arith.subf %10, %9 : vector<4x128xf32>
    %12 = arith.mulf %8, %11 : vector<4x128xf32>
    %13 = arith.addf %12, %5 : vector<4x128xf32>
    %cst_11 = arith.constant 5.000000e-01 : f32
    %14 = vector.broadcast %cst_11 : f32 to vector<4x128xf32>
    %15 = arith.cmpf ogt, %13, %14 : vector<4x128xf32>
    %16 = arith.extui %15 : vector<4x128xi1> to vector<4x128xi32>
    %17 = arith.sitofp %16 : vector<4x128xi32> to vector<4x128xf32>
    %18 = arith.truncf %17 : vector<4x128xf32> to vector<4x128xbf16>
    %c0_12 = arith.constant 0 : index
    %c0_13 = arith.constant 0 : index
    %19 = vector.load %arg3[%c0_12, %c0_13] : memref<128x128xbf16, #tpu.memory_space<vmem>>, vector<128x128xbf16>
    %cst_14 = arith.constant dense<0.000000e+00> : vector<4x128xf32>
    %20 = tpu.matmul %18, %19, %cst_14 {dimension_numbers = #tpu.dot_dimension_numbers<[1], [0], [0], [1], [0, 0, 1, 1], [], []>} : vector<4x128xbf16>, vector<128x128xbf16>, vector<4x128xf32> -> vector<4x128xf32>
    %c0_15 = arith.constant 0 : index
    %c0_16 = arith.constant 0 : index
    %21 = vector.load %arg4[%c0_15, %c0_16] : memref<1x128xf32, #tpu.memory_space<vmem>>, vector<1x128xf32>
    %22 = vector.broadcast %21 : vector<1x128xf32> to vector<4x128xf32>
    %23 = arith.addf %20, %22 : vector<4x128xf32>
    %c0_17 = arith.constant 0 : index
    %c0_18 = arith.constant 0 : index
    %24 = vector.load %arg11[%c0_17, %c0_18] : memref<4x128xf32, #tpu.memory_space<vmem>>, vector<4x128xf32>
    %cst_19 = arith.constant 2.000000e-01 : f32
    %25 = vector.broadcast %cst_19 : f32 to vector<4x128xf32>
    %26 = arith.mulf %24, %25 : vector<4x128xf32>
    %c0_20 = arith.constant 0 : index
    %c0_21 = arith.constant 0 : index
    %27 = vector.load %arg12[%c0_20, %c0_21] : memref<4x128xf32, #tpu.memory_space<vmem>>, vector<4x128xf32>
    %cst_22 = arith.constant 1.000000e+00 : f32
    %28 = vector.broadcast %cst_22 : f32 to vector<4x128xf32>
    %29 = arith.subf %28, %27 : vector<4x128xf32>
    %30 = arith.mulf %26, %29 : vector<4x128xf32>
    %31 = arith.addf %30, %23 : vector<4x128xf32>
    %cst_23 = arith.constant 5.000000e-01 : f32
    %32 = vector.broadcast %cst_23 : f32 to vector<4x128xf32>
    %33 = arith.cmpf ogt, %31, %32 : vector<4x128xf32>
    %34 = arith.extui %33 : vector<4x128xi1> to vector<4x128xi32>
    %35 = arith.sitofp %34 : vector<4x128xi32> to vector<4x128xf32>
    %36 = arith.truncf %35 : vector<4x128xf32> to vector<4x128xbf16>
    %c0_24 = arith.constant 0 : index
    %c0_25 = arith.constant 0 : index
    %37 = vector.load %arg5[%c0_24, %c0_25] : memref<128x32xbf16, #tpu.memory_space<vmem>>, vector<128x32xbf16>
    %cst_26 = arith.constant dense<0.000000e+00> : vector<4x32xf32>
    %38 = tpu.matmul %36, %37, %cst_26 {dimension_numbers = #tpu.dot_dimension_numbers<[1], [0], [0], [1], [0, 0, 1, 1], [], []>} : vector<4x128xbf16>, vector<128x32xbf16>, vector<4x32xf32> -> vector<4x32xf32>
    %c0_27 = arith.constant 0 : index
    %c0_28 = arith.constant 0 : index
    %39 = vector.load %arg6[%c0_27, %c0_28] : memref<1x32xf32, #tpu.memory_space<vmem>>, vector<1x32xf32>
    %40 = vector.broadcast %39 : vector<1x32xf32> to vector<4x32xf32>
    %41 = arith.addf %38, %40 : vector<4x32xf32>
    %c0_29 = arith.constant 0 : index
    %c0_30 = arith.constant 0 : index
    %42 = vector.load %arg13[%c0_29, %c0_30] : memref<4x32xf32, #tpu.memory_space<vmem>>, vector<4x32xf32>
    %cst_31 = arith.constant 2.000000e-01 : f32
    %43 = vector.broadcast %cst_31 : f32 to vector<4x32xf32>
    %44 = arith.mulf %42, %43 : vector<4x32xf32>
    %c0_32 = arith.constant 0 : index
    %c0_33 = arith.constant 0 : index
    %45 = vector.load %arg14[%c0_32, %c0_33] : memref<4x32xf32, #tpu.memory_space<vmem>>, vector<4x32xf32>
    %cst_34 = arith.constant 1.000000e+00 : f32
    %46 = vector.broadcast %cst_34 : f32 to vector<4x32xf32>
    %47 = arith.subf %46, %45 : vector<4x32xf32>
    %48 = arith.mulf %44, %47 : vector<4x32xf32>
    %49 = arith.addf %48, %41 : vector<4x32xf32>
    %cst_35 = arith.constant 5.000000e-01 : f32
    %50 = vector.broadcast %cst_35 : f32 to vector<4x32xf32>
    %51 = arith.cmpf ogt, %49, %50 : vector<4x32xf32>
    %52 = arith.extui %51 : vector<4x32xi1> to vector<4x32xi32>
    %53 = arith.sitofp %52 : vector<4x32xi32> to vector<4x32xf32>
    %54 = arith.truncf %53 : vector<4x32xf32> to vector<4x32xbf16>
    %c0_36 = arith.constant 0 : index
    %c0_37 = arith.constant 0 : index
    %55 = vector.load %arg7[%c0_36, %c0_37] : memref<32x10xbf16, #tpu.memory_space<vmem>>, vector<32x10xbf16>
    %cst_38 = arith.constant dense<0.000000e+00> : vector<4x10xf32>
    %56 = tpu.matmul %54, %55, %cst_38 {dimension_numbers = #tpu.dot_dimension_numbers<[1], [0], [0], [1], [0, 0, 1, 1], [], []>} : vector<4x32xbf16>, vector<32x10xbf16>, vector<4x10xf32> -> vector<4x10xf32>
    %c0_39 = arith.constant 0 : index
    %c0_40 = arith.constant 0 : index
    %57 = vector.load %arg8[%c0_39, %c0_40] : memref<1x10xf32, #tpu.memory_space<vmem>>, vector<1x10xf32>
    %58 = vector.broadcast %57 : vector<1x10xf32> to vector<4x10xf32>
    %59 = arith.addf %56, %58 : vector<4x10xf32>
    %c0_41 = arith.constant 0 : index
    %c0_42 = arith.constant 0 : index
    %60 = vector.load %arg15[%c0_41, %c0_42] : memref<4x10xf32, #tpu.memory_space<vmem>>, vector<4x10xf32>
    %cst_43 = arith.constant 2.000000e-01 : f32
    %61 = vector.broadcast %cst_43 : f32 to vector<4x10xf32>
    %62 = arith.mulf %60, %61 : vector<4x10xf32>
    %c0_44 = arith.constant 0 : index
    %c0_45 = arith.constant 0 : index
    %63 = vector.load %arg16[%c0_44, %c0_45] : memref<4x10xf32, #tpu.memory_space<vmem>>, vector<4x10xf32>
    %cst_46 = arith.constant 1.000000e+00 : f32
    %64 = vector.broadcast %cst_46 : f32 to vector<4x10xf32>
    %65 = arith.subf %64, %63 : vector<4x10xf32>
    %66 = arith.mulf %62, %65 : vector<4x10xf32>
    %67 = arith.addf %66, %59 : vector<4x10xf32>
    %cst_47 = arith.constant 5.000000e-01 : f32
    %68 = vector.broadcast %cst_47 : f32 to vector<4x10xf32>
    %69 = arith.cmpf ogt, %67, %68 : vector<4x10xf32>
    %70 = arith.extui %69 : vector<4x10xi1> to vector<4x10xi32>
    %71 = arith.sitofp %70 : vector<4x10xi32> to vector<4x10xf32>
    %c0_48 = arith.constant 0 : index
    %c0_49 = arith.constant 0 : index
    %72 = vector.load %arg17[%c0_48, %c0_49] : memref<4x128xf32, #tpu.memory_space<vmem>>, vector<4x128xf32>
    tpu.vector_store %arg17[%c0_48, %c0_49], %13 {strides = array<i32>} : memref<4x128xf32, #tpu.memory_space<vmem>>, vector<4x128xf32>,
    %c0_50 = arith.constant 0 : index
    %c0_51 = arith.constant 0 : index
    %73 = vector.load %arg18[%c0_50, %c0_51] : memref<4x128xf32, #tpu.memory_space<vmem>>, vector<4x128xf32>
    tpu.vector_store %arg18[%c0_50, %c0_51], %17 {strides = array<i32>} : memref<4x128xf32, #tpu.memory_space<vmem>>, vector<4x128xf32>,
    %c0_52 = arith.constant 0 : index
    %c0_53 = arith.constant 0 : index
    %74 = vector.load %arg19[%c0_52, %c0_53] : memref<4x128xf32, #tpu.memory_space<vmem>>, vector<4x128xf32>
    tpu.vector_store %arg19[%c0_52, %c0_53], %31 {strides = array<i32>} : memref<4x128xf32, #tpu.memory_space<vmem>>, vector<4x128xf32>,
    %c0_54 = arith.constant 0 : index
    %c0_55 = arith.constant 0 : index
    %75 = vector.load %arg20[%c0_54, %c0_55] : memref<4x128xf32, #tpu.memory_space<vmem>>, vector<4x128xf32>
    tpu.vector_store %arg20[%c0_54, %c0_55], %35 {strides = array<i32>} : memref<4x128xf32, #tpu.memory_space<vmem>>, vector<4x128xf32>,
    %c0_56 = arith.constant 0 : index
    %c0_57 = arith.constant 0 : index
    %76 = vector.load %arg21[%c0_56, %c0_57] : memref<4x32xf32, #tpu.memory_space<vmem>>, vector<4x32xf32>
    tpu.vector_store %arg21[%c0_56, %c0_57], %49 {strides = array<i32>} : memref<4x32xf32, #tpu.memory_space<vmem>>, vector<4x32xf32>,
    %c0_58 = arith.constant 0 : index
    %c0_59 = arith.constant 0 : index
    %77 = vector.load %arg22[%c0_58, %c0_59] : memref<4x32xf32, #tpu.memory_space<vmem>>, vector<4x32xf32>
    tpu.vector_store %arg22[%c0_58, %c0_59], %53 {strides = array<i32>} : memref<4x32xf32, #tpu.memory_space<vmem>>, vector<4x32xf32>,
    %c0_60 = arith.constant 0 : index
    %c0_61 = arith.constant 0 : index
    %78 = vector.load %arg23[%c0_60, %c0_61] : memref<4x10xf32, #tpu.memory_space<vmem>>, vector<4x10xf32>
    tpu.vector_store %arg23[%c0_60, %c0_61], %67 {strides = array<i32>} : memref<4x10xf32, #tpu.memory_space<vmem>>, vector<4x10xf32>,
    %c0_62 = arith.constant 0 : index
    %c0_63 = arith.constant 0 : index
    %79 = vector.load %arg24[%c0_62, %c0_63] : memref<4x10xf32, #tpu.memory_space<vmem>>, vector<4x10xf32>
    tpu.vector_store %arg24[%c0_62, %c0_63], %71 {strides = array<i32>} : memref<4x10xf32, #tpu.memory_space<vmem>>, vector<4x10xf32>,
    return
  }
}

</mosaic_0001>

<bundles_post_ra>
// kernel: custom-call
= control target key start
LH: loop header
LB: loop body
LE: loop exit
PB: predicated region body
PF: predicated region fallthrough
CT: control target
= control target key end

     0   :  { %s6_s0 = inlined_call_operand.vmem [shape: f32[4,32], index: 0, kind: output, shape index: {}]  }

// kernel: custom-call.1
= control target key start
LH: loop header
LB: loop body
LE: loop exit
PB: predicated region body
PF: predicated region fallthrough
CT: control target
= control target key end

     0   :  { %s6_s0 = inlined_call_operand.vmem [shape: f32[4,10], index: 0, kind: output, shape index: {}]  }

// kernel: closed_call.58
= control target key start
LH: loop header
LB: loop body
LE: loop exit
PB: predicated region body
PF: predicated region fallthrough
CT: control target
= control target key end

     0   :  { %s3480_s21 = smov 0   ;;  %s4688_s0 = inlined_call_operand.vmem [shape: bf16[928,384], index: 0, kind: input, shape index: {}]   ;;  %s4689_s1 = inlined_call_operand.vmem [shape: bf16[384,16], index: 1, kind: input, shape index: {}]   ;;  %s4690_s2 = inlined_call_operand.vmem [shape: f32[1,16], index: 2, kind: input, shape index: {}]   ;;  %s4691_s3 = inlined_call_operand.vmem [shape: f32[928,16], index: 3, kind: input, shape index: {}, may-alias: {3,5}]   ;;  %s4692_s4 = inlined_call_operand.vmem [shape: bf16[928,16], index: 4, kind: input, shape index: {}, may-alias: {4,6}]   ;;  %s4693_s5 = inlined_call_operand.vmem [shape: f32[928,16], index: 5, kind: output, shape index: {0}, may-alias: {3,5}]   ;;  %s4694_s6 = inlined_call_operand.vmem [shape: bf16[928,16], index: 6, kind: output, shape index: {1}, may-alias: {4,6}]  }
   0x1 LB: > { %s2670_s22 = sadd.s32 4294967295, %s3440_s21   ;;  %p2674_p0 = scmp.ge.s32.totalorder %s3440_s21, 1  ;;  %s3440_s21 = sphi %s3480_s21, %s17_s21  }
   0x2   : > { %p239_p1 = scmp.lt.s32.totalorder %s3440_s21, 3 }
   0x4   : > { %p240_p2 = pnand %p2674_p0, %p239_p1 }
   0x6   : > { %243 = sbr.rel (%p240_p2) target bundleno = 527 (0x20f), region = 40 }
   0xd   : > { %v3293_v0 = vld [vmem:[%s4689_s1] sm:$0xff]   ;;  %v3442_v1 = vmov 0   ;;  %v3294_v2 = vld [vmem:[%s4689_s1 + $0x8] sm:$0xff]   ;;  %v4695_v3 = vmov 0.0   ;;  %vm3444_vm0 = vmmov 0   ;;  %v3295_v4 = vld [vmem:[%s4689_s1 + $0x10] sm:$0xff]  }
   0xe   : > { %1096 = vmatprep.subr.bf16.mxu0 %v3442_v1  ;;  %3149 = vmatprep.subr.bf16.mxu1 %v4695_v3  ;;  %s285_s29 = smul.u32 58, %s2670_s22  ;;  %v3301_v5 = vld [vmem:[%s4689_s1 + $0x80] sm:$0xff]   ;;  %v3296_v6 = vld [vmem:[%s4689_s1 + $0x18] sm:$0xff]   ;;  %v3303_v7 = vld [vmem:[%s4689_s1 + $0x88] sm:$0xff]   ;;  %vm2090_vm1 = vcmask 130048   ;;  %vm2497_vm3 = vcmask 125952  }
   0xf   : > { %1097 = vmatpush1.bf16.msra.mxu0 %v3293_v0  ;;  %3165 = vmatprep.mubr.msk.bf16.mxu1 %vm3444_vm0, %v4695_v3  ;;  %v3297_v8 = vld [vmem:[%s4689_s1 + $0x20] sm:$0xff]   ;;  %v3305_v9 = vld [vmem:[%s4689_s1 + $0x90] sm:$0xff]   ;;  %v3298_v10 = vld [vmem:[%s4689_s1 + $0x28] sm:$0xff]  }
  0x10   : > { %1098 = vmatprep.subr.bf16.mxu0 %v3442_v1  ;;  %3150 = vmatpush3.bf16.msra.mxu1 %v3301_v5  ;;  %p286_p3 = scmp.lt.s32.totalorder %s285_s29, 115  ;;  %v3307_v11 = vld [vmem:[%s4689_s1 + $0x98] sm:$0xff]   ;;  %v3299_v12 = vld [vmem:[%s4689_s1 + $0x30] sm:$0xff]   ;;  %v3309_v13 = vld [vmem:[%s4689_s1 + $0xa0] sm:$0xff]  }
  0x11   : > { %3151 = vmatprep.subr.bf16.mxu1 %v4695_v3  ;;  %v3300_v14 = vld [vmem:[%s4689_s1 + $0x38] sm:$0xff]   ;;  %v3311_v16 = vld [vmem:[%s4689_s1 + $0xa8] sm:$0xff]   ;;  %v3302_v17 = vld [vmem:[%s4689_s1 + $0x40] sm:$0xff]  }
  0x12   : > { %s4806_s29 = smov (!%p286_p3, %s285_s29), 115  ;;  %v3313_v18 = vld [vmem:[%s4689_s1 + $0xb0] sm:$0xff]   ;;  %v3304_v19 = vld [vmem:[%s4689_s1 + $0x48] sm:$0xff]   ;;  %v3315_v20 = vld [vmem:[%s4689_s1 + $0xb8] sm:$0xff]  }
  0x13   : > { %1099 = vmatpush1.bf16.msra.mxu0 %v3294_v2  ;;  %s3281_s20 = smul.u32 12, %s4806_s29  ;;  %v3306_v22 = vld [vmem:[%s4689_s1 + $0x50] sm:$0xff]   ;;  %v3308_v23 = vld [vmem:[%s4689_s1 + $0x58] sm:$0xff]   ;;  %v3310_v25 = vld [vmem:[%s4689_s1 + $0x60] sm:$0xff]   ;;  %s2677_s9 = sshll.u32 %s4806_s29, 2 }
  0x14   : > { %1100 = vmatprep.subr.bf16.mxu0 %v3442_v1  ;;  %3152 = vmatpush3.bf16.msra.mxu1 %v3303_v7  ;;  %v3312_v26 = vld [vmem:[%s4689_s1 + $0x68] sm:$0xff]   ;;  %v3314_v28 = vld [vmem:[%s4689_s1 + $0x70] sm:$0xff]   ;;  %v3316_v29 = vld [vmem:[%s4689_s1 + $0x78] sm:$0xff]   ;;  %s3746_s12 = scalar_lea.vmem %s4692_s4, %s2677_s9  ;;  %s2676_s13 = sshll.u32 %s4806_s29, 3 }
  0x15   : > { %3153 = vmatprep.subr.bf16.mxu1 %v4695_v3  ;;  %s3542_s28 = scalar_lea.vmem %s4688_s0, %s3281_s20  ;;  %s3755_s16 = scalar_lea.vmem %s4691_s3, %s2676_s13 }
  0x16   : > { %v3319_v15 = vld [vmem:[%s3542_s28 + $0x4] ss:$12 sps:$4 sm:$0xff]   ;;  %v3320_v21 = vld [vmem:[%s3542_s28 + $0x8] ss:$12 sps:$4 sm:$0xff]   ;;  %v3323_v24 = vld [vmem:[%s3542_s28 + $0x20] ss:$12 sps:$4 sm:$0xff]   ;;  %s3960_s22 = scalar_lea.vmem %s4693_s5, %s2676_s13  ;;  %s4060_s25 = scalar_lea.vmem %s4694_s6, %s2677_s9 }
  0x17   : > { %1101 = vmatpush1.bf16.msra.mxu0 %v3295_v4  ;;  %1128 = vmatprep.mubr.bf16.mxu0 %v3319_v15  ;;  %v3327_v27 = vld [vmem:[%s3542_s28 + $0x38] ss:$12 sps:$4 sm:$0xff]   ;;  %v3317_v30 = vld [vmem:[%s3542_s28] ss:$12 sps:$4 sm:$0xff]   ;;  %v3331_v31 = vld [vmem:[%s3542_s28 + $0x50] ss:$12 sps:$4 sm:$0xff]  }
  0x18   : > { %1102 = vmatprep.subr.bf16.mxu0 %v3442_v1  ;;  %3154 = vmatpush3.bf16.msra.mxu1 %v3305_v9  ;;  %v3321_v32 = vld [vmem:[%s3542_s28 + $0x1c] ss:$12 sps:$4 sm:$0xff]   ;;  %v3324_v33 = vld [vmem:[%s3542_s28 + $0x18] ss:$12 sps:$4 sm:$0xff]   ;;  %v3325_v35 = vld [vmem:[%s3542_s28 + $0x34] ss:$12 sps:$4 sm:$0xff]  }
  0x19   : > { %3155 = vmatprep.subr.bf16.mxu1 %v4695_v3  ;;  %v3335_v34 = vld [vmem:[%s3542_s28 + $0x68] ss:$12 sps:$4 sm:$0xff]   ;;  %v3328_v36 = vld [vmem:[%s3542_s28 + $0x30] ss:$12 sps:$4 sm:$0xff]   ;;  %v3339_v37 = vld [vmem:[%s3542_s28 + $0x80] ss:$12 sps:$4 sm:$0xff]  }
  0x1a   : > { %v3329_v38 = vld [vmem:[%s3542_s28 + $0x4c] ss:$12 sps:$4 sm:$0xff]   ;;  %v3332_v39 = vld [vmem:[%s3542_s28 + $0x48] ss:$12 sps:$4 sm:$0xff]   ;;  %v3333_v41 = vld [vmem:[%s3542_s28 + $0x64] ss:$12 sps:$4 sm:$0xff]  }
  0x1b   : > { %1103 = vmatpush1.bf16.msra.mxu0 %v3296_v6  ;;  %v3343_v40 = vld [vmem:[%s3542_s28 + $0x98] ss:$12 sps:$4 sm:$0xff]   ;;  %v3336_v42 = vld [vmem:[%s3542_s28 + $0x60] ss:$12 sps:$4 sm:$0xff]   ;;  %v3347_v43 = vld [vmem:[%s3542_s28 + $0xb0] ss:$12 sps:$4 sm:$0xff]  }
  0x1c   : > { %1104 = vmatprep.subr.bf16.mxu0 %v3442_v1  ;;  %3156 = vmatpush3.bf16.msra.mxu1 %v3307_v11  ;;  %v3337_v44 = vld [vmem:[%s3542_s28 + $0x7c] ss:$12 sps:$4 sm:$0xff]   ;;  %v3340_v45 = vld [vmem:[%s3542_s28 + $0x78] ss:$12 sps:$4 sm:$0xff]   ;;  %v3341_v47 = vld [vmem:[%s3542_s28 + $0x94] ss:$12 sps:$4 sm:$0xff]  }
  0x1d   : > { %3157 = vmatprep.subr.bf16.mxu1 %v4695_v3  ;;  %v3351_v46 = vld [vmem:[%s3542_s28 + $0xc8] ss:$12 sps:$4 sm:$0xff]   ;;  %v3344_v48 = vld [vmem:[%s3542_s28 + $0x90] ss:$12 sps:$4 sm:$0xff]   ;;  %v3355_v49 = vld [vmem:[%s3542_s28 + $0xe0] ss:$12 sps:$4 sm:$0xff]  }
  0x1e   : > { %v3345_v50 = vld [vmem:[%s3542_s28 + $0xac] ss:$12 sps:$4 sm:$0xff]   ;;  %v3348_v51 = vld [vmem:[%s3542_s28 + $0xa8] ss:$12 sps:$4 sm:$0xff]   ;;  %v3349_v53 = vld [vmem:[%s3542_s28 + $0xc4] ss:$12 sps:$4 sm:$0xff]  }
  0x1f   : > { %1105 = vmatpush1.bf16.msra.mxu0 %v3297_v8  ;;  %v3359_v52 = vld [vmem:[%s3542_s28 + $0xf8] ss:$12 sps:$4 sm:$0xff]   ;;  %v3352_v54 = vld [vmem:[%s3542_s28 + $0xc0] ss:$12 sps:$4 sm:$0xff]   ;;  %v3363_v55 = vld [vmem:[%s3542_s28 + $0x110] ss:$12 sps:$4 sm:$0xff]  }
  0x20   : > { %1106 = vmatprep.subr.bf16.mxu0 %v3442_v1  ;;  %3158 = vmatpush3.bf16.msra.mxu1 %v3309_v13  ;;  %v3353_v56 = vld [vmem:[%s3542_s28 + $0xdc] ss:$12 sps:$4 sm:$0xff]   ;;  %v3356_v57 = vld [vmem:[%s3542_s28 + $0xd8] ss:$12 sps:$4 sm:$0xff]   ;;  %v3357_v59 = vld [vmem:[%s3542_s28 + $0xf4] ss:$12 sps:$4 sm:$0xff]  }
  0x21   : > { %3159 = vmatprep.subr.bf16.mxu1 %v4695_v3  ;;  %v3367_v58 = vld [vmem:[%s3542_s28 + $0x128] ss:$12 sps:$4 sm:$0xff]   ;;  %v3360_v60 = vld [vmem:[%s3542_s28 + $0xf0] ss:$12 sps:$4 sm:$0xff]   ;;  %v3371_v61 = vld [vmem:[%s3542_s28 + $0x140] ss:$12 sps:$4 sm:$0xff]  }
  0x22   : > { %v3361_v62 = vld [vmem:[%s3542_s28 + $0x10c] ss:$12 sps:$4 sm:$0xff]   ;;  %v3364_v63 = vld [vmem:[%s3542_s28 + $0x108] ss:$12 sps:$4 sm:$0xff]   ;;  %v3379_v4 = vld [vmem:[%s3542_s28 + $0x170] ss:$12 sps:$4 sm:$0xff]  }
  0x23   : > { %1107 = vmatpush1.bf16.msra.mxu0 %v3298_v10  ;;  %v3375_v0 = vld [vmem:[%s3542_s28 + $0x158] ss:$12 sps:$4 sm:$0xff]   ;;  %v3368_v2 = vld [vmem:[%s3542_s28 + $0x120] ss:$12 sps:$4 sm:$0xff]   ;;  %v3369_v5 = vld [vmem:[%s3542_s28 + $0x13c] ss:$12 sps:$4 sm:$0xff]  }
  0x24   : > { %1108 = vmatprep.subr.bf16.mxu0 %v3442_v1  ;;  %3160 = vmatpush3.bf16.msra.mxu1 %v3311_v16  ;;  %v3372_v6 = vld [vmem:[%s3542_s28 + $0x138] ss:$12 sps:$4 sm:$0xff]   ;;  %v3383_v7 = vld [vmem:[%s3542_s28 + $0x188] ss:$12 sps:$4 sm:$0xff]   ;;  %v3376_v9 = vld [vmem:[%s3542_s28 + $0x150] ss:$12 sps:$4 sm:$0xff]  }
  0x25   : > { %3161 = vmatprep.subr.bf16.mxu1 %v4695_v3  ;;  %v3373_v8 = vld [vmem:[%s3542_s28 + $0x154] ss:$12 sps:$4 sm:$0xff]   ;;  %v3377_v11 = vld [vmem:[%s3542_s28 + $0x16c] ss:$12 sps:$4 sm:$0xff]   ;;  %v3395_v16 = vld [vmem:[%s3542_s28 + $0x1d0] ss:$12 sps:$4 sm:$0xff]  }
  0x26   : > { %v3387_v10 = vld [vmem:[%s3542_s28 + $0x1a0] ss:$12 sps:$4 sm:$0xff]   ;;  %v3391_v13 = vld [vmem:[%s3542_s28 + $0x1b8] ss:$12 sps:$4 sm:$0xff]  }
  0x27   : > { %1109 = vmatpush1.bf16.msra.mxu0 %v3299_v12  ;;  %v3380_v12 = vld [vmem:[%s3542_s28 + $0x168] ss:$12 sps:$4 sm:$0xff]   ;;  %v3384_v15 = vld [vmem:[%s3542_s28 + $0x180] ss:$12 sps:$4 sm:$0xff]  }
  0x28   : > { %1110 = vmatprep.subr.bf16.mxu0 %v3442_v1  ;;  %3162 = vmatpush3.bf16.msra.mxu1 %v3313_v18  ;;  %v3388_v18 = vld [vmem:[%s3542_s28 + $0x198] ss:$12 sps:$4 sm:$0xff]  }
  0x29   : > { %3163 = vmatprep.subr.bf16.mxu1 %v4695_v3 }
  0x2b   : > { %1111 = vmatpush1.bf16.msra.mxu0 %v3300_v14  ;;  %v3381_v14 = vld [vmem:[%s3542_s28 + $0x184] ss:$12 sps:$4 sm:$0xff]  }
  0x2c   : > { %1112 = vmatprep.subr.bf16.mxu0 %v3442_v1  ;;  %3164 = vmatpush3.bf16.msra.mxu1 %v3315_v20  ;;  %v3389_v20 = vld [vmem:[%s3542_s28 + $0x1b4] ss:$12 sps:$4 sm:$0xff]  }
  0x2f   : > { %1113 = vmatpush1.bf16.msra.mxu0 %v3302_v17  ;;  %3166 = vmatmul.mubr.bf16.vlgmr.msra.gmra.mrb[0].mxu1 %v3320_v21  ;;  %v3385_v17 = vld [vmem:[%s3542_s28 + $0x19c] ss:$12 sps:$4 sm:$0xff]  }
  0x30   : > { %1114 = vmatprep.subr.bf16.mxu0 %v3442_v1  ;;  %3169 = vmatprep.mubr.msk.bf16.mxu1 %vm3444_vm0, %v4695_v3  ;;  %v3392_v21 = vld [vmem:[%s3542_s28 + $0x1b0] ss:$12 sps:$4 sm:$0xff]  }
  0x33   : > { %1115 = vmatpush1.bf16.msra.mxu0 %v3304_v19  ;;  %v3399_v19 = vld [vmem:[%s3542_s28 + $0x1e8] ss:$12 sps:$4 sm:$0xff]  }
  0x34   : > { %1116 = vmatprep.subr.bf16.mxu0 %v3442_v1 }
  0x37   : > { %1117 = vmatpush1.bf16.msra.mxu0 %v3306_v22  ;;  %3170 = vmatmul.mubr.bf16.gmra.mrb[4].mxu1 %v3323_v24  ;;  %v3403_v22 = vld [vmem:[%s3542_s28 + $0x200] ss:$12 sps:$4 sm:$0xff]   ;;  %v3396_v24 = vld [vmem:[%s3542_s28 + $0x1c8] ss:$12 sps:$4 sm:$0xff]  }
  0x38   : > { %1118 = vmatprep.subr.bf16.mxu0 %v3442_v1  ;;  %3173 = vmatprep.mubr.msk.bf16.mxu1 %vm3444_vm0, %v4695_v3 }
  0x3b   : > { %1119 = vmatpush1.bf16.msra.mxu0 %v3308_v23  ;;  %v3393_v23 = vld [vmem:[%s3542_s28 + $0x1cc] ss:$12 sps:$4 sm:$0xff]  }
  0x3c   : > { %1120 = vmatprep.subr.bf16.mxu0 %v3442_v1 }
  0x3f   : > { %1121 = vmatpush1.bf16.msra.mxu0 %v3310_v25  ;;  %3174 = vmatmul.mubr.bf16.gmra.mrb[8].mxu1 %v3327_v27  ;;  %v3407_v25 = vld [vmem:[%s3542_s28 + $0x218] ss:$12 sps:$4 sm:$0xff]   ;;  %v3400_v27 = vld [vmem:[%s3542_s28 + $0x1e0] ss:$12 sps:$4 sm:$0xff]  }
  0x40   : > { %1122 = vmatprep.subr.bf16.mxu0 %v3442_v1  ;;  %3177 = vmatprep.mubr.msk.bf16.mxu1 %vm3444_vm0, %v4695_v3 }
  0x43   : > { %1123 = vmatpush1.bf16.msra.mxu0 %v3312_v26  ;;  %v3397_v26 = vld [vmem:[%s3542_s28 + $0x1e4] ss:$12 sps:$4 sm:$0xff]  }
  0x44   : > { %1124 = vmatprep.subr.bf16.mxu0 %v3442_v1 }
  0x47   : > { %1125 = vmatpush1.bf16.msra.mxu0 %v3314_v28  ;;  %3178 = vmatmul.mubr.bf16.gmra.mrb[12].mxu1 %v3331_v31  ;;  %v3411_v28 = vld [vmem:[%s3542_s28 + $0x230] ss:$12 sps:$4 sm:$0xff]   ;;  %v3415_v31 = vld [vmem:[%s3542_s28 + $0x248] ss:$12 sps:$4 sm:$0xff]  }
  0x48   : > { %1126 = vmatprep.subr.bf16.mxu0 %v3442_v1  ;;  %3181 = vmatprep.mubr.msk.bf16.mxu1 %vm3444_vm0, %v4695_v3  ;;  %v3365_v1 = vld [vmem:[%s3542_s28 + $0x124] ss:$12 sps:$4 sm:$0xff]  }
  0x4b   : > { %1127 = vmatpush1.bf16.msra.mxu0 %v3316_v29  ;;  %v3401_v29 = vld [vmem:[%s3542_s28 + $0x1fc] ss:$12 sps:$4 sm:$0xff]  }
  0x4e   : > { %1129 = vmatmul.mubr.bf16.vlgmr.msra.gmra.mrb[0].mxu0 %v3317_v30  ;;  %v3404_v30 = vld [vmem:[%s3542_s28 + $0x1f8] ss:$12 sps:$4 sm:$0xff]  }
  0x4f   : > { %1136 = vmatprep.mubr.bf16.mxu0 %v3321_v32  ;;  %3182 = vmatmul.mubr.bf16.gmra.mrb[16].mxu1 %v3335_v34  ;;  %v3405_v32 = vld [vmem:[%s3542_s28 + $0x214] ss:$12 sps:$4 sm:$0xff]  }
  0x50   : > { %3185 = vmatprep.mubr.msk.bf16.mxu1 %vm3444_vm0, %v4695_v3  ;;  %v3419_v34 = vld [vmem:[%s3542_s28 + $0x260] ss:$12 sps:$4 sm:$0xff]  }
  0x56   : > { %1137 = vmatmul.mubr.bf16.gmra.mrb[4].mxu0 %v3324_v33  ;;  %v3408_v33 = vld [vmem:[%s3542_s28 + $0x210] ss:$12 sps:$4 sm:$0xff]  }
  0x57   : > { %1144 = vmatprep.mubr.bf16.mxu0 %v3325_v35  ;;  %3186 = vmatmul.mubr.bf16.gmra.mrb[20].mxu1 %v3339_v37  ;;  %v3409_v35 = vld [vmem:[%s3542_s28 + $0x22c] ss:$12 sps:$4 sm:$0xff]  }
  0x58   : > { %3189 = vmatprep.mubr.msk.bf16.mxu1 %vm3444_vm0, %v4695_v3  ;;  %v3423_v37 = vld [vmem:[%s3542_s28 + $0x278] ss:$12 sps:$4 sm:$0xff]  }
  0x5e   : > { %1145 = vmatmul.mubr.bf16.gmra.mrb[8].mxu0 %v3328_v36  ;;  %v3412_v36 = vld [vmem:[%s3542_s28 + $0x228] ss:$12 sps:$4 sm:$0xff]  }
  0x5f   : > { %1152 = vmatprep.mubr.bf16.mxu0 %v3329_v38  ;;  %3190 = vmatmul.mubr.bf16.gmra.mrb[24].mxu1 %v3343_v40  ;;  %v3413_v38 = vld [vmem:[%s3542_s28 + $0x244] ss:$12 sps:$4 sm:$0xff]   ;;  %v3416_v40 = vld [vmem:[%s3542_s28 + $0x240] ss:$12 sps:$4 sm:$0xff]  }
  0x60   : > { %3193 = vmatprep.mubr.msk.bf16.mxu1 %vm3444_vm0, %v4695_v3 }
  0x66   : > { %1153 = vmatmul.mubr.bf16.gmra.mrb[12].mxu0 %v3332_v39 }
  0x67   : > { %1160 = vmatprep.mubr.bf16.mxu0 %v3333_v41  ;;  %3194 = vmatmul.mubr.bf16.gmra.mrb[28].mxu1 %v3347_v43  ;;  %v3417_v43 = vld [vmem:[%s3542_s28 + $0x25c] ss:$12 sps:$4 sm:$0xff]  }
  0x68   : > { %3197 = vmatprep.mubr.msk.bf16.mxu1 %vm3444_vm0, %v4695_v3 }
  0x6e   : > { %1161 = vmatmul.mubr.bf16.gmra.mrb[16].mxu0 %v3336_v42  ;;  %v3427_v42 = vld [vmem:[%s3542_s28 + $0x290] ss:$12 sps:$4 sm:$0xff]  }
  0x6f   : > { %1168 = vmatprep.mubr.bf16.mxu0 %v3337_v44  ;;  %3198 = vmatmul.mubr.bf16.gmra.mrb[32].mxu1 %v3351_v46 }
  0x70   : > { %3201 = vmatprep.mubr.msk.bf16.mxu1 %vm3444_vm0, %v4695_v3 }
  0x76   : > { %1169 = vmatmul.mubr.bf16.gmra.mrb[20].mxu0 %v3340_v45 }
  0x77   : > { %1176 = vmatprep.mubr.bf16.mxu0 %v3341_v47  ;;  %3202 = vmatmul.mubr.bf16.gmra.mrb[36].mxu1 %v3355_v49  ;;  %v3420_v47 = vld [vmem:[%s3542_s28 + $0x258] ss:$12 sps:$4 sm:$0xff]   ;;  %v3431_v49 = vld [vmem:[%s3542_s28 + $0x2a8] ss:$12 sps:$4 sm:$0xff]  }
  0x78   : > { %3205 = vmatprep.mubr.msk.bf16.mxu1 %vm3444_vm0, %v4695_v3 }
  0x7e   : > { %1177 = vmatmul.mubr.bf16.gmra.mrb[24].mxu0 %v3344_v48 }
  0x7f   : > { %1184 = vmatprep.mubr.bf16.mxu0 %v3345_v50  ;;  %3206 = vmatmul.mubr.bf16.gmra.mrb[40].mxu1 %v3359_v52  ;;  %v3421_v50 = vld [vmem:[%s3542_s28 + $0x274] ss:$12 sps:$4 sm:$0xff]  }
  0x80   : > { %3209 = vmatprep.mubr.msk.bf16.mxu1 %vm3444_vm0, %v4695_v3 }
  0x86   : > { %1185 = vmatmul.mubr.bf16.gmra.mrb[28].mxu0 %v3348_v51 }
  0x87   : > { %1192 = vmatprep.mubr.bf16.mxu0 %v3349_v53  ;;  %3210 = vmatmul.mubr.bf16.gmra.mrb[44].mxu1 %v3363_v55  ;;  %v2969_v53 = vld [vmem:[%s3746_s12] sm:$0xff]   ;;  %v3424_v55 = vld [vmem:[%s3542_s28 + $0x270] ss:$12 sps:$4 sm:$0xff]  }
  0x88   : > { %3213 = vmatprep.mubr.msk.bf16.mxu1 %vm3444_vm0, %v4695_v3 }
  0x8e   : > { %1193 = vmatmul.mubr.bf16.gmra.mrb[32].mxu0 %v3352_v54 }
  0x8f   : > { %1200 = vmatprep.mubr.bf16.mxu0 %v3353_v56  ;;  %3214 = vmatmul.mubr.bf16.gmra.mrb[48].mxu1 %v3367_v58  ;;  %v2970_v56 = vunpack.c.l.bf16 %v2969_v53  ;;  %v1626_v58 = vld [vmem:[%s3755_s16] sm:$0xff] }
  0x90   : > { %3217 = vmatprep.mubr.msk.bf16.mxu1 %vm3444_vm0, %v4695_v3 }
  0x96   : > { %1201 = vmatmul.mubr.bf16.gmra.mrb[36].mxu0 %v3356_v57 }
  0x97   : > { %1208 = vmatprep.mubr.bf16.mxu0 %v3357_v59  ;;  %3218 = vmatmul.mubr.bf16.gmra.mrb[52].mxu1 %v3371_v61  ;;  %v3425_v59 = vld [vmem:[%s3542_s28 + $0x28c] ss:$12 sps:$4 sm:$0xff]   ;;  %v2971_v61 = vunpack.c.h.bf16 %v2969_v53  ;;  %v3883_v53 = vld [vmem:[%s3755_s16 + $0x100] sm:$0xff] }
  0x98   : > { %3221 = vmatprep.mubr.msk.bf16.mxu1 %vm3444_vm0, %v4695_v3  ;;  %4716 = vst [vmem:[#allocation6_spill] sm:$0xff] %v3883_v53  ;;  %v4038_v53 = vld [vmem:[%s3746_s12 + $0xb0] sm:$0xff]  }
  0x99   : > { %4751 = vst [vmem:[#allocation40_spill] sm:$0xff] %v4038_v53 }
  0x9e   : > { %1209 = vmatmul.mubr.bf16.gmra.mrb[40].mxu0 %v3360_v60 }
  0x9f   : > { %1216 = vmatprep.mubr.bf16.mxu0 %v3361_v62  ;;  %3222 = vmatmul.mubr.bf16.gmra.mrb[56].mxu1 %v3375_v0  ;;  %v1684_v0 = vmul.f32 0.2, %v1626_v58  ;;  %v3895_v58 = vld [vmem:[%s3755_s16 + $0x120] sm:$0xff] }
  0xa0   : > { %3225 = vmatprep.mubr.msk.bf16.mxu1 %vm3444_vm0, %v4695_v3  ;;  %4720 = vst [vmem:[#allocation10_spill] sm:$0xff] %v3895_v58  ;;  %v4026_v58 = vld [vmem:[%s3746_s12 + $0x90] sm:$0xff]  }
  0xa1   : > { %4747 = vst [vmem:[#allocation36_spill] sm:$0xff] %v4026_v58  ;;  %v4048_v58 = vld [vmem:[%s3746_s12 + $0xc0] sm:$0xff]  }
  0xa2   : > { %4754 = vst [vmem:[#allocation42_spill] sm:$0xff] %v4048_v58 }
  0xa6   : > { %1217 = vmatmul.mubr.bf16.gmra.mrb[44].mxu0 %v3364_v63  ;;  %v1627_v63 = vld [vmem:[%s3755_s16 + $0x8] sm:$0xff] }
  0xa7   : > { %1224 = vmatprep.mubr.bf16.mxu0 %v3365_v1  ;;  %3226 = vmatmul.mubr.bf16.gmra.mrb[60].mxu1 %v3379_v4  ;;  %v3766_v1 = vld [vmem:[%s3746_s12 + $0x8] sm:$0xff]   ;;  %v3771_v4 = vld [vmem:[%s4690_s2] ss:$0 sm:$0xff] }
  0xa8   : > { %3229 = vmatprep.mubr.msk.bf16.mxu1 %vm3444_vm0, %v4695_v3 }
  0xae   : > { %1225 = vmatmul.mubr.bf16.gmra.mrb[48].mxu0 %v3368_v2  ;;  %v1858_v2 = vsub.f32 1.0, %v2970_v56  ;;  %v3889_v56 = vld [vmem:[%s3755_s16 + $0x110] sm:$0xff] }
  0xaf   : > { %1232 = vmatprep.mubr.bf16.mxu0 %v3369_v5  ;;  %3230 = vmatmul.mubr.bf16.gmra.mrb[64].mxu1 %v3383_v7  ;;  %v3773_v5 = vmul.f32 0.2, %v1627_v63  ;;  %4718 = vst [vmem:[#allocation8_spill] sm:$0xff] %v3889_v56  ;;  %v3907_v63 = vld [vmem:[%s3755_s16 + $0x140] sm:$0xff] }
  0xb0   : > { %3233 = vmatprep.mubr.msk.bf16.mxu1 %vm3444_vm0, %v4695_v3  ;;  %4724 = vst [vmem:[#allocation14_spill] sm:$0xff] %v3907_v63  ;;  %v3947_v63 = vld [vmem:[%s3755_s16 + $0x1a0] sm:$0xff] }
  0xb1   : > { %4736 = vst [vmem:[#allocation26_spill] sm:$0xff] %v3947_v63  ;;  %v4011_v63 = vld [vmem:[%s3746_s12 + $0x68] sm:$0xff]   ;;  %v4032_v56 = vld [vmem:[%s3746_s12 + $0xa0] sm:$0xff]  }
  0xb2   : > { %4749 = vst [vmem:[#allocation38_spill] sm:$0xff] %v4032_v56 }
  0xb6   : > { %1233 = vmatmul.mubr.bf16.gmra.mrb[52].mxu0 %v3372_v6  ;;  %v3775_v6 = vsub.f32 1.0, %v2971_v61  ;;  %v3901_v61 = vld [vmem:[%s3755_s16 + $0x130] sm:$0xff] }
  0xb7   : > { %1240 = vmatprep.mubr.bf16.mxu0 %v3373_v8  ;;  %3234 = vmatmul.mubr.bf16.gmra.mrb[68].mxu1 %v3387_v10  ;;  %v3778_v8 = vld [vmem:[%s3542_s28 + $0x288] ss:$12 sps:$4 sm:$0xff]   ;;  %4722 = vst [vmem:[#allocation12_spill] sm:$0xff] %v3901_v61  ;;  %v4020_v61 = vld [vmem:[%s3746_s12 + $0x80] sm:$0xff]  }
  0xb8   : > { %3237 = vmatprep.mubr.msk.bf16.mxu1 %vm3444_vm0, %v4695_v3  ;;  %4745 = vst [vmem:[#allocation34_spill] sm:$0xff] %v4020_v61  ;;  %v4752_v61 = vunpack.c.h.bf16 %v3766_v1 }
  0xbe   : > { %1241 = vmatmul.mubr.bf16.gmra.mrb[56].mxu0 %v3376_v9  ;;  %v3931_v9 = vld [vmem:[%s3755_s16 + $0x180] sm:$0xff] }
  0xbf   : > { %1248 = vmatprep.mubr.bf16.mxu0 %v3377_v11  ;;  %3238 = vmatmul.mubr.bf16.gmra.mrb[72].mxu1 %v3391_v13  ;;  %4732 = vst [vmem:[#allocation22_spill] sm:$0xff] %v3931_v9 }
  0xc0   : > { %3241 = vmatprep.mubr.msk.bf16.mxu1 %vm3444_vm0, %v4695_v3 }
  0xc6   : > { %1249 = vmatmul.mubr.bf16.gmra.mrb[60].mxu0 %v3380_v12  ;;  %v3784_v12 = vmul.f32 %v1858_v2, %v1684_v0  ;;  %v3910_v0 = vld [vmem:[%s3755_s16 + $0x148] sm:$0xff]  ;;  %v3913_v2 = vld [vmem:[%s3755_s16 + $0x150] sm:$0xff] }
  0xc7   : > { %1256 = vmatprep.mubr.bf16.mxu0 %v3381_v14  ;;  %3242 = vmatmul.mubr.bf16.gmra.mrb[76].mxu1 %v3395_v16  ;;  %v3787_v14 = vld [vmem:[%s3755_s16 + $0x10] sm:$0xff]  ;;  %4725 = vst [vmem:[#allocation15_spill] sm:$0xff] %v3910_v0  ;;  %4726 = vst [vmem:[#allocation16_spill] sm:$0xff] %v3913_v2  ;;  %v3934_v0 = vld [vmem:[%s3755_s16 + $0x188] sm:$0xff] }
  0xc8   : > { %3245 = vmatprep.mubr.msk.bf16.mxu1 %vm3444_vm0, %v4695_v3  ;;  %4733 = vst [vmem:[#allocation23_spill] sm:$0xff] %v3934_v0  ;;  %v3937_v2 = vld [vmem:[%s3755_s16 + $0x190] sm:$0xff]  ;;  %v3950_v0 = vld [vmem:[%s3755_s16 + $0x1a8] sm:$0xff] }
  0xc9   : > { %4734 = vst [vmem:[#allocation24_spill] sm:$0xff] %v3937_v2  ;;  %4737 = vst [vmem:[#allocation27_spill] sm:$0xff] %v3950_v0  ;;  %v3953_v2 = vld [vmem:[%s3755_s16 + $0x1b0] sm:$0xff]  ;;  %v4008_v0 = vld [vmem:[%s3746_s12 + $0x60] sm:$0xff]  }
  0xca   : > { %4738 = vst [vmem:[#allocation28_spill] sm:$0xff] %v3953_v2 }
  0xce   : > { %1257 = vmatmul.mubr.bf16.gmra.mrb[64].mxu0 %v3384_v15  ;;  %v3790_v15 = vld [vmem:[%s3542_s28 + $0x2a4] ss:$12 sps:$4 sm:$0xff]  }
  0xcf   : > { %1264 = vmatprep.mubr.bf16.mxu0 %v3385_v17  ;;  %3246 = vmatmul.mubr.bf16.gmra.mrb[80].mxu1 %v3399_v19  ;;  %v3928_v19 = vld [vmem:[%s3755_s16 + $0x178] sm:$0xff] }
  0xd0   : > { %3249 = vmatprep.mubr.msk.bf16.mxu1 %vm3444_vm0, %v4695_v3  ;;  %4731 = vst [vmem:[#allocation21_spill] sm:$0xff] %v3928_v19 }
  0xd6   : > { %1265 = vmatmul.mubr.bf16.gmra.mrb[68].mxu0 %v3388_v18  ;;  %v3793_v18 = vld [vmem:[%s3755_s16 + $0x18] sm:$0xff] }
  0xd7   : > { %1272 = vmatprep.mubr.bf16.mxu0 %v3389_v20  ;;  %3250 = vmatmul.mubr.bf16.gmra.mrb[84].mxu1 %v3403_v22  ;;  %v3797_v20 = vld [vmem:[%s3755_s16 + $0x20] sm:$0xff]  ;;  %v3803_v22 = vld [vmem:[%s3755_s16 + $0x30] sm:$0xff] }
  0xd8   : > { %3253 = vmatprep.mubr.msk.bf16.mxu1 %vm3444_vm0, %v4695_v3 }
  0xde   : > { %1273 = vmatmul.mubr.bf16.gmra.mrb[72].mxu0 %v3392_v21  ;;  %v3800_v21 = vld [vmem:[%s3755_s16 + $0x28] sm:$0xff] }
  0xdf   : > { %1280 = vmatprep.mubr.bf16.mxu0 %v3393_v23  ;;  %3254 = vmatmul.mubr.bf16.gmra.mrb[88].mxu1 %v3407_v25  ;;  %v3811_v25 = vld [vmem:[%s3755_s16 + $0x40] sm:$0xff] }
  0xe0   : > { %3257 = vmatprep.mubr.msk.bf16.mxu1 %vm3444_vm0, %v4695_v3 }
  0xe6   : > { %1281 = vmatmul.mubr.bf16.gmra.mrb[76].mxu0 %v3396_v24  ;;  %v3808_v24 = vld [vmem:[%s3755_s16 + $0x38] sm:$0xff] }
  0xe7   : > { %1288 = vmatprep.mubr.bf16.mxu0 %v3397_v26  ;;  %3258 = vmatmul.mubr.bf16.gmra.mrb[92].mxu1 %v3411_v28  ;;  %v3814_v26 = vld [vmem:[%s3755_s16 + $0x48] sm:$0xff]  ;;  %v3820_v28 = vld [vmem:[%s3755_s16 + $0x58] sm:$0xff] }
  0xe8   : > { %3261 = vmatprep.mubr.msk.bf16.mxu1 %vm3444_vm0, %v4695_v3 }
  0xee   : > { %1289 = vmatmul.mubr.bf16.gmra.mrb[80].mxu0 %v3400_v27  ;;  %v3817_v27 = vld [vmem:[%s3755_s16 + $0x50] sm:$0xff] }
  0xef   : > { %1296 = vmatprep.mubr.bf16.mxu0 %v3401_v29  ;;  %3262 = vmatmul.mubr.bf16.gmra.mrb[96].mxu1 %v3415_v31  ;;  %v3823_v29 = vld [vmem:[%s3755_s16 + $0x60] sm:$0xff]  ;;  %v3829_v31 = vld [vmem:[%s3755_s16 + $0x70] sm:$0xff] }
  0xf0   : > { %3265 = vmatprep.mubr.msk.bf16.mxu1 %vm3444_vm0, %v4695_v3 }
  0xf6   : > { %1297 = vmatmul.mubr.bf16.gmra.mrb[84].mxu0 %v3404_v30  ;;  %v3826_v30 = vld [vmem:[%s3755_s16 + $0x68] sm:$0xff] }
  0xf7   : > { %1304 = vmatprep.mubr.bf16.mxu0 %v3405_v32  ;;  %3266 = vmatmul.mubr.bf16.gmra.mrb[100].mxu1 %v3419_v34  ;;  %v3832_v32 = vld [vmem:[%s3755_s16 + $0x78] sm:$0xff]  ;;  %v3838_v34 = vld [vmem:[%s3755_s16 + $0x88] sm:$0xff] }
  0xf8   : > { %3269 = vmatprep.mubr.msk.bf16.mxu1 %vm3444_vm0, %v4695_v3 }
  0xfe   : > { %1305 = vmatmul.mubr.bf16.gmra.mrb[88].mxu0 %v3408_v33  ;;  %v3835_v33 = vld [vmem:[%s3755_s16 + $0x80] sm:$0xff] }
  0xff   : > { %1312 = vmatprep.mubr.bf16.mxu0 %v3409_v35  ;;  %3270 = vmatmul.mubr.bf16.gmra.mrb[104].mxu1 %v3423_v37  ;;  %v3841_v35 = vld [vmem:[%s3755_s16 + $0x90] sm:$0xff]  ;;  %v3847_v37 = vld [vmem:[%s3755_s16 + $0xa0] sm:$0xff] }
 0x100   : > { %3273 = vmatprep.mubr.msk.bf16.mxu1 %vm3444_vm0, %v4695_v3 }
 0x102   : > { %v3724_v39 = vpop.f32.mrb[0].mxu1 }
 0x103   : > { %v3167_v41 = vpop.f32.mrb[1].mxu1 }
 0x104   : > { %v3729_v44 = vpop.f32.mrb[2].mxu1  ;;  %v3856_v41 = vld [vmem:[%s3755_s16 + $0xb8] sm:$0xff] }
 0x105   : > { %v3168_v45 = vpop.f32.mrb[3].mxu1 }
 0x106   : > { %1313 = vmatmul.mubr.bf16.gmra.mrb[92].mxu0 %v3412_v36  ;;  %v3844_v36 = vld [vmem:[%s3755_s16 + $0x98] sm:$0xff]  ;;  %v3865_v45 = vld [vmem:[%s3755_s16 + $0xd0] sm:$0xff] }
 0x107   : > { %1320 = vmatprep.mubr.bf16.mxu0 %v3413_v38  ;;  %3274 = vmatmul.mubr.bf16.gmra.mrb[108].mxu1 %v3427_v42  ;;  %v3850_v38 = vld [vmem:[%s3755_s16 + $0xa8] sm:$0xff]  ;;  %v3859_v42 = vld [vmem:[%s3755_s16 + $0xc0] sm:$0xff] }
 0x108   : > { %3277 = vmatprep.mubr.msk.bf16.mxu1 %vm3444_vm0, %v4695_v3  ;;  %v3925_v3 = vld [vmem:[%s3755_s16 + $0x170] sm:$0xff] }
 0x109   : > { %4730 = vst [vmem:[#allocation20_spill] sm:$0xff] %v3925_v3  ;;  %v1917_v3 = vmul.f32 %v3775_v6, %v3773_v5  ;;  %v4739_v5 = vunpack.c.l.bf16 %v3766_v1  ;;  %v4063_v1 = vld [vmem:[%s3746_s12 + $0xd0] sm:$0xff]  }
 0x10a   : > { %v3734_v46 = vpop.f32.mrb[4].mxu1  ;;  %4756 = vst [vmem:[#allocation44_spill] sm:$0xff] %v4063_v1 }
 0x10b   : > { %v3171_v48 = vpop.f32.mrb[5].mxu1  ;;  %v1860_v6 = vsub.f32 1.0, %v4739_v5  ;;  %v3981_v5 = vld [vmem:[%s3746_s12 + $0x18] sm:$0xff]  }
 0x10c   : > { %v3739_v51 = vpop.f32.mrb[6].mxu1  ;;  %v3871_v48 = vld [vmem:[%s3755_s16 + $0xe0] sm:$0xff] }
 0x10d   : > { %v3172_v52 = vpop.f32.mrb[7].mxu1  ;;  %4712 = vst [vmem:[#allocation2_spill] sm:$0xff] %v3871_v48 }
 0x10e   : > { %1321 = vmatmul.mubr.bf16.gmra.mrb[96].mxu0 %v3416_v40  ;;  %v3853_v40 = vld [vmem:[%s3755_s16 + $0xb0] sm:$0xff]  ;;  %v3880_v52 = vld [vmem:[%s3755_s16 + $0xf8] sm:$0xff] }
 0x10f   : > { %1328 = vmatprep.mubr.bf16.mxu0 %v3417_v43  ;;  %3278 = vmatmul.mubr.bf16.gmra.mrb[112].mxu1 %v3431_v49  ;;  %v3862_v43 = vld [vmem:[%s3755_s16 + $0xc8] sm:$0xff]  ;;  %4715 = vst [vmem:[#allocation5_spill] sm:$0xff] %v3880_v52  ;;  %v1687_v52 = vmul.f32 0.2, %v3793_v18  ;;  %v4069_v18 = vld [vmem:[%s3746_s12 + $0xe0] sm:$0xff]  }
 0x110   : > { %v3874_v49 = vld [vmem:[%s3755_s16 + $0xe8] sm:$0xff]  ;;  %4758 = vst [vmem:[#allocation46_spill] sm:$0xff] %v4069_v18 }
 0x111   : > { %4713 = vst [vmem:[#allocation3_spill] sm:$0xff] %v3874_v49 }
 0x112   : > { %v3757_v54 = vpop.f32.mrb[8].mxu1 }
 0x113   : > { %v3175_v57 = vpop.f32.mrb[9].mxu1 }
 0x114   : > { %v3762_v60 = vpop.f32.mrb[10].mxu1  ;;  %v3892_v57 = vld [vmem:[%s3755_s16 + $0x118] sm:$0xff] }
 0x115   : > { %v3176_v62 = vpop.f32.mrb[11].mxu1  ;;  %4719 = vst [vmem:[#allocation9_spill] sm:$0xff] %v3892_v57  ;;  %v4029_v57 = vld [vmem:[%s3746_s12 + $0x98] sm:$0xff]  }
 0x116   : > { %1329 = vmatmul.mubr.bf16.gmra.mrb[100].mxu0 %v3420_v47  ;;  %v3868_v47 = vld [vmem:[%s3755_s16 + $0xd8] sm:$0xff]  ;;  %4748 = vst [vmem:[#allocation37_spill] sm:$0xff] %v4029_v57  ;;  %v4051_v57 = vld [vmem:[%s3746_s12 + $0xc8] sm:$0xff]  }
 0x117   : > { %1336 = vmatprep.mubr.bf16.mxu0 %v3421_v50  ;;  %v3877_v50 = vld [vmem:[%s3755_s16 + $0xf0] sm:$0xff]  ;;  %v3904_v62 = vld [vmem:[%s3755_s16 + $0x138] sm:$0xff]  ;;  %4755 = vst [vmem:[#allocation43_spill] sm:$0xff] %v4051_v57 }
 0x118   : > { %4714 = vst [vmem:[#allocation4_spill] sm:$0xff] %v3877_v50  ;;  %4723 = vst [vmem:[#allocation13_spill] sm:$0xff] %v3904_v62  ;;  %v4017_v62 = vld [vmem:[%s3746_s12 + $0x78] sm:$0xff]   ;;  %v1861_v50 = vsub.f32 1.0, %v4752_v61  ;;  %v4759_v61 = vmov 0.0  }
 0x119   : > { %4744 = vst [vmem:[#allocation33_spill] sm:$0xff] %v4017_v62 }
 0x11a   : > { %v3781_v10 = vpop.f32.mrb[12].mxu1  ;;  %v1919_v49 = vmul.f32 %v1861_v50, %v1687_v52  ;;  %v1688_v50 = vmul.f32 0.2, %v3797_v20 }
 0x11b   : > { %v3179_v16 = vpop.f32.mrb[13].mxu1 }
 0x11c   : > { %v3805_v23 = vpop.f32.mrb[14].mxu1  ;;  %v3922_v16 = vld [vmem:[%s3755_s16 + $0x168] sm:$0xff] }
 0x11d   : > { %4729 = vst [vmem:[#allocation19_spill] sm:$0xff] %v3922_v16  ;;  %v3180_v9 = vpop.f32.mrb[15].mxu1 }
 0x11e   : > { %1337 = vmatmul.mubr.bf16.gmra.mrb[104].mxu0 %v3424_v55  ;;  %v3886_v55 = vld [vmem:[%s3755_s16 + $0x108] sm:$0xff]  ;;  %v3966_v9 = vld [vmem:[%s3755_s16 + $0x1b8] sm:$0xff] }
 0x11f   : > { %1344 = vmatprep.mubr.bf16.mxu0 %v3425_v59  ;;  %4717 = vst [vmem:[#allocation7_spill] sm:$0xff] %v3886_v55  ;;  %v3898_v59 = vld [vmem:[%s3755_s16 + $0x128] sm:$0xff]  ;;  %4740 = vst [vmem:[#allocation29_spill] sm:$0xff] %v3966_v9  ;;  %v4005_v9 = vld [vmem:[%s3746_s12 + $0x58] sm:$0xff]  }
 0x120   : > { %4721 = vst [vmem:[#allocation11_spill] sm:$0xff] %v3898_v59  ;;  %v4023_v59 = vld [vmem:[%s3746_s12 + $0x88] sm:$0xff]  }
 0x121   : > { %v1130_v7 = vpop.f32.mrb[0].mxu0  ;;  %4746 = vst [vmem:[#allocation35_spill] sm:$0xff] %v4023_v59  ;;  %v4035_v55 = vld [vmem:[%s3746_s12 + $0xa8] sm:$0xff]   ;;  %v4045_v59 = vld [vmem:[%s3746_s12 + $0xb8] sm:$0xff]  }
 0x122   : > { %v1131_v11 = vadd.f32 %v3771_v4, %v1130_v7  ;;  %v1132_v13 = vpop.f32.mrb[1].mxu0  ;;  %v3916_v7 = vld [vmem:[%s3755_s16 + $0x158] sm:$0xff]  ;;  %4750 = vst [vmem:[#allocation39_spill] sm:$0xff] %v4035_v55  ;;  %4753 = vst [vmem:[#allocation41_spill] sm:$0xff] %v4045_v59  ;;  %v3432_v55 = vld [vmem:[%s3542_s28 + $0x2a0] ss:$12 sps:$4 sm:$0xff]  }
 0x123   : > { %v1133_v17 = vpop.f32.mrb[2].mxu0  ;;  %4727 = vst [vmem:[#allocation17_spill] sm:$0xff] %v3916_v7  ;;  %v3919_v13 = vld [vmem:[%s3755_s16 + $0x160] sm:$0xff]  ;;  %v3940_v7 = vld [vmem:[%s3755_s16 + $0x198] sm:$0xff] }
 0x124   : > { %4728 = vst [vmem:[#allocation18_spill] sm:$0xff] %v3919_v13  ;;  %4735 = vst [vmem:[#allocation25_spill] sm:$0xff] %v3940_v7  ;;  %v1396_v13 = vadd.f32 %v3724_v39, %v1131_v11  ;;  %v1134_v16 = vadd.f32 %v3771_v4, %v1133_v17  ;;  %v1135_v19 = vpop.f32.mrb[3].mxu0  ;;  %v1686_v39 = vmul.f32 0.2, %v3787_v14  ;;  %v3969_v11 = vld [vmem:[%s3755_s16 + $0x1c0] sm:$0xff] }
 0x125   : > { %4741 = vst [vmem:[#allocation30_spill] sm:$0xff] %v3969_v11  ;;  %v3972_v17 = vld [vmem:[%s3755_s16 + $0x1c8] sm:$0xff]  ;;  %v3978_v14 = vld [vmem:[%s3746_s12 + $0x10] sm:$0xff]   ;;  %v3984_v11 = vld [vmem:[%s3746_s12 + $0x20] sm:$0xff]  }
 0x126   : > { %4742 = vst [vmem:[#allocation31_spill] sm:$0xff] %v3972_v17  ;;  %v1974_v19 = vadd.f32 %v3784_v12, %v1396_v13  ;;  %v1399_v2 = vadd.f32 %v3729_v44, %v1134_v16  ;;  %1345 = vmatmul.mubr.bf16.gmra.mrb[108].mxu0 %v3778_v8  ;;  %v3987_v17 = vld [vmem:[%s3746_s12 + $0x28] sm:$0xff]   ;;  %v3990_v12 = vld [vmem:[%s3746_s12 + $0x30] sm:$0xff]   ;;  %v3993_v44 = vld [vmem:[%s3746_s12 + $0x38] sm:$0xff]   ;;  %v2978_v1 = vunpack.c.l.bf16 %v3978_v14 }
 0x127   : > { %v3996_v13 = vld [vmem:[%s3746_s12 + $0x40] sm:$0xff]   ;;  %v3999_v8 = vld [vmem:[%s3746_s12 + $0x48] sm:$0xff]   ;;  %v4002_v16 = vld [vmem:[%s3746_s12 + $0x50] sm:$0xff]   ;;  %1352 = vmatprep.mubr.bf16.mxu0 %v3790_v15 }
 0x128   : > { %v4014_v7 = vld [vmem:[%s3746_s12 + $0x70] sm:$0xff]   ;;  %vm2032_vm2 = vcmp.gt.f32.partialorder %v1974_v19, 0.5  ;;  %v1975_v56 = vadd.f32 %v1917_v3, %v1399_v2  ;;  %2091 = vst.msk [vmem:[%s3960_s22] sm:$0xff] %vm2090_vm1, %v1974_v19  ;;  %v4066_v15 = vld [vmem:[%s3746_s12 + $0xd8] sm:$0xff]   ;;  %v1918_v3 = vmul.f32 %v1860_v6, %v1686_v39  ;;  %v4072_v2 = vpop.f32.mrb[16].mxu1  ;;  %v2979_v6 = vunpack.c.h.bf16 %v3978_v14 }
 0x129   : > { %4743 = vst [vmem:[#allocation32_spill] sm:$0xff] %v4014_v7  ;;  %4757 = vst [vmem:[#allocation45_spill] sm:$0xff] %v4066_v15  ;;  %v2792_v57 = vsel %vm2032_vm2, 1.0, %v4759_v61  ;;  %v1138_v58 = vpop.f32.mrb[4].mxu0  ;;  %v3183_v62 = vpop.f32.mrb[17].mxu1  ;;  %v1862_v52 = vsub.f32 1.0, %v2978_v1 }
 0x12a   : > { %v2910_v19 = vpack.c.bf16 %v2792_v57, %v2792_v57  ;;  %vm2033_vm4 = vcmp.gt.f32.partialorder %v1975_v56, 0.5  ;;  %v1139_v59 = vadd.f32 %v3771_v4, %v1138_v58  ;;  %v1140_v53 = vpop.f32.mrb[5].mxu0  ;;  %2092 = vst.msk [vmem:[%s3960_s22 + $0x8] sm:$0xff] %vm2090_vm1, %v1975_v56  ;;  %v4080_v48 = vpop.f32.mrb[18].mxu1 }
 0x12b   : > { %v2793_v18 = vsel %vm2033_vm4, 1.0, %v4759_v61  ;;  %v1141_v15 = vpop.f32.mrb[6].mxu0  ;;  %v3184_v62 = vpop.f32.mrb[19].mxu1 }
 0x12c   : > { %2498 = vst.msk [vmem:[%s4060_s25] sm:$0xf] %vm2497_vm3, %v2910_v19  ;;  %v2911_v57 = vpack.c.bf16 %v2793_v18, %v2793_v18  ;;  %v1404_v58 = vadd.f32 %v3734_v46, %v1139_v59  ;;  %v1142_v53 = vadd.f32 %v3771_v4, %v1141_v15  ;;  %v1143_v39 = vpop.f32.mrb[7].mxu0  ;;  %v1689_v46 = vmul.f32 0.2, %v3800_v21  ;;  %v4096_v19 = vpop.f32.mrb[20].mxu1 }
 0x12d   : > { %v1863_v59 = vsub.f32 1.0, %v2979_v6 }
 0x12e   : > { %2499 = vst.msk [vmem:[%s4060_s25 + $0x4] sm:$0xf] %vm2497_vm3, %v2911_v57  ;;  %v1976_v56 = vadd.f32 %v1918_v3, %v1404_v58  ;;  %v1407_v7 = vadd.f32 %v3739_v51, %v1142_v53  ;;  %1353 = vmatmul.mubr.bf16.gmra.mrb[112].mxu0 %v3432_v55  ;;  %v2982_v3 = vunpack.c.l.bf16 %v3981_v5  ;;  %v1920_v55 = vmul.f32 %v1862_v52, %v1688_v50 }
 0x12f   : > { %v2983_v57 = vunpack.c.h.bf16 %v3981_v5  ;;  %v1921_v62 = vmul.f32 %v1863_v59, %v1689_v46  ;;  %v1690_v52 = vmul.f32 0.2, %v3803_v22 }
 0x130   : > { %vm2034_vm5 = vcmp.gt.f32.partialorder %v1976_v56, 0.5  ;;  %v1977_v18 = vadd.f32 %v1919_v49, %v1407_v7  ;;  %2093 = vst.msk [vmem:[%s3960_s22 + $0x10] sm:$0xff] %vm2090_vm1, %v1976_v56  ;;  %v3187_v49 = vpop.f32.mrb[21].mxu1 }
 0x131   : > { %v2794_v14 = vsel %vm2034_vm5, 1.0, %v4759_v61  ;;  %v1146_v15 = vpop.f32.mrb[8].mxu0  ;;  %v4103_v58 = vpop.f32.mrb[22].mxu1 }
 0x132   : > { %v2912_v51 = vpack.c.bf16 %v2794_v14, %v2794_v14  ;;  %vm2035_vm6 = vcmp.gt.f32.partialorder %v1977_v18, 0.5  ;;  %v1147_v20 = vadd.f32 %v3771_v4, %v1146_v15  ;;  %v1148_v1 = vpop.f32.mrb[9].mxu0  ;;  %2094 = vst.msk [vmem:[%s3960_s22 + $0x18] sm:$0xff] %vm2090_vm1, %v1977_v18  ;;  %v3188_v50 = vpop.f32.mrb[23].mxu1  ;;  %v1864_v18 = vsub.f32 1.0, %v2982_v3 }
 0x133   : > { %v2795_v21 = vsel %vm2035_vm6, 1.0, %v4759_v61  ;;  %v1149_v7 = vpop.f32.mrb[10].mxu0  ;;  %v1691_v15 = vmul.f32 0.2, %v3808_v24  ;;  %v4117_v22 = vpop.f32.mrb[24].mxu1  ;;  %v2986_v24 = vunpack.c.l.bf16 %v3984_v11 }
 0x134   : > { %2500 = vst.msk [vmem:[%s4060_s25 + $0x8] sm:$0xf] %vm2497_vm3, %v2912_v51  ;;  %v2913_v53 = vpack.c.bf16 %v2795_v21, %v2795_v21  ;;  %v1412_v39 = vadd.f32 %v3757_v54, %v1147_v20  ;;  %v1150_v6 = vadd.f32 %v3771_v4, %v1149_v7  ;;  %v1151_v56 = vpop.f32.mrb[11].mxu0  ;;  %v1865_v51 = vsub.f32 1.0, %v2983_v57 }
 0x135   : > { %v1922_v59 = vmul.f32 %v1864_v18, %v1690_v52  ;;  %v2987_v56 = vunpack.c.h.bf16 %v3984_v11 }
 0x136   : > { %2501 = vst.msk [vmem:[%s4060_s25 + $0xc] sm:$0xf] %vm2497_vm3, %v2913_v53  ;;  %v1978_v14 = vadd.f32 %v1920_v55, %v1412_v39  ;;  %v1415_v5 = vadd.f32 %v3762_v60, %v1150_v6  ;;  %v3191_v55 = vpop.f32.mrb[25].mxu1  ;;  %v1923_v7 = vmul.f32 %v1865_v51, %v1691_v15  ;;  %v1693_v51 = vmul.f32 0.2, %v3814_v26 }
 0x137   : > { %v4124_v57 = vpop.f32.mrb[26].mxu1 }
 0x138   : > { %vm2036_vm7 = vcmp.gt.f32.partialorder %v1978_v14, 0.5  ;;  %v1979_v1 = vadd.f32 %v1921_v62, %v1415_v5  ;;  %2095 = vst.msk [vmem:[%s3960_s22 + $0x20] sm:$0xff] %vm2090_vm1, %v1978_v14  ;;  %v3192_v50 = vpop.f32.mrb[27].mxu1  ;;  %v1692_v14 = vmul.f32 0.2, %v3811_v25  ;;  %v1866_v5 = vsub.f32 1.0, %v2986_v24 }
 0x139   : > { %v2796_v54 = vsel %vm2036_vm7, 1.0, %v4759_v61  ;;  %v1154_v46 = vpop.f32.mrb[12].mxu0  ;;  %v2991_v24 = vunpack.c.h.bf16 %v3987_v17 }
 0x13a   : > { %v2914_v3 = vpack.c.bf16 %v2796_v54, %v2796_v54  ;;  %vm2037_vm8 = vcmp.gt.f32.partialorder %v1979_v1, 0.5  ;;  %v1155_v20 = vadd.f32 %v3771_v4, %v1154_v46  ;;  %v1156_v60 = vpop.f32.mrb[13].mxu0  ;;  %2096 = vst.msk [vmem:[%s3960_s22 + $0x28] sm:$0xff] %vm2090_vm1, %v1979_v1  ;;  %v2990_v54 = vunpack.c.l.bf16 %v3987_v17  ;;  %v4140_v46 = vpop.f32.mrb[28].mxu1 }
 0x13b   : > { %v2797_v49 = vsel %vm2037_vm8, 1.0, %v4759_v61  ;;  %v1157_v21 = vpop.f32.mrb[14].mxu0 }
 0x13c   : > { %2502 = vst.msk [vmem:[%s4060_s25 + $0x10] sm:$0xf] %vm2497_vm3, %v2914_v3  ;;  %v2915_v53 = vpack.c.bf16 %v2797_v49, %v2797_v49  ;;  %v1420_v39 = vadd.f32 %v3781_v10, %v1155_v20  ;;  %v1158_v6 = vadd.f32 %v3771_v4, %v1157_v21  ;;  %v1159_v62 = vpop.f32.mrb[15].mxu0  ;;  %v1867_v10 = vsub.f32 1.0, %v2987_v56  ;;  %v3195_v20 = vpop.f32.mrb[29].mxu1 }
 0x13d   : > { %v4147_v55 = vpop.f32.mrb[30].mxu1  ;;  %v1694_v62 = vmul.f32 0.2, %v3817_v27  ;;  %v1868_v56 = vsub.f32 1.0, %v2990_v54 }
 0x13e   : > { %2503 = vst.msk [vmem:[%s4060_s25 + $0x14] sm:$0xf] %vm2497_vm3, %v2915_v53  ;;  %v1980_v52 = vadd.f32 %v1922_v59, %v1420_v39  ;;  %v1423_v18 = vadd.f32 %v3805_v23, %v1158_v6  ;;  %v1924_v59 = vmul.f32 %v1866_v5, %v1692_v14  ;;  %v1925_v53 = vmul.f32 %v1867_v10, %v1693_v51  ;;  %v3196_v6 = vpop.f32.mrb[31].mxu1 }
 0x13f   : > { %v1697_v6 = vmul.f32 0.2, %v3826_v30 }
 0x140   : > { %vm2038_vm9 = vcmp.gt.f32.partialorder %v1980_v52, 0.5  ;;  %v1981_v15 = vadd.f32 %v1923_v7, %v1423_v18  ;;  %2097 = vst.msk [vmem:[%s3960_s22 + $0x30] sm:$0xff] %vm2090_vm1, %v1980_v52  ;;  %v1695_v52 = vmul.f32 0.2, %v3820_v28  ;;  %v1869_v18 = vsub.f32 1.0, %v2991_v24 }
 0x141   : > { %v2798_v11 = vsel %vm2038_vm9, 1.0, %v4759_v61  ;;  %v1162_v1 = vpop.f32.mrb[16].mxu0  ;;  %v2994_v28 = vunpack.c.l.bf16 %v3990_v12 }
 0x142   : > { %v2916_v23 = vpack.c.bf16 %v2798_v11, %v2798_v11  ;;  %vm2039_vm10 = vcmp.gt.f32.partialorder %v1981_v15, 0.5  ;;  %v1163_v25 = vadd.f32 %v3771_v4, %v1162_v1  ;;  %v1164_v3 = vpop.f32.mrb[17].mxu0  ;;  %2098 = vst.msk [vmem:[%s3960_s22 + $0x38] sm:$0xff] %vm2090_vm1, %v1981_v15  ;;  %v1926_v15 = vmul.f32 %v1868_v56, %v1694_v62  ;;  %v4161_v27 = vpop.f32.mrb[32].mxu1 }
 0x143   : > { %v2799_v26 = vsel %vm2039_vm10, 1.0, %v4759_v61  ;;  %v1165_v60 = vpop.f32.mrb[18].mxu0  ;;  %v3199_v11 = vpop.f32.mrb[33].mxu1  ;;  %v2998_v56 = vunpack.c.l.bf16 %v3993_v44 }
 0x144   : > { %2504 = vst.msk [vmem:[%s4060_s25 + $0x18] sm:$0xf] %vm2497_vm3, %v2916_v23  ;;  %v2917_v49 = vpack.c.bf16 %v2799_v26, %v2799_v26  ;;  %v1428_v21 = vadd.f32 %v4072_v2, %v1163_v25  ;;  %v1166_v7 = vadd.f32 %v3771_v4, %v1165_v60  ;;  %v1167_v39 = vpop.f32.mrb[19].mxu0  ;;  %v1927_v23 = vmul.f32 %v1869_v18, %v1695_v52  ;;  %v4168_v25 = vpop.f32.mrb[34].mxu1 }
 0x145   : > { %v2995_v60 = vunpack.c.h.bf16 %v3990_v12  ;;  %v3200_v24 = vpop.f32.mrb[35].mxu1 }
 0x146   : > { %2505 = vst.msk [vmem:[%s4060_s25 + $0x1c] sm:$0xf] %vm2497_vm3, %v2917_v49  ;;  %v1982_v50 = vadd.f32 %v1924_v59, %v1428_v21  ;;  %v1431_v17 = vadd.f32 %v4080_v48, %v1166_v7  ;;  %v1696_v7 = vmul.f32 0.2, %v3823_v29 }
 0x148   : > { %vm2040_vm11 = vcmp.gt.f32.partialorder %v1982_v50, 0.5  ;;  %v1983_v14 = vadd.f32 %v1925_v53, %v1431_v17  ;;  %2099 = vst.msk [vmem:[%s3960_s22 + $0x40] sm:$0xff] %vm2090_vm1, %v1982_v50  ;;  %v1870_v53 = vsub.f32 1.0, %v2994_v28 }
 0x149   : > { %v2800_v2 = vsel %vm2040_vm11, 1.0, %v4759_v61  ;;  %v1170_v5 = vpop.f32.mrb[20].mxu0 }
 0x14a   : > { %v2918_v51 = vpack.c.bf16 %v2800_v2, %v2800_v2  ;;  %vm2041_vm12 = vcmp.gt.f32.partialorder %v1983_v14, 0.5  ;;  %v1171_v10 = vadd.f32 %v3771_v4, %v1170_v5  ;;  %v1172_v48 = vpop.f32.mrb[21].mxu0  ;;  %2100 = vst.msk [vmem:[%s3960_s22 + $0x48] sm:$0xff] %vm2090_vm1, %v1983_v14  ;;  %v4184_v50 = vpop.f32.mrb[36].mxu1  ;;  %v1928_v17 = vmul.f32 %v1870_v53, %v1696_v7 }
 0x14b   : > { %v2801_v1 = vsel %vm2041_vm12, 1.0, %v4759_v61  ;;  %v1173_v54 = vpop.f32.mrb[22].mxu0  ;;  %v3203_v18 = vpop.f32.mrb[37].mxu1  ;;  %v2999_v2 = vunpack.c.h.bf16 %v3993_v44 }
 0x14c   : > { %2506 = vst.msk [vmem:[%s4060_s25 + $0x20] sm:$0xf] %vm2497_vm3, %v2918_v51  ;;  %v2919_v59 = vpack.c.bf16 %v2801_v1, %v2801_v1  ;;  %v1436_v3 = vadd.f32 %v4096_v19, %v1171_v10  ;;  %v1174_v20 = vadd.f32 %v3771_v4, %v1173_v54  ;;  %v1175_v26 = vpop.f32.mrb[23].mxu0  ;;  %v1871_v19 = vsub.f32 1.0, %v2995_v60  ;;  %v4191_v5 = vpop.f32.mrb[38].mxu1 }
 0x14d   : > { %v3204_v11 = vpop.f32.mrb[39].mxu1  ;;  %v1698_v1 = vmul.f32 0.2, %v3829_v31  ;;  %v1872_v54 = vsub.f32 1.0, %v2998_v56  ;;  %v1700_v18 = vmul.f32 0.2, %v3835_v33 }
 0x14e   : > { %2507 = vst.msk [vmem:[%s4060_s25 + $0x24] sm:$0xf] %vm2497_vm3, %v2919_v59  ;;  %v1984_v49 = vadd.f32 %v1926_v15, %v1436_v3  ;;  %v1439_v21 = vadd.f32 %v4103_v58, %v1174_v20  ;;  %v1929_v48 = vmul.f32 %v1871_v19, %v1697_v6  ;;  %v1699_v59 = vmul.f32 0.2, %v3832_v32 }
 0x14f   : > { %v1873_v3 = vsub.f32 1.0, %v2999_v2  ;;  %v1930_v60 = vmul.f32 %v1872_v54, %v1698_v1  ;;  %v3002_v32 = vunpack.c.l.bf16 %v3996_v13  ;;  %v1701_v2 = vmul.f32 0.2, %v3838_v34 }
 0x150   : > { %vm2042_vm13 = vcmp.gt.f32.partialorder %v1984_v49, 0.5  ;;  %v1985_v39 = vadd.f32 %v1927_v23, %v1439_v21  ;;  %2101 = vst.msk [vmem:[%s3960_s22 + $0x50] sm:$0xff] %vm2090_vm1, %v1984_v49  ;;  %v3007_v54 = vunpack.c.h.bf16 %v3999_v8 }
 0x151   : > { %v2802_v12 = vsel %vm2042_vm13, 1.0, %v4759_v61  ;;  %v1178_v62 = vpop.f32.mrb[24].mxu0 }
 0x152   : > { %v2920_v58 = vpack.c.bf16 %v2802_v12, %v2802_v12  ;;  %vm2043_vm14 = vcmp.gt.f32.partialorder %v1985_v39, 0.5  ;;  %v1179_v29 = vadd.f32 %v3771_v4, %v1178_v62  ;;  %v1180_v52 = vpop.f32.mrb[25].mxu0  ;;  %2102 = vst.msk [vmem:[%s3960_s22 + $0x58] sm:$0xff] %vm2090_vm1, %v1985_v39  ;;  %v4205_v31 = vpop.f32.mrb[40].mxu1  ;;  %v1931_v39 = vmul.f32 %v1873_v3, %v1699_v59 }
 0x153   : > { %v2803_v30 = vsel %vm2043_vm14, 1.0, %v4759_v61  ;;  %v1181_v14 = vpop.f32.mrb[26].mxu0  ;;  %v3207_v21 = vpop.f32.mrb[41].mxu1 }
 0x154   : > { %2508 = vst.msk [vmem:[%s4060_s25 + $0x28] sm:$0xf] %vm2497_vm3, %v2920_v58  ;;  %v2921_v15 = vpack.c.bf16 %v2803_v30, %v2803_v30  ;;  %v1444_v51 = vadd.f32 %v4117_v22, %v1179_v29  ;;  %v1182_v10 = vadd.f32 %v3771_v4, %v1181_v14  ;;  %v1183_v28 = vpop.f32.mrb[27].mxu0  ;;  %v4212_v6 = vpop.f32.mrb[42].mxu1  ;;  %v3003_v58 = vunpack.c.h.bf16 %v3996_v13 }
 0x155   : > { %v3208_v29 = vpop.f32.mrb[43].mxu1  ;;  %v1874_v30 = vsub.f32 1.0, %v3002_v32  ;;  %v1877_v32 = vsub.f32 1.0, %v3007_v54 }
 0x156   : > { %2509 = vst.msk [vmem:[%s4060_s25 + $0x2c] sm:$0xf] %vm2497_vm3, %v2921_v15  ;;  %v1986_v23 = vadd.f32 %v1928_v17, %v1444_v51  ;;  %v1447_v44 = vadd.f32 %v4124_v57, %v1182_v10  ;;  %v3006_v51 = vunpack.c.l.bf16 %v3999_v8 }
 0x158   : > { %vm2044_vm15 = vcmp.gt.f32.partialorder %v1986_v23, 0.5  ;;  %v1987_v20 = vadd.f32 %v1929_v48, %v1447_v44  ;;  %2103 = vst.msk [vmem:[%s3960_s22 + $0x60] sm:$0xff] %vm2090_vm1, %v1986_v23  ;;  %v1932_v48 = vmul.f32 %v1874_v30, %v1700_v18 }
 0x159   : > { %v2804_v22 = vsel %vm2044_vm15, 1.0, %v4759_v61  ;;  %v1186_v26 = vpop.f32.mrb[28].mxu0 }
 0x15a   : > { %v2922_v24 = vpack.c.bf16 %v2804_v22, %v2804_v22  ;;  %vm2045_vm0 = vcmp.gt.f32.partialorder %v1987_v20, 0.5  ;;  %v1187_v49 = vadd.f32 %v3771_v4, %v1186_v26  ;;  %v1188_v57 = vpop.f32.mrb[29].mxu0  ;;  %2104 = vst.msk [vmem:[%s3960_s22 + $0x68] sm:$0xff] %vm2090_vm1, %v1987_v20  ;;  %v4228_v10 = vpop.f32.mrb[44].mxu1 }
 0x15b   : > { %v2805_v7 = vsel %vm2045_vm0, 1.0, %v4759_v61  ;;  %v1189_v53 = vpop.f32.mrb[30].mxu0  ;;  %v3211_v11 = vpop.f32.mrb[45].mxu1  ;;  %v1703_v57 = vmul.f32 0.2, %v3844_v36  ;;  %v3010_v36 = vunpack.c.l.bf16 %v4002_v16 }
 0x15c   : > { %2510 = vst.msk [vmem:[%s4060_s25 + $0x30] sm:$0xf] %vm2497_vm3, %v2922_v24  ;;  %v2923_v19 = vpack.c.bf16 %v2805_v7, %v2805_v7  ;;  %v1452_v12 = vadd.f32 %v4140_v46, %v1187_v49  ;;  %v1190_v62 = vadd.f32 %v3771_v4, %v1189_v53  ;;  %v1191_v56 = vpop.f32.mrb[31].mxu0  ;;  %v1875_v46 = vsub.f32 1.0, %v3003_v58  ;;  %v4235_v23 = vpop.f32.mrb[46].mxu1 }
 0x15d   : > { %v3212_v26 = vpop.f32.mrb[47].mxu1  ;;  %v1876_v24 = vsub.f32 1.0, %v3006_v51  ;;  %v1935_v58 = vmul.f32 %v1877_v32, %v1703_v57  ;;  %v1878_v51 = vsub.f32 1.0, %v3010_v36 }
 0x15e   : > { %2511 = vst.msk [vmem:[%s4060_s25 + $0x34] sm:$0xf] %vm2497_vm3, %v2923_v19  ;;  %v1988_v17 = vadd.f32 %v1930_v60, %v1452_v12  ;;  %v1455_v52 = vadd.f32 %v4147_v55, %v1190_v62  ;;  %v1933_v20 = vmul.f32 %v1875_v46, %v1701_v2  ;;  %v1702_v60 = vmul.f32 0.2, %v3841_v35 }
 0x160   : > { %vm2046_vm2 = vcmp.gt.f32.partialorder %v1988_v17, 0.5  ;;  %v1989_v14 = vadd.f32 %v1931_v39, %v1455_v52  ;;  %2105 = vst.msk [vmem:[%s3960_s22 + $0x70] sm:$0xff] %vm2090_vm1, %v1988_v17  ;;  %v1934_v53 = vmul.f32 %v1876_v24, %v1702_v60 }
 0x161   : > { %v2806_v13 = vsel %vm2046_vm2, 1.0, %v4759_v61  ;;  %v1194_v15 = vpop.f32.mrb[32].mxu0 }
 0x162   : > { %v2924_v55 = vpack.c.bf16 %v2806_v13, %v2806_v13  ;;  %vm2047_vm4 = vcmp.gt.f32.partialorder %v1989_v14, 0.5  ;;  %v1195_v33 = vadd.f32 %v3771_v4, %v1194_v15  ;;  %v1196_v28 = vpop.f32.mrb[33].mxu0  ;;  %2106 = vst.msk [vmem:[%s3960_s22 + $0x78] sm:$0xff] %vm2090_vm1, %v1989_v14  ;;  %v4249_v35 = vpop.f32.mrb[48].mxu1  ;;  %v3011_v14 = vunpack.c.h.bf16 %v4002_v16 }
 0x163   : > { %v2807_v34 = vsel %vm2047_vm4, 1.0, %v4759_v61  ;;  %v1197_v1 = vpop.f32.mrb[34].mxu0  ;;  %v3215_v12 = vpop.f32.mrb[49].mxu1  ;;  %v1704_v15 = vmul.f32 0.2, %v3847_v37  ;;  %v3014_v28 = vunpack.c.l.bf16 %v4005_v9 }
 0x164   : > { %2512 = vst.msk [vmem:[%s4060_s25 + $0x38] sm:$0xf] %vm2497_vm3, %v2924_v55  ;;  %v2925_v44 = vpack.c.bf16 %v2807_v34, %v2807_v34  ;;  %v1460_v59 = vadd.f32 %v4161_v27, %v1195_v33  ;;  %v1198_v3 = vadd.f32 %v3771_v4, %v1197_v1  ;;  %v1199_v22 = vpop.f32.mrb[35].mxu0  ;;  %v4256_v29 = vpop.f32.mrb[50].mxu1  ;;  %v1705_v33 = vmul.f32 0.2, %v3850_v38 }
 0x165   : > { %v3216_v2 = vpop.f32.mrb[51].mxu1  ;;  %v1936_v34 = vmul.f32 %v1878_v51, %v1704_v15  ;;  %v1880_v57 = vsub.f32 1.0, %v3014_v28  ;;  %v1708_v15 = vmul.f32 0.2, %v3859_v42 }
 0x166   : > { %2513 = vst.msk [vmem:[%s4060_s25 + $0x3c] sm:$0xf] %vm2497_vm3, %v2925_v44  ;;  %v1990_v49 = vadd.f32 %v1932_v48, %v1460_v59  ;;  %v1463_v8 = vadd.f32 %v4168_v25, %v1198_v3  ;;  %v3015_v59 = vunpack.c.h.bf16 %v4005_v9 }
 0x168   : > { %vm2048_vm5 = vcmp.gt.f32.partialorder %v1990_v49, 0.5  ;;  %v1991_v21 = vadd.f32 %v1933_v20, %v1463_v8  ;;  %2107 = vst.msk [vmem:[%s3960_s22 + $0x80] sm:$0xff] %vm2090_vm1, %v1990_v49  ;;  %v1706_v8 = vmul.f32 0.2, %v3853_v40 }
 0x169   : > { %v2808_v27 = vsel %vm2048_vm5, 1.0, %v4759_v61  ;;  %v1202_v7 = vpop.f32.mrb[36].mxu0 }
 0x16a   : > { %v2926_v39 = vpack.c.bf16 %v2808_v27, %v2808_v27  ;;  %vm2049_vm6 = vcmp.gt.f32.partialorder %v1991_v21, 0.5  ;;  %v1203_v19 = vadd.f32 %v3771_v4, %v1202_v7  ;;  %v1204_v25 = vpop.f32.mrb[37].mxu0  ;;  %2108 = vst.msk [vmem:[%s3960_s22 + $0x88] sm:$0xff] %vm2090_vm1, %v1991_v21  ;;  %v4272_v11 = vpop.f32.mrb[52].mxu1  ;;  %v1707_v21 = vmul.f32 0.2, %v3856_v41 }
 0x16b   : > { %v2809_v62 = vsel %vm2049_vm6, 1.0, %v4759_v61  ;;  %v1205_v56 = vpop.f32.mrb[38].mxu0  ;;  %v3219_v54 = vpop.f32.mrb[53].mxu1  ;;  %v1881_v27 = vsub.f32 1.0, %v3015_v59  ;;  %v3018_v41 = vunpack.c.l.bf16 %v4008_v0 }
 0x16c   : > { %2514 = vst.msk [vmem:[%s4060_s25 + $0x40] sm:$0xf] %vm2497_vm3, %v2926_v39  ;;  %v2927_v17 = vpack.c.bf16 %v2809_v62, %v2809_v62  ;;  %v1468_v52 = vadd.f32 %v4184_v50, %v1203_v19  ;;  %v1206_v18 = vadd.f32 %v3771_v4, %v1205_v56  ;;  %v1207_v30 = vpop.f32.mrb[39].mxu0  ;;  %v1879_v50 = vsub.f32 1.0, %v3011_v14  ;;  %v4279_v3 = vpop.f32.mrb[54].mxu1 }
 0x16d   : > { %v3220_v49 = vpop.f32.mrb[55].mxu1  ;;  %v1938_v39 = vmul.f32 %v1880_v57, %v1706_v8  ;;  %v1939_v56 = vmul.f32 %v1881_v27, %v1707_v21  ;;  %v3019_v14 = vunpack.c.h.bf16 %v4008_v0  ;;  %v1882_v51 = vsub.f32 1.0, %v3018_v41 }
 0x16e   : > { %2515 = vst.msk [vmem:[%s4060_s25 + $0x44] sm:$0xf] %vm2497_vm3, %v2927_v17  ;;  %v1992_v46 = vadd.f32 %v1934_v53, %v1468_v52  ;;  %v1471_v13 = vadd.f32 %v4191_v5, %v1206_v18  ;;  %v1937_v60 = vmul.f32 %v1879_v50, %v1705_v33  ;;  %v1709_v33 = vmul.f32 0.2, %v3862_v43 }
 0x16f   : > { %v1940_v28 = vmul.f32 %v1882_v51, %v1708_v15  ;;  %v1711_v8 = vmul.f32 0.2, %v3868_v47 }
 0x170   : > { %vm2050_vm7 = vcmp.gt.f32.partialorder %v1992_v46, 0.5  ;;  %v1993_v55 = vadd.f32 %v1935_v58, %v1471_v13  ;;  %2109 = vst.msk [vmem:[%s3960_s22 + $0x90] sm:$0xff] %vm2090_vm1, %v1992_v46 }
 0x171   : > { %v2810_v16 = vsel %vm2050_vm7, 1.0, %v4759_v61  ;;  %v1210_v48 = vpop.f32.mrb[40].mxu0 }
 0x172   : > { %v2928_v5 = vpack.c.bf16 %v2810_v16, %v2810_v16  ;;  %vm2051_vm8 = vcmp.gt.f32.partialorder %v1993_v55, 0.5  ;;  %v1211_v37 = vadd.f32 %v3771_v4, %v1210_v48  ;;  %v1212_v1 = vpop.f32.mrb[41].mxu0  ;;  %2110 = vst.msk [vmem:[%s3960_s22 + $0x98] sm:$0xff] %vm2090_vm1, %v1993_v55  ;;  %v4293_v40 = vpop.f32.mrb[56].mxu1  ;;  %v3022_v16 = vunpack.c.l.bf16 %v4011_v63 }
 0x173   : > { %v2811_v38 = vsel %vm2051_vm8, 1.0, %v4759_v61  ;;  %v1213_v44 = vpop.f32.mrb[42].mxu0  ;;  %v3223_v36 = vpop.f32.mrb[57].mxu1  ;;  %v3023_v1 = vunpack.c.h.bf16 %v4011_v63 }
 0x174   : > { %2516 = vst.msk [vmem:[%s4060_s25 + $0x48] sm:$0xf] %vm2497_vm3, %v2928_v5  ;;  %v2929_v20 = vpack.c.bf16 %v2811_v38, %v2811_v38  ;;  %v1476_v22 = vadd.f32 %v4205_v31, %v1211_v37  ;;  %v1214_v26 = vadd.f32 %v3771_v4, %v1213_v44  ;;  %v1215_v24 = vpop.f32.mrb[43].mxu0  ;;  %v4300_v58 = vpop.f32.mrb[58].mxu1 }
 0x175   : > { %v3224_v2 = vpop.f32.mrb[59].mxu1  ;;  %v1884_v24 = vsub.f32 1.0, %v3022_v16  ;;  %v1885_v57 = vsub.f32 1.0, %v3023_v1 }
 0x176   : > { %2517 = vst.msk [vmem:[%s4060_s25 + $0x4c] sm:$0xf] %vm2497_vm3, %v2929_v20  ;;  %v1994_v32 = vadd.f32 %v1936_v34, %v1476_v22  ;;  %v1479_v9 = vadd.f32 %v4212_v6, %v1214_v26 }
 0x178   : > { %vm2052_vm9 = vcmp.gt.f32.partialorder %v1994_v32, 0.5  ;;  %v1995_v7 = vadd.f32 %v1937_v60, %v1479_v9  ;;  %2111 = vst.msk [vmem:[%s3960_s22 + $0xa0] sm:$0xff] %vm2090_vm1, %v1994_v32  ;;  %v1710_v60 = vmul.f32 0.2, %v3865_v45 }
 0x179   : > { %v2812_v31 = vsel %vm2052_vm9, 1.0, %v4759_v61  ;;  %v1218_v53 = vpop.f32.mrb[44].mxu0 }
 0x17a   : > { %v2930_v19 = vpack.c.bf16 %v2812_v31, %v2812_v31  ;;  %vm2053_vm10 = vcmp.gt.f32.partialorder %v1995_v7, 0.5  ;;  %v1219_v25 = vadd.f32 %v3771_v4, %v1218_v53  ;;  %v1220_v6 = vpop.f32.mrb[45].mxu0  ;;  %2112 = vst.msk [vmem:[%s3960_s22 + $0xa8] sm:$0xff] %vm2090_vm1, %v1995_v7  ;;  %v4316_v48 = vpop.f32.mrb[60].mxu1  ;;  %v1942_v21 = vmul.f32 %v1884_v24, %v1710_v60  ;;  %v4760_v31 = vld [vmem:[#allocation32_spill] sm:$0xff] }
 0x17b   : > { %v2813_v12 = vsel %vm2053_vm10, 1.0, %v4759_v61  ;;  %v1221_v62 = vpop.f32.mrb[46].mxu0  ;;  %v3227_v37 = vpop.f32.mrb[61].mxu1  ;;  %v3026_v47 = vunpack.c.l.bf16 %v4760_v31 }
 0x17c   : > { %2518 = vst.msk [vmem:[%s4060_s25 + $0x50] sm:$0xf] %vm2497_vm3, %v2930_v19  ;;  %v2931_v17 = vpack.c.bf16 %v2813_v12, %v2813_v12  ;;  %v1484_v52 = vadd.f32 %v4228_v10, %v1219_v25  ;;  %v1222_v18 = vadd.f32 %v3771_v4, %v1221_v62  ;;  %v1223_v30 = vpop.f32.mrb[47].mxu0  ;;  %v1883_v10 = vsub.f32 1.0, %v3019_v14  ;;  %v4323_v54 = vpop.f32.mrb[62].mxu1 }
 0x17d   : > { %v3228_v26 = vpop.f32.mrb[63].mxu1  ;;  %v1943_v25 = vmul.f32 %v1885_v57, %v1711_v8  ;;  %v4761_v30 = vld [vmem:[#allocation2_spill] sm:$0xff]  ;;  %v1886_v2 = vsub.f32 1.0, %v3026_v47 }
 0x17e   : > { %2519 = vst.msk [vmem:[%s4060_s25 + $0x54] sm:$0xf] %vm2497_vm3, %v2931_v17  ;;  %v1996_v46 = vadd.f32 %v1938_v39, %v1484_v52  ;;  %v1487_v13 = vadd.f32 %v4235_v23, %v1222_v18  ;;  %v1941_v20 = vmul.f32 %v1883_v10, %v1709_v33  ;;  %v1712_v14 = vmul.f32 0.2, %v4761_v30  ;;  %v4763_v33 = vld [vmem:[#allocation33_spill] sm:$0xff]  ;;  %v4767_v30 = vld [vmem:[#allocation6_spill] sm:$0xff] }
 0x17f   : > { %v3030_v10 = vunpack.c.l.bf16 %v4763_v33  ;;  %v3031_v37 = vunpack.c.h.bf16 %v4763_v33 }
 0x180   : > { %vm2054_vm11 = vcmp.gt.f32.partialorder %v1996_v46, 0.5  ;;  %v1997_v55 = vadd.f32 %v1939_v56, %v1487_v13  ;;  %2113 = vst.msk [vmem:[%s3960_s22 + $0xb0] sm:$0xff] %vm2090_vm1, %v1996_v46  ;;  %v3027_v56 = vunpack.c.h.bf16 %v4760_v31  ;;  %v4762_v46 = vld [vmem:[#allocation3_spill] sm:$0xff]  ;;  %v1944_v16 = vmul.f32 %v1886_v2, %v1712_v14 }
 0x181   : > { %v2814_v0 = vsel %vm2054_vm11, 1.0, %v4759_v61  ;;  %v1226_v50 = vpop.f32.mrb[48].mxu0  ;;  %v1713_v13 = vmul.f32 0.2, %v4762_v46  ;;  %v1888_v60 = vsub.f32 1.0, %v3030_v10  ;;  %v1889_v57 = vsub.f32 1.0, %v3031_v37 }
 0x182   : > { %v2932_v23 = vpack.c.bf16 %v2814_v0, %v2814_v0  ;;  %vm2055_vm12 = vcmp.gt.f32.partialorder %v1997_v55, 0.5  ;;  %v1227_v42 = vadd.f32 %v3771_v4, %v1226_v50  ;;  %v1228_v5 = vpop.f32.mrb[49].mxu0  ;;  %2114 = vst.msk [vmem:[%s3960_s22 + $0xb8] sm:$0xff] %vm2090_vm1, %v1997_v55  ;;  %v4337_v45 = vpop.f32.mrb[64].mxu1  ;;  %v1887_v15 = vsub.f32 1.0, %v3027_v56  ;;  %v4768_v46 = vld [vmem:[#allocation7_spill] sm:$0xff] }
 0x183   : > { %v2815_v43 = vsel %vm2055_vm12, 1.0, %v4759_v61  ;;  %v1229_v34 = vpop.f32.mrb[50].mxu0  ;;  %v3231_v53 = vpop.f32.mrb[65].mxu1  ;;  %v1716_v14 = vmul.f32 0.2, %v4767_v30  ;;  %v4773_v30 = vld [vmem:[#allocation10_spill] sm:$0xff] }
 0x184   : > { %2520 = vst.msk [vmem:[%s4060_s25 + $0x58] sm:$0xf] %vm2497_vm3, %v2932_v23  ;;  %v2933_v38 = vpack.c.bf16 %v2815_v43, %v2815_v43  ;;  %v1492_v44 = vadd.f32 %v4249_v35, %v1227_v42  ;;  %v1230_v59 = vadd.f32 %v3771_v4, %v1229_v34  ;;  %v1231_v22 = vpop.f32.mrb[51].mxu0  ;;  %v4344_v6 = vpop.f32.mrb[66].mxu1 }
 0x185   : > { %v3232_v17 = vpop.f32.mrb[67].mxu1  ;;  %v4764_v22 = vld [vmem:[#allocation4_spill] sm:$0xff] }
 0x186   : > { %2521 = vst.msk [vmem:[%s4060_s25 + $0x5c] sm:$0xf] %vm2497_vm3, %v2933_v38  ;;  %v1998_v49 = vadd.f32 %v1940_v28, %v1492_v44  ;;  %v1495_v63 = vadd.f32 %v4256_v29, %v1230_v59  ;;  %v1945_v44 = vmul.f32 %v1887_v15, %v1713_v13  ;;  %v1714_v26 = vmul.f32 0.2, %v4764_v22  ;;  %v4770_v22 = vld [vmem:[#allocation8_spill] sm:$0xff] }
 0x187   : > { %v1717_v13 = vmul.f32 0.2, %v4768_v46  ;;  %v4774_v46 = vld [vmem:[#allocation11_spill] sm:$0xff] }
 0x188   : > { %vm2056_vm13 = vcmp.gt.f32.partialorder %v1998_v49, 0.5  ;;  %v1999_v32 = vadd.f32 %v1941_v20, %v1495_v63  ;;  %2115 = vst.msk [vmem:[%s3960_s22 + $0xc0] sm:$0xff] %vm2090_vm1, %v1998_v49  ;;  %v4765_v63 = vld [vmem:[#allocation5_spill] sm:$0xff] }
 0x189   : > { %v2816_v35 = vsel %vm2056_vm13, 1.0, %v4759_v61  ;;  %v1234_v9 = vpop.f32.mrb[52].mxu0  ;;  %v1715_v8 = vmul.f32 0.2, %v4765_v63  ;;  %v4771_v63 = vld [vmem:[#allocation9_spill] sm:$0xff] }
 0x18a   : > { %v2934_v27 = vpack.c.bf16 %v2816_v35, %v2816_v35  ;;  %vm2057_vm14 = vcmp.gt.f32.partialorder %v1999_v32, 0.5  ;;  %v1235_v7 = vadd.f32 %v3771_v4, %v1234_v9  ;;  %v1236_v29 = vpop.f32.mrb[53].mxu0  ;;  %2116 = vst.msk [vmem:[%s3960_s22 + $0xc8] sm:$0xff] %vm2090_vm1, %v1999_v32  ;;  %v4352_v4 = vld [vmem:[%s4690_s2] ss:$0 sm:$0xff]  ;;  %v4365_v0 = vpop.f32.mrb[68].mxu1  ;;  %v1946_v9 = vmul.f32 %v1888_v60, %v1714_v26 }
 0x18b   : > { %v2817_v39 = vsel %vm2057_vm14, 1.0, %v4759_v61  ;;  %v1237_v19 = vpop.f32.mrb[54].mxu0  ;;  %v3235_v42 = vpop.f32.mrb[69].mxu1  ;;  %v4766_v29 = vld [vmem:[#allocation34_spill] sm:$0xff]  ;;  %v1718_v26 = vmul.f32 0.2, %v4770_v22 }
 0x18c   : > { %2522 = vst.msk [vmem:[%s4060_s25 + $0x60] sm:$0xf] %vm2497_vm3, %v2934_v27  ;;  %v2935_v41 = vpack.c.bf16 %v2817_v39, %v2817_v39  ;;  %v1500_v36 = vadd.f32 %v4272_v11, %v1235_v7  ;;  %v1238_v12 = vadd.f32 %v4352_v4, %v1237_v19  ;;  %v1239_v62 = vpop.f32.mrb[55].mxu0  ;;  %v4372_v43 = vpop.f32.mrb[70].mxu1  ;;  %v3034_v31 = vunpack.c.l.bf16 %v4766_v29  ;;  %v4776_v22 = vld [vmem:[#allocation12_spill] sm:$0xff] }
 0x18d   : > { %v3236_v20 = vpop.f32.mrb[71].mxu1  ;;  %v1947_v19 = vmul.f32 %v1889_v57, %v1715_v8  ;;  %v3035_v56 = vunpack.c.h.bf16 %v4766_v29  ;;  %v1719_v8 = vmul.f32 0.2, %v4771_v63  ;;  %v4777_v63 = vld [vmem:[#allocation13_spill] sm:$0xff] }
 0x18e   : > { %2523 = vst.msk [vmem:[%s4060_s25 + $0x64] sm:$0xf] %vm2497_vm3, %v2935_v41  ;;  %v2000_v52 = vadd.f32 %v1942_v21, %v1500_v36  ;;  %v1503_v18 = vadd.f32 %v4279_v3, %v1238_v12  ;;  %v1890_v2 = vsub.f32 1.0, %v3034_v31 }
 0x190   : > { %vm2058_vm15 = vcmp.gt.f32.partialorder %v2000_v52, 0.5  ;;  %v2001_v11 = vadd.f32 %v1943_v25, %v1503_v18  ;;  %2117 = vst.msk [vmem:[%s3960_s22 + $0xd0] sm:$0xff] %vm2090_vm1, %v2000_v52 }
 0x191   : > { %v2818_v51 = vsel %vm2058_vm15, 1.0, %v4759_v61  ;;  %v1242_v55 = vpop.f32.mrb[56].mxu0 }
 0x192   : > { %v2936_v3 = vpack.c.bf16 %v2818_v51, %v2818_v51  ;;  %vm2059_vm0 = vcmp.gt.f32.partialorder %v2001_v11, 0.5  ;;  %v1243_v50 = vadd.f32 %v4352_v4, %v1242_v55  ;;  %v1244_v23 = vpop.f32.mrb[57].mxu0  ;;  %2118 = vst.msk [vmem:[%s3960_s22 + $0xd8] sm:$0xff] %vm2090_vm1, %v2001_v11  ;;  %v4386_v21 = vpop.f32.mrb[72].mxu1  ;;  %v4769_v55 = vld [vmem:[#allocation35_spill] sm:$0xff] }
 0x193   : > { %v2819_v28 = vsel %vm2059_vm0, 1.0, %v4759_v61  ;;  %v1245_v5 = vpop.f32.mrb[58].mxu0  ;;  %v3239_v47 = vpop.f32.mrb[73].mxu1  ;;  %v3038_v33 = vunpack.c.l.bf16 %v4769_v55 }
 0x194   : > { %2524 = vst.msk [vmem:[%s4060_s25 + $0x68] sm:$0xf] %vm2497_vm3, %v2936_v3  ;;  %v2937_v34 = vpack.c.bf16 %v2819_v28, %v2819_v28  ;;  %v1508_v1 = vadd.f32 %v4293_v40, %v1243_v50  ;;  %v1246_v38 = vadd.f32 %v4352_v4, %v1245_v5  ;;  %v1247_v59 = vpop.f32.mrb[59].mxu0  ;;  %v4393_v25 = vpop.f32.mrb[74].mxu1  ;;  %v1948_v50 = vmul.f32 %v1890_v2, %v1716_v14 }
 0x195   : > { %v3240_v17 = vpop.f32.mrb[75].mxu1  ;;  %v3039_v5 = vunpack.c.h.bf16 %v4769_v55  ;;  %v1892_v60 = vsub.f32 1.0, %v3038_v33  ;;  %v1720_v14 = vmul.f32 0.2, %v4773_v30  ;;  %v4779_v30 = vld [vmem:[#allocation14_spill] sm:$0xff] }
 0x196   : > { %2525 = vst.msk [vmem:[%s4060_s25 + $0x6c] sm:$0xf] %vm2497_vm3, %v2937_v34  ;;  %v2002_v24 = vadd.f32 %v1944_v16, %v1508_v1  ;;  %v1511_v49 = vadd.f32 %v4300_v58, %v1246_v38 }
 0x197   : > { %v1893_v57 = vsub.f32 1.0, %v3039_v5 }
 0x198   : > { %vm2060_vm2 = vcmp.gt.f32.partialorder %v2002_v24, 0.5  ;;  %v2003_v32 = vadd.f32 %v1945_v44, %v1511_v49  ;;  %2119 = vst.msk [vmem:[%s3960_s22 + $0xe0] sm:$0xff] %vm2090_vm1, %v2002_v24 }
 0x199   : > { %v2820_v40 = vsel %vm2060_vm2, 1.0, %v4759_v61  ;;  %v1250_v35 = vpop.f32.mrb[60].mxu0 }
 0x19a   : > { %v2938_v27 = vpack.c.bf16 %v2820_v40, %v2820_v40  ;;  %vm2061_vm4 = vcmp.gt.f32.partialorder %v2003_v32, 0.5  ;;  %v1251_v7 = vadd.f32 %v4352_v4, %v1250_v35  ;;  %v1252_v58 = vpop.f32.mrb[61].mxu0  ;;  %2120 = vst.msk [vmem:[%s3960_s22 + $0xe8] sm:$0xff] %vm2090_vm1, %v2003_v32  ;;  %v4409_v10 = vpop.f32.mrb[76].mxu1  ;;  %v1950_v35 = vmul.f32 %v1892_v60, %v1718_v26 }
 0x19b   : > { %v2821_v53 = vsel %vm2061_vm4, 1.0, %v4759_v61  ;;  %v1253_v39 = vpop.f32.mrb[62].mxu0  ;;  %v3243_v23 = vpop.f32.mrb[77].mxu1  ;;  %v4772_v58 = vld [vmem:[#allocation36_spill] sm:$0xff]  ;;  %v1722_v26 = vmul.f32 0.2, %v4776_v22 }
 0x19c   : > { %2526 = vst.msk [vmem:[%s4060_s25 + $0x70] sm:$0xf] %vm2497_vm3, %v2938_v27  ;;  %v2939_v41 = vpack.c.bf16 %v2821_v53, %v2821_v53  ;;  %v1516_v36 = vadd.f32 %v4316_v48, %v1251_v7  ;;  %v1254_v12 = vadd.f32 %v4352_v4, %v1253_v39  ;;  %v1255_v62 = vpop.f32.mrb[63].mxu0  ;;  %v1891_v48 = vsub.f32 1.0, %v3035_v56  ;;  %v4416_v37 = vpop.f32.mrb[78].mxu1  ;;  %v4782_v22 = vld [vmem:[#allocation16_spill] sm:$0xff] }
 0x19d   : > { %v3244_v20 = vpop.f32.mrb[79].mxu1  ;;  %v3042_v29 = vunpack.c.l.bf16 %v4772_v58  ;;  %v1951_v39 = vmul.f32 %v1893_v57, %v1719_v8  ;;  %v3043_v56 = vunpack.c.h.bf16 %v4772_v58  ;;  %v1723_v8 = vmul.f32 0.2, %v4777_v63  ;;  %v4783_v63 = vld [vmem:[#allocation17_spill] sm:$0xff] }
 0x19e   : > { %2527 = vst.msk [vmem:[%s4060_s25 + $0x74] sm:$0xf] %vm2497_vm3, %v2939_v41  ;;  %v2004_v52 = vadd.f32 %v1946_v9, %v1516_v36  ;;  %v1519_v18 = vadd.f32 %v4323_v54, %v1254_v12  ;;  %v1949_v44 = vmul.f32 %v1891_v48, %v1717_v13  ;;  %v1721_v13 = vmul.f32 0.2, %v4774_v46  ;;  %v4780_v46 = vld [vmem:[#allocation15_spill] sm:$0xff] }
 0x19f   : > { %v1894_v2 = vsub.f32 1.0, %v3042_v29 }
 0x1a0   : > { %vm2062_vm5 = vcmp.gt.f32.partialorder %v2004_v52, 0.5  ;;  %v2005_v11 = vadd.f32 %v1947_v19, %v1519_v18  ;;  %2121 = vst.msk [vmem:[%s3960_s22 + $0xf0] sm:$0xff] %vm2090_vm1, %v2004_v52 }
 0x1a1   : > { %v2822_v15 = vsel %vm2062_vm5, 1.0, %v4759_v61  ;;  %v1258_v51 = vpop.f32.mrb[64].mxu0 }
 0x1a2   : > { %v2940_v54 = vpack.c.bf16 %v2822_v15, %v2822_v15  ;;  %vm2063_vm6 = vcmp.gt.f32.partialorder %v2005_v11, 0.5  ;;  %v1259_v3 = vadd.f32 %v4352_v4, %v1258_v51  ;;  %v1260_v16 = vpop.f32.mrb[65].mxu0  ;;  %2122 = vst.msk [vmem:[%s3960_s22 + $0xf8] sm:$0xff] %vm2090_vm1, %v2005_v11  ;;  %v4430_v9 = vpop.f32.mrb[80].mxu1  ;;  %v4775_v51 = vld [vmem:[#allocation37_spill] sm:$0xff] }
 0x1a3   : > { %v2823_v42 = vsel %vm2063_vm6, 1.0, %v4759_v61  ;;  %v1261_v28 = vpop.f32.mrb[66].mxu0  ;;  %v3247_v31 = vpop.f32.mrb[81].mxu1  ;;  %v3046_v55 = vunpack.c.l.bf16 %v4775_v51 }
 0x1a4   : > { %2528 = vst.msk [vmem:[%s4060_s25 + $0x78] sm:$0xf] %vm2497_vm3, %v2940_v54  ;;  %v2941_v34 = vpack.c.bf16 %v2823_v42, %v2823_v42  ;;  %v1524_v1 = vadd.f32 %v4337_v45, %v1259_v3  ;;  %v1262_v38 = vadd.f32 %v4352_v4, %v1261_v28  ;;  %v1263_v59 = vpop.f32.mrb[67].mxu0  ;;  %v4437_v19 = vpop.f32.mrb[82].mxu1  ;;  %v1952_v3 = vmul.f32 %v1894_v2, %v1720_v14 }
 0x1a5   : > { %v3248_v17 = vpop.f32.mrb[83].mxu1  ;;  %v3047_v28 = vunpack.c.h.bf16 %v4775_v51  ;;  %v1896_v60 = vsub.f32 1.0, %v3046_v55  ;;  %v1724_v14 = vmul.f32 0.2, %v4779_v30  ;;  %v4785_v30 = vld [vmem:[#allocation18_spill] sm:$0xff] }
 0x1a6   : > { %2529 = vst.msk [vmem:[%s4060_s25 + $0x7c] sm:$0xf] %vm2497_vm3, %v2941_v34  ;;  %v2006_v24 = vadd.f32 %v1948_v50, %v1524_v1  ;;  %v1527_v49 = vadd.f32 %v4344_v6, %v1262_v38 }
 0x1a7   : > { %v1897_v57 = vsub.f32 1.0, %v3047_v28 }
 0x1a8   : > { %vm2064_vm7 = vcmp.gt.f32.partialorder %v2006_v24, 0.5  ;;  %v2007_v32 = vadd.f32 %v1949_v44, %v1527_v49  ;;  %2123 = vst.msk [vmem:[%s3960_s22 + $0x100] sm:$0xff] %vm2090_vm1, %v2006_v24 }
 0x1a9   : > { %v2824_v45 = vsel %vm2064_vm7, 1.0, %v4759_v61  ;;  %v1266_v40 = vpop.f32.mrb[68].mxu0 }
 0x1aa   : > { %v2942_v27 = vpack.c.bf16 %v2824_v45, %v2824_v45  ;;  %vm2065_vm8 = vcmp.gt.f32.partialorder %v2007_v32, 0.5  ;;  %v1267_v7 = vadd.f32 %v4352_v4, %v1266_v40  ;;  %v1268_v6 = vpop.f32.mrb[69].mxu0  ;;  %2124 = vst.msk [vmem:[%s3960_s22 + $0x108] sm:$0xff] %vm2090_vm1, %v2007_v32  ;;  %v4453_v33 = vpop.f32.mrb[84].mxu1  ;;  %v1954_v40 = vmul.f32 %v1896_v60, %v1722_v26 }
 0x1ab   : > { %v2825_v47 = vsel %vm2065_vm8, 1.0, %v4759_v61  ;;  %v1269_v53 = vpop.f32.mrb[70].mxu0  ;;  %v3251_v16 = vpop.f32.mrb[85].mxu1  ;;  %v4778_v6 = vld [vmem:[#allocation38_spill] sm:$0xff]  ;;  %v1726_v26 = vmul.f32 0.2, %v4782_v22 }
 0x1ac   : > { %2530 = vst.msk [vmem:[%s4060_s25 + $0x80] sm:$0xf] %vm2497_vm3, %v2942_v27  ;;  %v2943_v41 = vpack.c.bf16 %v2825_v47, %v2825_v47  ;;  %v1532_v36 = vadd.f32 %v4365_v0, %v1267_v7  ;;  %v1270_v12 = vadd.f32 %v4352_v4, %v1269_v53  ;;  %v1271_v62 = vpop.f32.mrb[71].mxu0  ;;  %v1895_v0 = vsub.f32 1.0, %v3043_v56  ;;  %v4460_v5 = vpop.f32.mrb[86].mxu1  ;;  %v4788_v22 = vld [vmem:[#allocation20_spill] sm:$0xff] }
 0x1ad   : > { %v3252_v20 = vpop.f32.mrb[87].mxu1  ;;  %v3050_v58 = vunpack.c.l.bf16 %v4778_v6  ;;  %v1955_v53 = vmul.f32 %v1897_v57, %v1723_v8  ;;  %v3051_v56 = vunpack.c.h.bf16 %v4778_v6  ;;  %v1727_v8 = vmul.f32 0.2, %v4783_v63  ;;  %v4789_v63 = vld [vmem:[#allocation21_spill] sm:$0xff] }
 0x1ae   : > { %2531 = vst.msk [vmem:[%s4060_s25 + $0x84] sm:$0xf] %vm2497_vm3, %v2943_v41  ;;  %v2008_v52 = vadd.f32 %v1950_v35, %v1532_v36  ;;  %v1535_v18 = vadd.f32 %v4372_v43, %v1270_v12  ;;  %v1953_v44 = vmul.f32 %v1895_v0, %v1721_v13  ;;  %v1725_v13 = vmul.f32 0.2, %v4780_v46  ;;  %v4786_v46 = vld [vmem:[#allocation19_spill] sm:$0xff] }
 0x1af   : > { %v1898_v2 = vsub.f32 1.0, %v3050_v58 }
 0x1b0   : > { %vm2066_vm9 = vcmp.gt.f32.partialorder %v2008_v52, 0.5  ;;  %v2009_v11 = vadd.f32 %v1951_v39, %v1535_v18  ;;  %2125 = vst.msk [vmem:[%s3960_s22 + $0x110] sm:$0xff] %vm2090_vm1, %v2008_v52 }
 0x1b1   : > { %v2826_v48 = vsel %vm2066_vm9, 1.0, %v4759_v61  ;;  %v1274_v15 = vpop.f32.mrb[72].mxu0 }
 0x1b2   : > { %v2944_v43 = vpack.c.bf16 %v2826_v48, %v2826_v48  ;;  %vm2067_vm10 = vcmp.gt.f32.partialorder %v2009_v11, 0.5  ;;  %v1275_v54 = vadd.f32 %v4352_v4, %v1274_v15  ;;  %v1276_v50 = vpop.f32.mrb[73].mxu0  ;;  %2126 = vst.msk [vmem:[%s3960_s22 + $0x118] sm:$0xff] %vm2090_vm1, %v2009_v11  ;;  %v4474_v35 = vpop.f32.mrb[88].mxu1  ;;  %v4781_v15 = vld [vmem:[#allocation39_spill] sm:$0xff] }
 0x1b3   : > { %v2827_v23 = vsel %vm2067_vm10, 1.0, %v4759_v61  ;;  %v1277_v42 = vpop.f32.mrb[74].mxu0  ;;  %v3255_v29 = vpop.f32.mrb[89].mxu1  ;;  %v3054_v51 = vunpack.c.l.bf16 %v4781_v15 }
 0x1b4   : > { %2532 = vst.msk [vmem:[%s4060_s25 + $0x88] sm:$0xf] %vm2497_vm3, %v2944_v43  ;;  %v2945_v34 = vpack.c.bf16 %v2827_v23, %v2827_v23  ;;  %v1540_v1 = vadd.f32 %v4386_v21, %v1275_v54  ;;  %v1278_v38 = vadd.f32 %v4352_v4, %v1277_v42  ;;  %v1279_v59 = vpop.f32.mrb[75].mxu0  ;;  %v4481_v39 = vpop.f32.mrb[90].mxu1  ;;  %v1956_v54 = vmul.f32 %v1898_v2, %v1724_v14 }
 0x1b5   : > { %v3256_v17 = vpop.f32.mrb[91].mxu1  ;;  %v3055_v42 = vunpack.c.h.bf16 %v4781_v15  ;;  %v1900_v60 = vsub.f32 1.0, %v3054_v51  ;;  %v1728_v14 = vmul.f32 0.2, %v4785_v30  ;;  %v4791_v30 = vld [vmem:[#allocation22_spill] sm:$0xff] }
 0x1b6   : > { %2533 = vst.msk [vmem:[%s4060_s25 + $0x8c] sm:$0xf] %vm2497_vm3, %v2945_v34  ;;  %v2010_v24 = vadd.f32 %v1952_v3, %v1540_v1  ;;  %v1543_v49 = vadd.f32 %v4393_v25, %v1278_v38 }
 0x1b7   : > { %v1901_v57 = vsub.f32 1.0, %v3055_v42 }
 0x1b8   : > { %vm2068_vm11 = vcmp.gt.f32.partialorder %v2010_v24, 0.5  ;;  %v2011_v32 = vadd.f32 %v1953_v44, %v1543_v49  ;;  %2127 = vst.msk [vmem:[%s3960_s22 + $0x120] sm:$0xff] %vm2090_vm1, %v2010_v24 }
 0x1b9   : > { %v2828_v21 = vsel %vm2068_vm11, 1.0, %v4759_v61  ;;  %v1282_v45 = vpop.f32.mrb[76].mxu0 }
 0x1ba   : > { %v2946_v27 = vpack.c.bf16 %v2828_v21, %v2828_v21  ;;  %vm2069_vm12 = vcmp.gt.f32.partialorder %v2011_v32, 0.5  ;;  %v1283_v7 = vadd.f32 %v4352_v4, %v1282_v45  ;;  %v1284_v25 = vpop.f32.mrb[77].mxu0  ;;  %2128 = vst.msk [vmem:[%s3960_s22 + $0x128] sm:$0xff] %vm2090_vm1, %v2011_v32  ;;  %v4497_v55 = vpop.f32.mrb[92].mxu1  ;;  %v1958_v45 = vmul.f32 %v1900_v60, %v1726_v26 }
 0x1bb   : > { %v2829_v31 = vsel %vm2069_vm12, 1.0, %v4759_v61  ;;  %v1285_v47 = vpop.f32.mrb[78].mxu0  ;;  %v3259_v50 = vpop.f32.mrb[93].mxu1  ;;  %v4784_v25 = vld [vmem:[#allocation40_spill] sm:$0xff]  ;;  %v1730_v26 = vmul.f32 0.2, %v4788_v22 }
 0x1bc   : > { %2534 = vst.msk [vmem:[%s4060_s25 + $0x90] sm:$0xf] %vm2497_vm3, %v2946_v27  ;;  %v2947_v41 = vpack.c.bf16 %v2829_v31, %v2829_v31  ;;  %v1548_v36 = vadd.f32 %v4409_v10, %v1283_v7  ;;  %v1286_v12 = vadd.f32 %v4352_v4, %v1285_v47  ;;  %v1287_v62 = vpop.f32.mrb[79].mxu0  ;;  %v1899_v10 = vsub.f32 1.0, %v3051_v56  ;;  %v4504_v28 = vpop.f32.mrb[94].mxu1  ;;  %v4794_v22 = vld [vmem:[#allocation24_spill] sm:$0xff] }
 0x1bd   : > { %v3260_v20 = vpop.f32.mrb[95].mxu1  ;;  %v3058_v6 = vunpack.c.l.bf16 %v4784_v25  ;;  %v1959_v47 = vmul.f32 %v1901_v57, %v1727_v8  ;;  %v3059_v56 = vunpack.c.h.bf16 %v4784_v25  ;;  %v1731_v8 = vmul.f32 0.2, %v4789_v63  ;;  %v4795_v63 = vld [vmem:[#allocation25_spill] sm:$0xff] }
 0x1be   : > { %2535 = vst.msk [vmem:[%s4060_s25 + $0x94] sm:$0xf] %vm2497_vm3, %v2947_v41  ;;  %v2012_v52 = vadd.f32 %v1954_v40, %v1548_v36  ;;  %v1551_v18 = vadd.f32 %v4416_v37, %v1286_v12  ;;  %v1957_v44 = vmul.f32 %v1899_v10, %v1725_v13  ;;  %v1729_v13 = vmul.f32 0.2, %v4786_v46  ;;  %v4792_v46 = vld [vmem:[#allocation23_spill] sm:$0xff] }
 0x1bf   : > { %v1902_v2 = vsub.f32 1.0, %v3058_v6 }
 0x1c0   : > { %vm2070_vm13 = vcmp.gt.f32.partialorder %v2012_v52, 0.5  ;;  %v2013_v11 = vadd.f32 %v1955_v53, %v1551_v18  ;;  %2129 = vst.msk [vmem:[%s3960_s22 + $0x130] sm:$0xff] %vm2090_vm1, %v2012_v52 }
 0x1c1   : > { %v2830_v0 = vsel %vm2070_vm13, 1.0, %v4759_v61  ;;  %v1290_v48 = vpop.f32.mrb[80].mxu0 }
 0x1c2   : > { %v2948_v37 = vpack.c.bf16 %v2830_v0, %v2830_v0  ;;  %vm2071_vm14 = vcmp.gt.f32.partialorder %v2013_v11, 0.5  ;;  %v1291_v43 = vadd.f32 %v4352_v4, %v1290_v48  ;;  %v1292_v3 = vpop.f32.mrb[81].mxu0  ;;  %2130 = vst.msk [vmem:[%s3960_s22 + $0x138] sm:$0xff] %vm2090_vm1, %v2013_v11  ;;  %v4518_v40 = vpop.f32.mrb[96].mxu1  ;;  %v4787_v48 = vld [vmem:[#allocation41_spill] sm:$0xff] }
 0x1c3   : > { %v2831_v16 = vsel %vm2071_vm14, 1.0, %v4759_v61  ;;  %v1293_v23 = vpop.f32.mrb[82].mxu0  ;;  %v3263_v58 = vpop.f32.mrb[97].mxu1  ;;  %v3062_v15 = vunpack.c.l.bf16 %v4787_v48 }
 0x1c4   : > { %2536 = vst.msk [vmem:[%s4060_s25 + $0x98] sm:$0xf] %vm2497_vm3, %v2948_v37  ;;  %v2949_v34 = vpack.c.bf16 %v2831_v16, %v2831_v16  ;;  %v1556_v1 = vadd.f32 %v4430_v9, %v1291_v43  ;;  %v1294_v38 = vadd.f32 %v4352_v4, %v1293_v23  ;;  %v1295_v59 = vpop.f32.mrb[83].mxu0  ;;  %v4525_v53 = vpop.f32.mrb[98].mxu1  ;;  %v1960_v43 = vmul.f32 %v1902_v2, %v1728_v14 }
 0x1c5   : > { %v3264_v17 = vpop.f32.mrb[99].mxu1  ;;  %v3063_v23 = vunpack.c.h.bf16 %v4787_v48  ;;  %v1904_v60 = vsub.f32 1.0, %v3062_v15  ;;  %v1732_v14 = vmul.f32 0.2, %v4791_v30  ;;  %v4797_v30 = vld [vmem:[#allocation26_spill] sm:$0xff] }
 0x1c6   : > { %2537 = vst.msk [vmem:[%s4060_s25 + $0x9c] sm:$0xf] %vm2497_vm3, %v2949_v34  ;;  %v2014_v24 = vadd.f32 %v1956_v54, %v1556_v1  ;;  %v1559_v49 = vadd.f32 %v4437_v19, %v1294_v38 }
 0x1c7   : > { %v1905_v57 = vsub.f32 1.0, %v3063_v23 }
 0x1c8   : > { %vm2072_vm15 = vcmp.gt.f32.partialorder %v2014_v24, 0.5  ;;  %v2015_v32 = vadd.f32 %v1957_v44, %v1559_v49  ;;  %2131 = vst.msk [vmem:[%s3960_s22 + $0x140] sm:$0xff] %vm2090_vm1, %v2014_v24 }
 0x1c9   : > { %v2832_v9 = vsel %vm2072_vm15, 1.0, %v4759_v61  ;;  %v1298_v21 = vpop.f32.mrb[84].mxu0 }
 0x1ca   : > { %v2950_v27 = vpack.c.bf16 %v2832_v9, %v2832_v9  ;;  %vm2073_vm0 = vcmp.gt.f32.partialorder %v2015_v32, 0.5  ;;  %v1299_v7 = vadd.f32 %v4352_v4, %v1298_v21  ;;  %v1300_v19 = vpop.f32.mrb[85].mxu0  ;;  %2132 = vst.msk [vmem:[%s3960_s22 + $0x148] sm:$0xff] %vm2090_vm1, %v2015_v32  ;;  %v4541_v51 = vpop.f32.mrb[100].mxu1  ;;  %v1962_v21 = vmul.f32 %v1904_v60, %v1730_v26 }
 0x1cb   : > { %v2833_v29 = vsel %vm2073_vm0, 1.0, %v4759_v61  ;;  %v1301_v31 = vpop.f32.mrb[86].mxu0  ;;  %v3267_v3 = vpop.f32.mrb[101].mxu1  ;;  %v4790_v19 = vld [vmem:[#allocation42_spill] sm:$0xff]  ;;  %v1734_v26 = vmul.f32 0.2, %v4794_v22 }
 0x1cc   : > { %2538 = vst.msk [vmem:[%s4060_s25 + $0xa0] sm:$0xf] %vm2497_vm3, %v2950_v27  ;;  %v2951_v41 = vpack.c.bf16 %v2833_v29, %v2833_v29  ;;  %v1564_v36 = vadd.f32 %v4453_v33, %v1299_v7  ;;  %v1302_v12 = vadd.f32 %v4352_v4, %v1301_v31  ;;  %v1303_v62 = vpop.f32.mrb[87].mxu0  ;;  %v1903_v33 = vsub.f32 1.0, %v3059_v56  ;;  %v4548_v42 = vpop.f32.mrb[102].mxu1 }
 0x1cd   : > { %v3268_v20 = vpop.f32.mrb[103].mxu1  ;;  %v3066_v25 = vunpack.c.l.bf16 %v4790_v19  ;;  %v1963_v31 = vmul.f32 %v1905_v57, %v1731_v8  ;;  %v3067_v56 = vunpack.c.h.bf16 %v4790_v19  ;;  %v1735_v8 = vmul.f32 0.2, %v4795_v63 }
 0x1ce   : > { %2539 = vst.msk [vmem:[%s4060_s25 + $0xa4] sm:$0xf] %vm2497_vm3, %v2951_v41  ;;  %v2016_v52 = vadd.f32 %v1958_v45, %v1564_v36  ;;  %v1567_v18 = vadd.f32 %v4460_v5, %v1302_v12  ;;  %v1961_v44 = vmul.f32 %v1903_v33, %v1729_v13  ;;  %v1733_v13 = vmul.f32 0.2, %v4792_v46  ;;  %v4798_v46 = vld [vmem:[#allocation27_spill] sm:$0xff] }
 0x1cf   : > { %v1906_v2 = vsub.f32 1.0, %v3066_v25 }
 0x1d0   : > { %vm2074_vm2 = vcmp.gt.f32.partialorder %v2016_v52, 0.5  ;;  %v2017_v11 = vadd.f32 %v1959_v47, %v1567_v18  ;;  %2133 = vst.msk [vmem:[%s3960_s22 + $0x150] sm:$0xff] %vm2090_vm1, %v2016_v52 }
 0x1d1   : > { %v2834_v10 = vsel %vm2074_vm2, 1.0, %v4759_v61  ;;  %v1306_v0 = vpop.f32.mrb[88].mxu0 }
 0x1d2   : > { %v2952_v5 = vpack.c.bf16 %v2834_v10, %v2834_v10  ;;  %vm2075_vm4 = vcmp.gt.f32.partialorder %v2017_v11, 0.5  ;;  %v1307_v37 = vadd.f32 %v4352_v4, %v1306_v0  ;;  %v1308_v54 = vpop.f32.mrb[89].mxu0  ;;  %2134 = vst.msk [vmem:[%s3960_s22 + $0x158] sm:$0xff] %vm2090_vm1, %v2017_v11  ;;  %v4562_v45 = vpop.f32.mrb[104].mxu1  ;;  %v4793_v0 = vld [vmem:[#allocation43_spill] sm:$0xff] }
 0x1d3   : > { %v2835_v50 = vsel %vm2075_vm4, 1.0, %v4759_v61  ;;  %v1309_v16 = vpop.f32.mrb[90].mxu0  ;;  %v3271_v6 = vpop.f32.mrb[105].mxu1  ;;  %v3070_v48 = vunpack.c.l.bf16 %v4793_v0 }
 0x1d4   : > { %2540 = vst.msk [vmem:[%s4060_s25 + $0xa8] sm:$0xf] %vm2497_vm3, %v2952_v5  ;;  %v2953_v34 = vpack.c.bf16 %v2835_v50, %v2835_v50  ;;  %v1572_v1 = vadd.f32 %v4474_v35, %v1307_v37  ;;  %v1310_v38 = vadd.f32 %v4352_v4, %v1309_v16  ;;  %v1311_v59 = vpop.f32.mrb[91].mxu0  ;;  %v4569_v47 = vpop.f32.mrb[106].mxu1  ;;  %v1964_v37 = vmul.f32 %v1906_v2, %v1732_v14 }
 0x1d5   : > { %v3272_v17 = vpop.f32.mrb[107].mxu1  ;;  %v3071_v16 = vunpack.c.h.bf16 %v4793_v0  ;;  %v1908_v60 = vsub.f32 1.0, %v3070_v48  ;;  %v1736_v14 = vmul.f32 0.2, %v4797_v30 }
 0x1d6   : > { %2541 = vst.msk [vmem:[%s4060_s25 + $0xac] sm:$0xf] %vm2497_vm3, %v2953_v34  ;;  %v2018_v24 = vadd.f32 %v1960_v43, %v1572_v1  ;;  %v1575_v49 = vadd.f32 %v4481_v39, %v1310_v38 }
 0x1d7   : > { %v1909_v57 = vsub.f32 1.0, %v3071_v16 }
 0x1d8   : > { %vm2076_vm5 = vcmp.gt.f32.partialorder %v2018_v24, 0.5  ;;  %v2019_v32 = vadd.f32 %v1961_v44, %v1575_v49  ;;  %2135 = vst.msk [vmem:[%s3960_s22 + $0x160] sm:$0xff] %vm2090_vm1, %v2018_v24 }
 0x1d9   : > { %v2836_v35 = vsel %vm2076_vm5, 1.0, %v4759_v61  ;;  %v1314_v9 = vpop.f32.mrb[92].mxu0 }
 0x1da   : > { %v2954_v27 = vpack.c.bf16 %v2836_v35, %v2836_v35  ;;  %vm2077_vm6 = vcmp.gt.f32.partialorder %v2019_v32, 0.5  ;;  %v1315_v7 = vadd.f32 %v4352_v4, %v1314_v9  ;;  %v1316_v39 = vpop.f32.mrb[93].mxu0  ;;  %2136 = vst.msk [vmem:[%s3960_s22 + $0x168] sm:$0xff] %vm2090_vm1, %v2019_v32  ;;  %v4585_v15 = vpop.f32.mrb[108].mxu1  ;;  %v1966_v9 = vmul.f32 %v1908_v60, %v1734_v26  ;;  %v4801_v26 = vld [vmem:[#allocation29_spill] sm:$0xff] }
 0x1db   : > { %v2837_v58 = vsel %vm2077_vm6, 1.0, %v4759_v61  ;;  %v1317_v29 = vpop.f32.mrb[94].mxu0  ;;  %v3275_v54 = vpop.f32.mrb[109].mxu1  ;;  %v4796_v39 = vld [vmem:[#allocation44_spill] sm:$0xff]  ;;  %v1739_v60 = vmul.f32 0.2, %v4801_v26 }
 0x1dc   : > { %2542 = vst.msk [vmem:[%s4060_s25 + $0xb0] sm:$0xf] %vm2497_vm3, %v2954_v27  ;;  %v2955_v41 = vpack.c.bf16 %v2837_v58, %v2837_v58  ;;  %v1580_v36 = vadd.f32 %v4497_v55, %v1315_v7  ;;  %v1318_v12 = vadd.f32 %v4352_v4, %v1317_v29  ;;  %v1319_v62 = vpop.f32.mrb[95].mxu0  ;;  %v1907_v55 = vsub.f32 1.0, %v3067_v56  ;;  %v4592_v23 = vpop.f32.mrb[110].mxu1 }
 0x1dd   : > { %v3276_v20 = vpop.f32.mrb[111].mxu1  ;;  %v3074_v19 = vunpack.c.l.bf16 %v4796_v39  ;;  %v1967_v29 = vmul.f32 %v1909_v57, %v1735_v8  ;;  %v3075_v56 = vunpack.c.h.bf16 %v4796_v39 }
 0x1de   : > { %2543 = vst.msk [vmem:[%s4060_s25 + $0xb4] sm:$0xf] %vm2497_vm3, %v2955_v41  ;;  %v2020_v52 = vadd.f32 %v1962_v21, %v1580_v36  ;;  %v1583_v18 = vadd.f32 %v4504_v28, %v1318_v12  ;;  %v1965_v44 = vmul.f32 %v1907_v55, %v1733_v13 }
 0x1df   : > { %v1910_v2 = vsub.f32 1.0, %v3074_v19  ;;  %v1911_v13 = vsub.f32 1.0, %v3075_v56  ;;  %v4804_v56 = vld [vmem:[#allocation31_spill] sm:$0xff] }
 0x1e0   : > { %vm2078_vm7 = vcmp.gt.f32.partialorder %v2020_v52, 0.5  ;;  %v2021_v11 = vadd.f32 %v1963_v31, %v1583_v18  ;;  %2137 = vst.msk [vmem:[%s3960_s22 + $0x170] sm:$0xff] %vm2090_vm1, %v2020_v52 }
 0x1e1   : > { %v2838_v33 = vsel %vm2078_vm7, 1.0, %v4759_v61  ;;  %v1322_v10 = vpop.f32.mrb[96].mxu0 }
 0x1e2   : > { %v2956_v28 = vpack.c.bf16 %v2838_v33, %v2838_v33  ;;  %vm2079_vm8 = vcmp.gt.f32.partialorder %v2021_v11, 0.5  ;;  %v1323_v5 = vadd.f32 %v4352_v4, %v1322_v10  ;;  %v1324_v43 = vpop.f32.mrb[97].mxu0  ;;  %2138 = vst.msk [vmem:[%s3960_s22 + $0x178] sm:$0xff] %vm2090_vm1, %v2021_v11  ;;  %v4606_v21 = vpop.f32.mrb[112].mxu1  ;;  %v4799_v10 = vld [vmem:[#allocation45_spill] sm:$0xff] }
 0x1e3   : > { %v2839_v3 = vsel %vm2079_vm8, 1.0, %v4759_v61  ;;  %v1325_v50 = vpop.f32.mrb[98].mxu0  ;;  %v3279_v25 = vpop.f32.mrb[113].mxu1  ;;  %v3078_v0 = vunpack.c.l.bf16 %v4799_v10  ;;  %v3079_v54 = vunpack.c.h.bf16 %v4799_v10 }
 0x1e4   : > { %2544 = vst.msk [vmem:[%s4060_s25 + $0xb8] sm:$0xf] %vm2497_vm3, %v2956_v28  ;;  %v2957_v34 = vpack.c.bf16 %v2839_v3, %v2839_v3  ;;  %v1588_v1 = vadd.f32 %v4518_v40, %v1323_v5  ;;  %v1326_v38 = vadd.f32 %v4352_v4, %v1325_v50  ;;  %v1327_v59 = vpop.f32.mrb[99].mxu0  ;;  %v4613_v31 = vpop.f32.mrb[114].mxu1  ;;  %v1968_v28 = vmul.f32 %v1910_v2, %v1736_v14 }
 0x1e5   : > { %v3280_v17 = vpop.f32.mrb[115].mxu1  ;;  %v1912_v59 = vsub.f32 1.0, %v3078_v0 }
 0x1e6   : > { %2545 = vst.msk [vmem:[%s4060_s25 + $0xbc] sm:$0xf] %vm2497_vm3, %v2957_v34  ;;  %v2022_v24 = vadd.f32 %v1964_v37, %v1588_v1  ;;  %v1591_v49 = vadd.f32 %v4525_v53, %v1326_v38  ;;  %v4800_v38 = vld [vmem:[#allocation28_spill] sm:$0xff]  ;;  %v1741_v17 = vmul.f32 0.2, %v4804_v56 }
 0x1e8   : > { %vm2080_vm9 = vcmp.gt.f32.partialorder %v2022_v24, 0.5  ;;  %v2023_v32 = vadd.f32 %v1965_v44, %v1591_v49  ;;  %2139 = vst.msk [vmem:[%s3960_s22 + $0x180] sm:$0xff] %vm2090_vm1, %v2022_v24  ;;  %v1738_v44 = vmul.f32 0.2, %v4800_v38  ;;  %v1913_v24 = vsub.f32 1.0, %v3079_v54 }
 0x1e9   : > { %v2840_v40 = vsel %vm2080_vm9, 1.0, %v4759_v61  ;;  %v1330_v35 = vpop.f32.mrb[100].mxu0 }
 0x1ea   : > { %v2958_v27 = vpack.c.bf16 %v2840_v40, %v2840_v40  ;;  %vm2081_vm10 = vcmp.gt.f32.partialorder %v2023_v32, 0.5  ;;  %v1331_v7 = vadd.f32 %v4352_v4, %v1330_v35  ;;  %v1332_v53 = vpop.f32.mrb[101].mxu0  ;;  %2140 = vst.msk [vmem:[%s3960_s22 + $0x188] sm:$0xff] %vm2090_vm1, %v2023_v32  ;;  %v1970_v8 = vmul.f32 %v1912_v59, %v1738_v44  ;;  %v4802_v35 = vld [vmem:[#allocation46_spill] sm:$0xff] }
 0x1eb   : > { %v2841_v6 = vsel %vm2081_vm10, 1.0, %v4759_v61  ;;  %v1333_v58 = vpop.f32.mrb[102].mxu0 }
 0x1ec   : > { %2546 = vst.msk [vmem:[%s4060_s25 + $0xc0] sm:$0xf] %vm2497_vm3, %v2958_v27  ;;  %v2959_v41 = vpack.c.bf16 %v2841_v6, %v2841_v6  ;;  %v1596_v36 = vadd.f32 %v4541_v51, %v1331_v7  ;;  %v1334_v12 = vadd.f32 %v4352_v4, %v1333_v58  ;;  %v1335_v62 = vpop.f32.mrb[103].mxu0  ;;  %v1737_v51 = vmul.f32 0.2, %v4798_v46 }
 0x1ed   : > { %v1971_v7 = vmul.f32 %v1913_v24, %v1739_v60  ;;  %v3083_v6 = vunpack.c.h.bf16 %v4802_v35 }
 0x1ee   : > { %2547 = vst.msk [vmem:[%s4060_s25 + $0xc4] sm:$0xf] %vm2497_vm3, %v2959_v41  ;;  %v2024_v52 = vadd.f32 %v1966_v9, %v1596_v36  ;;  %v1599_v18 = vadd.f32 %v4548_v42, %v1334_v12  ;;  %v1969_v34 = vmul.f32 %v1911_v13, %v1737_v51  ;;  %v4803_v41 = vld [vmem:[#allocation30_spill] sm:$0xff] }
 0x1ef   : > { %v1740_v36 = vmul.f32 0.2, %v4803_v41 }
 0x1f0   : > { %vm2082_vm11 = vcmp.gt.f32.partialorder %v2024_v52, 0.5  ;;  %v2025_v11 = vadd.f32 %v1967_v29, %v1599_v18  ;;  %2141 = vst.msk [vmem:[%s3960_s22 + $0x190] sm:$0xff] %vm2090_vm1, %v2024_v52 }
 0x1f1   : > { %v2842_v55 = vsel %vm2082_vm11, 1.0, %v4759_v61  ;;  %v1338_v33 = vpop.f32.mrb[104].mxu0 }
 0x1f2   : > { %v2960_v48 = vpack.c.bf16 %v2842_v55, %v2842_v55  ;;  %vm2083_vm12 = vcmp.gt.f32.partialorder %v2025_v11, 0.5  ;;  %v1339_v42 = vadd.f32 %v4352_v4, %v1338_v33  ;;  %v1340_v5 = vpop.f32.mrb[105].mxu0  ;;  %2142 = vst.msk [vmem:[%s3960_s22 + $0x198] sm:$0xff] %vm2090_vm1, %v2025_v11 }
 0x1f3   : > { %v2843_v37 = vsel %vm2083_vm12, 1.0, %v4759_v61  ;;  %v1341_v43 = vpop.f32.mrb[106].mxu0 }
 0x1f4   : > { %2548 = vst.msk [vmem:[%s4060_s25 + $0xc8] sm:$0xf] %vm2497_vm3, %v2960_v48  ;;  %v2961_v3 = vpack.c.bf16 %v2843_v37, %v2843_v37  ;;  %v1604_v50 = vadd.f32 %v4562_v45, %v1339_v42  ;;  %v1342_v16 = vadd.f32 %v4352_v4, %v1341_v43  ;;  %v1343_v1 = vpop.f32.mrb[107].mxu0 }
 0x1f6   : > { %2549 = vst.msk [vmem:[%s4060_s25 + $0xcc] sm:$0xf] %vm2497_vm3, %v2961_v3  ;;  %v2026_v20 = vadd.f32 %v1968_v28, %v1604_v50  ;;  %v1607_v22 = vadd.f32 %v4569_v47, %v1342_v16  ;;  %v3082_v47 = vunpack.c.l.bf16 %v4802_v35 }
 0x1f8   : > { %vm2084_vm13 = vcmp.gt.f32.partialorder %v2026_v20, 0.5  ;;  %v2027_v49 = vadd.f32 %v1969_v34, %v1607_v22  ;;  %2143 = vst.msk [vmem:[%s3960_s22 + $0x1a0] sm:$0xff] %vm2090_vm1, %v2026_v20  ;;  %v1914_v12 = vsub.f32 1.0, %v3082_v47 }
 0x1f9   : > { %v2844_v45 = vsel %vm2084_vm13, 1.0, %v4759_v61  ;;  %v1346_v63 = vpop.f32.mrb[108].mxu0 }
 0x1fa   : > { %v2962_v57 = vpack.c.bf16 %v2844_v45, %v2844_v45  ;;  %vm2085_vm14 = vcmp.gt.f32.partialorder %v2027_v49, 0.5  ;;  %v1347_v32 = vadd.f32 %v4352_v4, %v1346_v63  ;;  %v1348_v40 = vpop.f32.mrb[109].mxu0  ;;  %2144 = vst.msk [vmem:[%s3960_s22 + $0x1a8] sm:$0xff] %vm2090_vm1, %v2027_v49 }
 0x1fb   : > { %v2845_v9 = vsel %vm2085_vm14, 1.0, %v4759_v61  ;;  %v1349_v27 = vpop.f32.mrb[110].mxu0 }
 0x1fc   : > { %2550 = vst.msk [vmem:[%s4060_s25 + $0xd0] sm:$0xf] %vm2497_vm3, %v2962_v57  ;;  %v2963_v53 = vpack.c.bf16 %v2845_v9, %v2845_v9  ;;  %v1612_v39 = vadd.f32 %v4585_v15, %v1347_v32  ;;  %v1350_v19 = vadd.f32 %v4352_v4, %v1349_v27  ;;  %v1351_v25 = vpop.f32.mrb[111].mxu0  ;;  %v1915_v15 = vsub.f32 1.0, %v3083_v6 }
 0x1fe   : > { %2551 = vst.msk [vmem:[%s4060_s25 + $0xd4] sm:$0xf] %vm2497_vm3, %v2963_v53  ;;  %v2028_v58 = vadd.f32 %v1970_v8, %v1612_v39  ;;  %v1615_v29 = vadd.f32 %v4592_v23, %v1350_v19  ;;  %v1972_v23 = vmul.f32 %v1914_v12, %v1740_v36  ;;  %v1973_v33 = vmul.f32 %v1915_v15, %v1741_v17 }
 0x200   : > { %vm2086_vm15 = vcmp.gt.f32.partialorder %v2028_v58, 0.5  ;;  %v2029_v62 = vadd.f32 %v1971_v7, %v1615_v29  ;;  %2145 = vst.msk [vmem:[%s3960_s22 + $0x1b0] sm:$0xff] %vm2090_vm1, %v2028_v58 }
 0x201   : > { %v2846_v52 = vsel %vm2086_vm15, 1.0, %v4759_v61  ;;  %v1354_v18 = vpop.f32.mrb[112].mxu0 }
 0x202   : > { %v2964_v30 = vpack.c.bf16 %v2846_v52, %v2846_v52  ;;  %vm2087_vm0 = vcmp.gt.f32.partialorder %v2029_v62, 0.5  ;;  %v1355_v14 = vadd.f32 %v4352_v4, %v1354_v18  ;;  %v1356_v2 = vpop.f32.mrb[113].mxu0  ;;  %2146 = vst.msk [vmem:[%s3960_s22 + $0x1b8] sm:$0xff] %vm2090_vm1, %v2029_v62 }
 0x203   : > { %v2847_v11 = vsel %vm2087_vm0, 1.0, %v4759_v61  ;;  %v1357_v46 = vpop.f32.mrb[114].mxu0 }
 0x204   : > { %2552 = vst.msk [vmem:[%s4060_s25 + $0xd8] sm:$0xf] %vm2497_vm3, %v2964_v30  ;;  %v2965_v51 = vpack.c.bf16 %v2847_v11, %v2847_v11  ;;  %v1620_v13 = vadd.f32 %v4606_v21, %v1355_v14  ;;  %v1358_v55 = vadd.f32 %v4352_v4, %v1357_v46  ;;  %v1359_v10 = vpop.f32.mrb[115].mxu0 }
 0x206   : > { %2553 = vst.msk [vmem:[%s4060_s25 + $0xdc] sm:$0xf] %vm2497_vm3, %v2965_v51  ;;  %v2030_v0 = vadd.f32 %v1972_v23, %v1620_v13  ;;  %v1623_v48 = vadd.f32 %v4613_v31, %v1358_v55 }
 0x208   : > { %vm2088_vm2 = vcmp.gt.f32.partialorder %v2030_v0, 0.5  ;;  %v2031_v42 = vadd.f32 %v1973_v33, %v1623_v48  ;;  %2147 = vst.msk [vmem:[%s3960_s22 + $0x1c0] sm:$0xff] %vm2090_vm1, %v2030_v0 }
 0x209   : > { %v2848_v28 = vsel %vm2088_vm2, 1.0, %v4759_v61 }
 0x20a   : > { %v2966_v5 = vpack.c.bf16 %v2848_v28, %v2848_v28  ;;  %vm2089_vm4 = vcmp.gt.f32.partialorder %v2031_v42, 0.5  ;;  %2148 = vst.msk [vmem:[%s3960_s22 + $0x1c8] sm:$0xff] %vm2090_vm1, %v2031_v42 }
 0x20b   : > { %v2849_v4 = vsel %vm2089_vm4, 1.0, %v4759_v61 }
 0x20c   : > { %2554 = vst.msk [vmem:[%s4060_s25 + $0xe0] sm:$0xf] %vm2497_vm3, %v2966_v5  ;;  %v2967_v21 = vpack.c.bf16 %v2849_v4, %v2849_v4 }
 0x20e   : > { %2555 = vst.msk [vmem:[%s4060_s25 + $0xe4] sm:$0xf] %vm2497_vm3, %v2967_v21 }
 0x20f PF: > { %s17_s21 = sadd.s32 1, %s3440_s21  }
 0x210   : > { %p14_p4 = scmp.ge.s32.totalorder %s17_s21, 4  }
 0x212   :  { %16 = sbr.rel (!%p14_p4) target bundleno = 1 (0x1), region = 88 }

// kernel: closed_call.59
= control target key start
LH: loop header
LB: loop body
LE: loop exit
PB: predicated region body
PF: predicated region fallthrough
CT: control target
= control target key end

     0   :  { %s1660_s21 = smov 0   ;;  %s1988_s0 = inlined_call_operand.vmem [shape: bf16[224,512], index: 0, kind: input, shape index: {}]   ;;  %s1989_s1 = inlined_call_operand.vmem [shape: bf16[512,32], index: 1, kind: input, shape index: {}]   ;;  %s1990_s2 = inlined_call_operand.vmem [shape: f32[1,32], index: 2, kind: input, shape index: {}]   ;;  %s1991_s3 = inlined_call_operand.vmem [shape: f32[224,32], index: 3, kind: input, shape index: {}, may-alias: {3,5}]   ;;  %s1992_s4 = inlined_call_operand.vmem [shape: bf16[224,32], index: 4, kind: input, shape index: {}, may-alias: {4,6}]   ;;  %s1993_s5 = inlined_call_operand.vmem [shape: f32[224,32], index: 5, kind: output, shape index: {0}, may-alias: {3,5}]   ;;  %s1994_s6 = inlined_call_operand.vmem [shape: bf16[224,32], index: 6, kind: output, shape index: {1}, may-alias: {4,6}]  }
   0x1 LB: > { %s1266_s22 = sadd.s32 4294967295, %s1622_s21   ;;  %p1270_p0 = scmp.ge.s32.totalorder %s1622_s21, 1  ;;  %s1622_s21 = sphi %s1660_s21, %s17_s21  }
   0x2   : > { %p239_p1 = scmp.lt.s32.totalorder %s1622_s21, 3 }
   0x4   : > { %p240_p2 = pnand %p1270_p0, %p239_p1 }
   0x5   : > { %v1542_v0 = vld [vmem:[%s1989_s1 + $0x40] sm:$0xff] (!%p240_p2)   ;;  %v1546_v4 = vld [vmem:[%s1989_s1 + $0x48] sm:$0xff] (!%p240_p2)   ;;  %v1550_v8 = vld [vmem:[%s1989_s1 + $0x50] sm:$0xff] (!%p240_p2)   ;;  %s285_s7 = smul.u32 (!%p240_p2), 14, %s1266_s22  ;;  %vm1038_vm0 = vcmask (!%p240_p2), 261120   ;;  %vm1137_vm2 = vcmask (!%p240_p2), 257024  }
   0x6   : > { %243 = sbr.rel (%p240_p2) target bundleno = 315 (0x13b), region = 40  ;;  %v1543_v1 = vld [vmem:[%s1989_s1 + $0xc0] sm:$0xff] (!%p240_p2)   ;;  %1417 = vmatprep.subr.bf16.mxu0 (!%p240_p2), %v1542_v0  ;;  %v1547_v5 = vld [vmem:[%s1989_s1 + $0xc8] sm:$0xff] (!%p240_p2)   ;;  %v1551_v9 = vld [vmem:[%s1989_s1 + $0xd0] sm:$0xff] (!%p240_p2)  }
   0x7   : > { %v1544_v2 = vld [vmem:[%s1989_s1] sm:$0xff] (!%p240_p2)   ;;  %1475 = vmatprep.subr.bf16.mxu1 (!%p240_p2), %v1543_v1  ;;  %v1548_v6 = vld [vmem:[%s1989_s1 + $0x8] sm:$0xff] (!%p240_p2)   ;;  %v1552_v10 = vld [vmem:[%s1989_s1 + $0x10] sm:$0xff] (!%p240_p2)   ;;  %p286_p3 = scmp.lt.s32.totalorder (!%p240_p2), %s285_s7, 27 }
   0x8   : > { %v1545_v3 = vld [vmem:[%s1989_s1 + $0x80] sm:$0xff] (!%p240_p2)   ;;  %1418 = vmatpush3.bf16.msra.mxu0 (!%p240_p2), %v1544_v2  ;;  %v1549_v7 = vld [vmem:[%s1989_s1 + $0x88] sm:$0xff] (!%p240_p2)   ;;  %v1553_v11 = vld [vmem:[%s1989_s1 + $0x90] sm:$0xff] (!%p240_p2)  }
   0x9   : > { %1476 = vmatpush3.bf16.msra.mxu1 (!%p240_p2), %v1545_v3  ;;  %1419 = vmatprep.subr.bf16.mxu0 (!%p240_p2), %v1546_v4  ;;  %v1554_v12 = vld [vmem:[%s1989_s1 + $0x58] sm:$0xff] (!%p240_p2)   ;;  %v1558_v16 = vld [vmem:[%s1989_s1 + $0x60] sm:$0xff] (!%p240_p2)   ;;  %v1562_v20 = vld [vmem:[%s1989_s1 + $0x68] sm:$0xff] (!%p240_p2)  }
   0xa   : > { %1477 = vmatprep.subr.bf16.mxu1 (!%p240_p2), %v1547_v5  ;;  %v1555_v13 = vld [vmem:[%s1989_s1 + $0xd8] sm:$0xff] (!%p240_p2)   ;;  %v1559_v17 = vld [vmem:[%s1989_s1 + $0xe0] sm:$0xff] (!%p240_p2)   ;;  %v1563_v21 = vld [vmem:[%s1989_s1 + $0xe8] sm:$0xff] (!%p240_p2)  }
   0xb   : > { %v1556_v14 = vld [vmem:[%s1989_s1 + $0x18] sm:$0xff] (!%p240_p2)   ;;  %v1560_v18 = vld [vmem:[%s1989_s1 + $0x20] sm:$0xff] (!%p240_p2)   ;;  %v1564_v22 = vld [vmem:[%s1989_s1 + $0x28] sm:$0xff] (!%p240_p2)  }
   0xc   : > { %1420 = vmatpush3.bf16.msra.mxu0 (!%p240_p2), %v1548_v6  ;;  %v1557_v15 = vld [vmem:[%s1989_s1 + $0x98] sm:$0xff] (!%p240_p2)   ;;  %v1561_v19 = vld [vmem:[%s1989_s1 + $0xa0] sm:$0xff] (!%p240_p2)   ;;  %v1565_v23 = vld [vmem:[%s1989_s1 + $0xa8] sm:$0xff] (!%p240_p2)  }
   0xd   : > { %1478 = vmatpush3.bf16.msra.mxu1 %v1549_v7  ;;  %1421 = vmatprep.subr.bf16.mxu0 %v1550_v8  ;;  %s1996_s7 = smov (!%p286_p3, %s285_s7), 27  ;;  %v1566_v24 = vld [vmem:[%s1989_s1 + $0x70] sm:$0xff]   ;;  %v1570_v28 = vld [vmem:[%s1989_s1 + $0x78] sm:$0xff]   ;;  %v1825_v6 = vld [vmem:[%s1990_s2] ss:$0 sm:$0xff] }
   0xe   : > { %1479 = vmatprep.subr.bf16.mxu1 %v1551_v9  ;;  %v1567_v25 = vld [vmem:[%s1989_s1 + $0xf0] sm:$0xff]   ;;  %s1368_s10 = sshll.u32 %s1996_s7, 4  ;;  %v1571_v29 = vld [vmem:[%s1989_s1 + $0xf8] sm:$0xff]   ;;  %s1274_s25 = sshll.u32 %s1996_s7, 2 }
   0xf   : > { %v1568_v26 = vld [vmem:[%s1989_s1 + $0x30] sm:$0xff]   ;;  %s1766_s18 = scalar_lea.vmem %s1988_s0, %s1368_s10  ;;  %v1572_v30 = vld [vmem:[%s1989_s1 + $0x38] sm:$0xff]   ;;  %s1808_s28 = scalar_lea.vmem %s1992_s4, %s1274_s25 }
  0x10   : > { %1422 = vmatpush3.bf16.msra.mxu0 %v1552_v10  ;;  %v1569_v27 = vld [vmem:[%s1989_s1 + $0xb0] sm:$0xff]   ;;  %v1573_v31 = vld [vmem:[%s1989_s1 + $0xb8] sm:$0xff]   ;;  %s1273_s29 = sshll.u32 %s1996_s7, 3  ;;  %v1384_v60 = vld [vmem:[%s1808_s28] sm:$0xff]   ;;  %s1877_s16 = scalar_lea.vmem %s1994_s6, %s1274_s25 }
  0x11   : > { %1480 = vmatpush3.bf16.msra.mxu1 %v1553_v11  ;;  %1423 = vmatprep.subr.bf16.mxu0 %v1554_v12  ;;  %v1574_v32 = vld [vmem:[%s1766_s18] ss:$16 sps:$4 sm:$0xff]   ;;  %v1576_v33 = vld [vmem:[%s1766_s18 + $0x4] ss:$16 sps:$4 sm:$0xff]   ;;  %v1577_v34 = vld [vmem:[%s1766_s18 + $0x8] ss:$16 sps:$4 sm:$0xff]   ;;  %s1817_s9 = scalar_lea.vmem %s1991_s3, %s1273_s29  ;;  %v1385_v61 = vunpack.c.l.bf16 %v1384_v60  ;;  %v1386_v63 = vunpack.c.h.bf16 %v1384_v60  ;;  %s1855_s14 = scalar_lea.vmem %s1993_s5, %s1273_s29 }
  0x12   : > { %1481 = vmatprep.subr.bf16.mxu1 %v1555_v13  ;;  %v1579_v35 = vld [vmem:[%s1766_s18 + $0xc] ss:$16 sps:$4 sm:$0xff]   ;;  %780 = vmatprep.mubr.bf16.mxu0 %v1576_v33  ;;  %v1580_v36 = vld [vmem:[%s1766_s18 + $0x24] ss:$16 sps:$4 sm:$0xff]   ;;  %v1584_v38 = vld [vmem:[%s1766_s18 + $0x20] ss:$16 sps:$4 sm:$0xff]  }
  0x13   : > { %869 = vmatprep.mubr.bf16.mxu1 %v1579_v35  ;;  %v1582_v37 = vld [vmem:[%s1766_s18 + $0x2c] ss:$16 sps:$4 sm:$0xff]   ;;  %v1585_v39 = vld [vmem:[%s1766_s18 + $0x28] ss:$16 sps:$4 sm:$0xff]   ;;  %v1586_v40 = vld [vmem:[%s1766_s18 + $0x44] ss:$16 sps:$4 sm:$0xff]  }
  0x14   : > { %1424 = vmatpush3.bf16.msra.mxu0 %v1556_v14  ;;  %v1588_v41 = vld [vmem:[%s1766_s18 + $0x4c] ss:$16 sps:$4 sm:$0xff]   ;;  %v1590_v42 = vld [vmem:[%s1766_s18 + $0x40] ss:$16 sps:$4 sm:$0xff]   ;;  %v1591_v43 = vld [vmem:[%s1766_s18 + $0x48] ss:$16 sps:$4 sm:$0xff]  }
  0x15   : > { %1482 = vmatpush3.bf16.msra.mxu1 %v1557_v15  ;;  %1425 = vmatprep.subr.bf16.mxu0 %v1558_v16  ;;  %v1592_v44 = vld [vmem:[%s1766_s18 + $0x64] ss:$16 sps:$4 sm:$0xff]   ;;  %v1594_v45 = vld [vmem:[%s1766_s18 + $0x6c] ss:$16 sps:$4 sm:$0xff]   ;;  %v1596_v46 = vld [vmem:[%s1766_s18 + $0x60] ss:$16 sps:$4 sm:$0xff]  }
  0x16   : > { %1483 = vmatprep.subr.bf16.mxu1 %v1559_v17  ;;  %v1597_v47 = vld [vmem:[%s1766_s18 + $0x68] ss:$16 sps:$4 sm:$0xff]   ;;  %v1598_v48 = vld [vmem:[%s1766_s18 + $0x84] ss:$16 sps:$4 sm:$0xff]   ;;  %v1600_v49 = vld [vmem:[%s1766_s18 + $0x8c] ss:$16 sps:$4 sm:$0xff]  }
  0x17   : > { %v1602_v50 = vld [vmem:[%s1766_s18 + $0x80] ss:$16 sps:$4 sm:$0xff]   ;;  %v1603_v51 = vld [vmem:[%s1766_s18 + $0x88] ss:$16 sps:$4 sm:$0xff]   ;;  %v1604_v52 = vld [vmem:[%s1766_s18 + $0xa4] ss:$16 sps:$4 sm:$0xff]  }
  0x18   : > { %1426 = vmatpush3.bf16.msra.mxu0 %v1560_v18  ;;  %v1606_v53 = vld [vmem:[%s1766_s18 + $0xac] ss:$16 sps:$4 sm:$0xff]   ;;  %v1608_v54 = vld [vmem:[%s1766_s18 + $0xa0] ss:$16 sps:$4 sm:$0xff]   ;;  %v1609_v55 = vld [vmem:[%s1766_s18 + $0xa8] ss:$16 sps:$4 sm:$0xff]  }
  0x19   : > { %1484 = vmatpush3.bf16.msra.mxu1 %v1561_v19  ;;  %1427 = vmatprep.subr.bf16.mxu0 %v1562_v20  ;;  %v1610_v56 = vld [vmem:[%s1766_s18 + $0xc4] ss:$16 sps:$4 sm:$0xff]   ;;  %v1612_v57 = vld [vmem:[%s1766_s18 + $0xcc] ss:$16 sps:$4 sm:$0xff]   ;;  %v1614_v58 = vld [vmem:[%s1766_s18 + $0xc0] ss:$16 sps:$4 sm:$0xff]  }
  0x1a   : > { %1485 = vmatprep.subr.bf16.mxu1 %v1563_v21  ;;  %v1615_v59 = vld [vmem:[%s1766_s18 + $0xc8] ss:$16 sps:$4 sm:$0xff]   ;;  %v926_v62 = vld [vmem:[%s1817_s9] sm:$0xff]  ;;  %v982_v4 = vsub.f32 1.0, %v1385_v61  ;;  %v983_v12 = vsub.f32 1.0, %v1386_v63  ;;  %v928_v21 = vld [vmem:[%s1817_s9 + $0x10] sm:$0xff] }
  0x1b   : > { %v927_v0 = vld [vmem:[%s1817_s9 + $0x8] sm:$0xff]  ;;  %v940_v2 = vmul.f32 0.2, %v926_v62  ;;  %v942_v35 = vmul.f32 0.2, %v928_v21 }
  0x1c   : > { %1428 = vmatpush3.bf16.msra.mxu0 %v1564_v22  ;;  %v1411_v3 = vld [vmem:[%s1808_s28 + $0x8] sm:$0xff]   ;;  %v941_v11 = vmul.f32 0.2, %v927_v0 }
  0x1d   : > { %1486 = vmatpush3.bf16.msra.mxu1 %v1565_v23  ;;  %1429 = vmatprep.subr.bf16.mxu0 %v1566_v24  ;;  %v1389_v16 = vunpack.c.l.bf16 %v1411_v3  ;;  %v996_v18 = vmul.f32 %v982_v4, %v940_v2  ;;  %v929_v23 = vld [vmem:[%s1817_s9 + $0x18] sm:$0xff]  ;;  %v1390_v24 = vunpack.c.h.bf16 %v1411_v3  ;;  %v1845_v33 = vld [vmem:[%s1817_s9 + $0x48] sm:$0xff] }
  0x1e   : > { %1487 = vmatprep.subr.bf16.mxu1 %v1567_v25  ;;  %v930_v25 = vld [vmem:[%s1817_s9 + $0x20] sm:$0xff] }
  0x20   : > { %1430 = vmatpush3.bf16.msra.mxu0 %v1568_v26  ;;  %v1832_v26 = vld [vmem:[%s1817_s9 + $0x28] sm:$0xff] }
  0x21   : > { %1488 = vmatpush3.bf16.msra.mxu1 %v1569_v27  ;;  %1431 = vmatprep.subr.bf16.mxu0 %v1570_v28  ;;  %v1835_v27 = vld [vmem:[%s1817_s9 + $0x30] sm:$0xff]  ;;  %v1838_v28 = vld [vmem:[%s1817_s9 + $0x38] sm:$0xff] }
  0x22   : > { %1489 = vmatprep.subr.bf16.mxu1 %v1571_v29 }
  0x24   : > { %1432 = vmatpush3.bf16.msra.mxu0 %v1572_v30 }
  0x25   : > { %1490 = vmatpush3.bf16.msra.mxu1 %v1573_v31  ;;  %v997_v31 = vmul.f32 %v983_v12, %v941_v11  ;;  %v944_v11 = vmul.f32 0.2, %v930_v25 }
  0x27   : > { %781 = vmatmul.mubr.bf16.vlgmr.msra.gmra.mrb[0].mxu0 %v1574_v32  ;;  %v1842_v32 = vld [vmem:[%s1817_s9 + $0x40] sm:$0xff] }
  0x28   : > { %870 = vmatmul.mubr.bf16.vlgmr.msra.gmra.mrb[0].mxu1 %v1577_v34  ;;  %788 = vmatprep.mubr.bf16.mxu0 %v1580_v36  ;;  %v1848_v34 = vld [vmem:[%s1817_s9 + $0x50] sm:$0xff]  ;;  %v984_v36 = vsub.f32 1.0, %v1389_v16 }
  0x29   : > { %877 = vmatprep.mubr.bf16.mxu1 %v1582_v37  ;;  %v1858_v37 = vld [vmem:[%s1817_s9 + $0x58] sm:$0xff] }
  0x2f   : > { %789 = vmatmul.mubr.bf16.gmra.mrb[4].mxu0 %v1584_v38  ;;  %v1861_v38 = vld [vmem:[%s1817_s9 + $0x60] sm:$0xff] }
  0x30   : > { %878 = vmatmul.mubr.bf16.gmra.mrb[4].mxu1 %v1585_v39  ;;  %796 = vmatprep.mubr.bf16.mxu0 %v1586_v40  ;;  %v1864_v39 = vld [vmem:[%s1817_s9 + $0x68] sm:$0xff] }
  0x31   : > { %885 = vmatprep.mubr.bf16.mxu1 %v1588_v41 }
  0x37   : > { %797 = vmatmul.mubr.bf16.gmra.mrb[8].mxu0 %v1590_v42 }
  0x38   : > { %886 = vmatmul.mubr.bf16.gmra.mrb[8].mxu1 %v1591_v43  ;;  %804 = vmatprep.mubr.bf16.mxu0 %v1592_v44 }
  0x39   : > { %893 = vmatprep.mubr.bf16.mxu1 %v1594_v45  ;;  %v943_v45 = vmul.f32 0.2, %v929_v23 }
  0x3f   : > { %805 = vmatmul.mubr.bf16.gmra.mrb[12].mxu0 %v1596_v46  ;;  %v985_v46 = vsub.f32 1.0, %v1390_v24 }
  0x40   : > { %894 = vmatmul.mubr.bf16.gmra.mrb[12].mxu1 %v1597_v47  ;;  %812 = vmatprep.mubr.bf16.mxu0 %v1598_v48  ;;  %v1412_v47 = vld [vmem:[%s1808_s28 + $0x10] sm:$0xff]   ;;  %v1868_v48 = vld [vmem:[%s1808_s28 + $0x18] sm:$0xff]  }
  0x41   : > { %901 = vmatprep.mubr.bf16.mxu1 %v1600_v49  ;;  %v1393_v62 = vunpack.c.l.bf16 %v1412_v47 }
  0x43   : > { %v986_v12 = vsub.f32 1.0, %v1393_v62 }
  0x47   : > { %813 = vmatmul.mubr.bf16.gmra.mrb[16].mxu0 %v1602_v50 }
  0x48   : > { %902 = vmatmul.mubr.bf16.gmra.mrb[16].mxu1 %v1603_v51  ;;  %820 = vmatprep.mubr.bf16.mxu0 %v1604_v52 }
  0x49   : > { %909 = vmatprep.mubr.bf16.mxu1 %v1606_v53  ;;  %v1880_v53 = vld [vmem:[%s1808_s28 + $0x20] sm:$0xff]  }
  0x4f   : > { %821 = vmatmul.mubr.bf16.gmra.mrb[20].mxu0 %v1608_v54  ;;  %v1883_v54 = vld [vmem:[%s1808_s28 + $0x28] sm:$0xff]  }
  0x50   : > { %910 = vmatmul.mubr.bf16.gmra.mrb[20].mxu1 %v1609_v55  ;;  %828 = vmatprep.mubr.bf16.mxu0 %v1610_v56  ;;  %v1886_v55 = vld [vmem:[%s1808_s28 + $0x30] sm:$0xff]   ;;  %v1624_v56 = vmov 0.0  }
  0x51   : > { %917 = vmatprep.mubr.bf16.mxu1 %v1612_v57 }
  0x57   : > { %829 = vmatmul.mubr.bf16.gmra.mrb[24].mxu0 %v1614_v58 }
  0x58   : > { %918 = vmatmul.mubr.bf16.gmra.mrb[24].mxu1 %v1615_v59  ;;  %v998_v59 = vmul.f32 %v984_v36, %v942_v35  ;;  %v1397_v35 = vunpack.c.l.bf16 %v1868_v48 }
  0xfa   : > { %v1433_v1 = vpop.f32.mrb[0].mxu0 }
  0xfb   : > { %v1491_v5 = vpop.f32.mrb[0].mxu1  ;;  %v1434_v7 = vpop.f32.mrb[1].mxu0 }
  0xfc   : > { %v1435_v8 = vadd.f32 %v1434_v7, %v1433_v1  ;;  %v1492_v9 = vpop.f32.mrb[1].mxu1  ;;  %v1436_v10 = vpop.f32.mrb[2].mxu0 }
  0xfd   : > { %v1493_v13 = vadd.f32 %v1492_v9, %v1491_v5  ;;  %v1494_v14 = vpop.f32.mrb[2].mxu1  ;;  %v1437_v15 = vpop.f32.mrb[3].mxu0  ;;  %v999_v5 = vmul.f32 %v985_v46, %v943_v45 }
  0xfe   : > { %v783_v17 = vadd.f32 %v1435_v8, %v1825_v6  ;;  %v1438_v19 = vadd.f32 %v1437_v15, %v1436_v10  ;;  %v1495_v20 = vpop.f32.mrb[3].mxu1  ;;  %v1394_v10 = vunpack.c.h.bf16 %v1412_v47 }
  0xff   : > { %v1496_v22 = vadd.f32 %v1495_v20, %v1494_v14 }
 0x100   : > { %v872_v29 = vadd.f32 %v1493_v13, %v783_v17  ;;  %v786_v30 = vadd.f32 %v1438_v19, %v1825_v6  ;;  %v987_v23 = vsub.f32 1.0, %v1394_v10 }
 0x102   : > { %v1010_v40 = vadd.f32 %v996_v18, %v872_v29  ;;  %v875_v41 = vadd.f32 %v1496_v22, %v786_v30  ;;  %v1439_v42 = vpop.f32.mrb[4].mxu0  ;;  %v945_v18 = vmul.f32 0.2, %v1832_v26  ;;  %v1000_v29 = vmul.f32 %v986_v12, %v944_v11 }
 0x103   : > { %v1497_v43 = vpop.f32.mrb[4].mxu1  ;;  %v1440_v44 = vpop.f32.mrb[5].mxu0 }
 0x104   : > { %vm1024_vm1 = vcmp.gt.f32.partialorder %v1010_v40, 0.5  ;;  %v1011_v49 = vadd.f32 %v997_v31, %v875_v41  ;;  %v1441_v50 = vadd.f32 %v1440_v44, %v1439_v42  ;;  %v1498_v51 = vpop.f32.mrb[5].mxu1  ;;  %v1442_v52 = vpop.f32.mrb[6].mxu0  ;;  %1039 = vst.msk [vmem:[%s1855_s14] sm:$0xff] %vm1038_vm0, %v1010_v40  ;;  %v1398_v44 = vunpack.c.h.bf16 %v1868_v48 }
 0x105   : > { %v1338_v57 = vsel %vm1024_vm1, 1.0, %v1624_v56  ;;  %v1499_v58 = vadd.f32 %v1498_v51, %v1497_v43  ;;  %v1500_v60 = vpop.f32.mrb[6].mxu1  ;;  %v1443_v61 = vpop.f32.mrb[7].mxu0  ;;  %v988_v51 = vsub.f32 1.0, %v1397_v35  ;;  %v947_v48 = vmul.f32 0.2, %v1838_v28 }
 0x106   : > { %v1369_v63 = vpack.c.bf16 %v1338_v57, %v1338_v57  ;;  %vm1025_vm3 = vcmp.gt.f32.partialorder %v1011_v49, 0.5  ;;  %v791_v0 = vadd.f32 %v1441_v50, %v1825_v6  ;;  %v1444_v1 = vadd.f32 %v1443_v61, %v1442_v52  ;;  %v1501_v2 = vpop.f32.mrb[7].mxu1  ;;  %1040 = vst.msk [vmem:[%s1855_s14 + $0x8] sm:$0xff] %vm1038_vm0, %v1011_v49 }
 0x107   : > { %v1339_v3 = vsel %vm1025_vm3, 1.0, %v1624_v56  ;;  %v1502_v4 = vadd.f32 %v1501_v2, %v1500_v60  ;;  %v1001_v49 = vmul.f32 %v987_v23, %v945_v18  ;;  %v946_v50 = vmul.f32 0.2, %v1835_v27 }
 0x108   : > { %1138 = vst.msk [vmem:[%s1877_s16] sm:$0xf] %vm1137_vm2, %v1369_v63  ;;  %v1370_v7 = vpack.c.bf16 %v1339_v3, %v1339_v3  ;;  %v880_v8 = vadd.f32 %v1499_v58, %v791_v0  ;;  %v794_v9 = vadd.f32 %v1444_v1, %v1825_v6  ;;  %v989_v61 = vsub.f32 1.0, %v1398_v44 }
 0x109   : > { %v1002_v3 = vmul.f32 %v988_v51, %v946_v50  ;;  %v948_v18 = vmul.f32 0.2, %v1842_v32 }
 0x10a   : > { %1139 = vst.msk [vmem:[%s1877_s16 + $0x4] sm:$0xf] %vm1137_vm2, %v1370_v7  ;;  %v1012_v13 = vadd.f32 %v998_v59, %v880_v8  ;;  %v883_v14 = vadd.f32 %v1502_v4, %v794_v9  ;;  %v1445_v15 = vpop.f32.mrb[8].mxu0  ;;  %v1401_v7 = vunpack.c.l.bf16 %v1880_v53 }
 0x10b   : > { %v1503_v16 = vpop.f32.mrb[8].mxu1  ;;  %v1446_v17 = vpop.f32.mrb[9].mxu0 }
 0x10c   : > { %vm1026_vm4 = vcmp.gt.f32.partialorder %v1012_v13, 0.5  ;;  %v1013_v19 = vadd.f32 %v999_v5, %v883_v14  ;;  %v1447_v20 = vadd.f32 %v1446_v17, %v1445_v15  ;;  %v1504_v21 = vpop.f32.mrb[9].mxu1  ;;  %v1448_v22 = vpop.f32.mrb[10].mxu0  ;;  %1041 = vst.msk [vmem:[%s1855_s14 + $0x10] sm:$0xff] %vm1038_vm0, %v1012_v13  ;;  %v1003_v13 = vmul.f32 %v989_v61, %v947_v48 }
 0x10d   : > { %v1340_v24 = vsel %vm1026_vm4, 1.0, %v1624_v56  ;;  %v1505_v25 = vadd.f32 %v1504_v21, %v1503_v16  ;;  %v1506_v30 = vpop.f32.mrb[10].mxu1  ;;  %v1449_v31 = vpop.f32.mrb[11].mxu0  ;;  %v1402_v17 = vunpack.c.h.bf16 %v1880_v53 }
 0x10e   : > { %v1371_v36 = vpack.c.bf16 %v1340_v24, %v1340_v24  ;;  %vm1027_vm5 = vcmp.gt.f32.partialorder %v1013_v19, 0.5  ;;  %v799_v26 = vadd.f32 %v1447_v20, %v1825_v6  ;;  %v1450_v40 = vadd.f32 %v1449_v31, %v1448_v22  ;;  %v1507_v41 = vpop.f32.mrb[11].mxu1  ;;  %1042 = vst.msk [vmem:[%s1855_s14 + $0x18] sm:$0xff] %vm1038_vm0, %v1013_v19 }
 0x10f   : > { %v1341_v42 = vsel %vm1027_vm5, 1.0, %v1624_v56  ;;  %v1508_v43 = vadd.f32 %v1507_v41, %v1506_v30  ;;  %v990_v19 = vsub.f32 1.0, %v1401_v7  ;;  %v991_v53 = vsub.f32 1.0, %v1402_v17 }
 0x110   : > { %1140 = vst.msk [vmem:[%s1877_s16 + $0x8] sm:$0xf] %vm1137_vm2, %v1371_v36  ;;  %v1372_v45 = vpack.c.bf16 %v1341_v42, %v1341_v42  ;;  %v888_v46 = vadd.f32 %v1505_v25, %v799_v26  ;;  %v802_v47 = vadd.f32 %v1450_v40, %v1825_v6  ;;  %v949_v25 = vmul.f32 0.2, %v1845_v33 }
 0x111   : > { %v1004_v26 = vmul.f32 %v990_v19, %v948_v18  ;;  %v1405_v42 = vunpack.c.l.bf16 %v1883_v54  ;;  %v1410_v18 = vunpack.c.h.bf16 %v1886_v55  ;;  %v952_v19 = vmul.f32 0.2, %v1861_v38 }
 0x112   : > { %1141 = vst.msk [vmem:[%s1877_s16 + $0xc] sm:$0xf] %vm1137_vm2, %v1372_v45  ;;  %v1014_v52 = vadd.f32 %v1000_v29, %v888_v46  ;;  %v891_v57 = vadd.f32 %v1508_v43, %v802_v47  ;;  %v1451_v58 = vpop.f32.mrb[12].mxu0 }
 0x113   : > { %v1509_v59 = vpop.f32.mrb[12].mxu1  ;;  %v1452_v60 = vpop.f32.mrb[13].mxu0 }
 0x114   : > { %vm1028_vm6 = vcmp.gt.f32.partialorder %v1014_v52, 0.5  ;;  %v1015_v62 = vadd.f32 %v1001_v49, %v891_v57  ;;  %v1453_v63 = vadd.f32 %v1452_v60, %v1451_v58  ;;  %v1510_v0 = vpop.f32.mrb[13].mxu1  ;;  %v1454_v1 = vpop.f32.mrb[14].mxu0  ;;  %1043 = vst.msk [vmem:[%s1855_s14 + $0x20] sm:$0xff] %vm1038_vm0, %v1014_v52  ;;  %v1406_v49 = vunpack.c.h.bf16 %v1883_v54 }
 0x115   : > { %v1342_v27 = vsel %vm1028_vm6, 1.0, %v1624_v56  ;;  %v1511_v2 = vadd.f32 %v1510_v0, %v1509_v59  ;;  %v1512_v4 = vpop.f32.mrb[14].mxu1  ;;  %v1455_v5 = vpop.f32.mrb[15].mxu0  ;;  %v1005_v57 = vmul.f32 %v991_v53, %v949_v25  ;;  %v950_v58 = vmul.f32 0.2, %v1848_v34 }
 0x116   : > { %v1373_v8 = vpack.c.bf16 %v1342_v27, %v1342_v27  ;;  %vm1029_vm7 = vcmp.gt.f32.partialorder %v1015_v62, 0.5  ;;  %v807_v28 = vadd.f32 %v1453_v63, %v1825_v6  ;;  %v1456_v9 = vadd.f32 %v1455_v5, %v1454_v1  ;;  %v1513_v10 = vpop.f32.mrb[15].mxu1  ;;  %1044 = vst.msk [vmem:[%s1855_s14 + $0x28] sm:$0xff] %vm1038_vm0, %v1015_v62 }
 0x117   : > { %v1343_v11 = vsel %vm1029_vm7, 1.0, %v1624_v56  ;;  %v1514_v12 = vadd.f32 %v1513_v10, %v1512_v4  ;;  %v992_v59 = vsub.f32 1.0, %v1405_v42  ;;  %v951_v54 = vmul.f32 0.2, %v1858_v37 }
 0x118   : > { %1142 = vst.msk [vmem:[%s1877_s16 + $0x10] sm:$0xf] %vm1137_vm2, %v1373_v8  ;;  %v1374_v14 = vpack.c.bf16 %v1343_v11, %v1343_v11  ;;  %v896_v15 = vadd.f32 %v1511_v2, %v807_v28  ;;  %v810_v16 = vadd.f32 %v1456_v9, %v1825_v6  ;;  %v993_v0 = vsub.f32 1.0, %v1406_v49 }
 0x119   : > { %v1006_v5 = vmul.f32 %v992_v59, %v950_v58  ;;  %v1409_v28 = vunpack.c.l.bf16 %v1886_v55  ;;  %v995_v55 = vsub.f32 1.0, %v1410_v18 }
 0x11a   : > { %1143 = vst.msk [vmem:[%s1877_s16 + $0x14] sm:$0xf] %vm1137_vm2, %v1374_v14  ;;  %v1016_v20 = vadd.f32 %v1002_v3, %v896_v15  ;;  %v899_v21 = vadd.f32 %v1514_v12, %v810_v16  ;;  %v1457_v22 = vpop.f32.mrb[16].mxu0  ;;  %v1007_v14 = vmul.f32 %v993_v0, %v951_v54 }
 0x11b   : > { %v1515_v23 = vpop.f32.mrb[16].mxu1  ;;  %v1458_v24 = vpop.f32.mrb[17].mxu0 }
 0x11c   : > { %vm1030_vm8 = vcmp.gt.f32.partialorder %v1016_v20, 0.5  ;;  %v1017_v29 = vadd.f32 %v1003_v13, %v899_v21  ;;  %v1459_v30 = vadd.f32 %v1458_v24, %v1457_v22  ;;  %v1516_v31 = vpop.f32.mrb[17].mxu1  ;;  %v1460_v35 = vpop.f32.mrb[18].mxu0  ;;  %1045 = vst.msk [vmem:[%s1855_s14 + $0x30] sm:$0xff] %vm1038_vm0, %v1016_v20  ;;  %v994_v20 = vsub.f32 1.0, %v1409_v28 }
 0x11d   : > { %v1344_v32 = vsel %vm1030_vm8, 1.0, %v1624_v56  ;;  %v1517_v36 = vadd.f32 %v1516_v31, %v1515_v23  ;;  %v1518_v40 = vpop.f32.mrb[18].mxu1  ;;  %v1461_v41 = vpop.f32.mrb[19].mxu0 }
 0x11e   : > { %v1375_v43 = vpack.c.bf16 %v1344_v32, %v1344_v32  ;;  %vm1031_vm9 = vcmp.gt.f32.partialorder %v1017_v29, 0.5  ;;  %v815_v33 = vadd.f32 %v1459_v30, %v1825_v6  ;;  %v1462_v44 = vadd.f32 %v1461_v41, %v1460_v35  ;;  %v1519_v45 = vpop.f32.mrb[19].mxu1  ;;  %1046 = vst.msk [vmem:[%s1855_s14 + $0x38] sm:$0xff] %vm1038_vm0, %v1017_v29 }
 0x11f   : > { %v1345_v46 = vsel %vm1031_vm9, 1.0, %v1624_v56  ;;  %v1520_v47 = vadd.f32 %v1519_v45, %v1518_v40  ;;  %v953_v29 = vmul.f32 0.2, %v1864_v39 }
 0x120   : > { %1144 = vst.msk [vmem:[%s1877_s16 + $0x18] sm:$0xf] %vm1137_vm2, %v1375_v43  ;;  %v1376_v50 = vpack.c.bf16 %v1345_v46, %v1345_v46  ;;  %v904_v51 = vadd.f32 %v1517_v36, %v815_v33  ;;  %v818_v52 = vadd.f32 %v1462_v44, %v1825_v6  ;;  %v1008_v36 = vmul.f32 %v994_v20, %v952_v19 }
 0x121   : > { %v1009_v49 = vmul.f32 %v995_v55, %v953_v29 }
 0x122   : > { %1145 = vst.msk [vmem:[%s1877_s16 + $0x1c] sm:$0xf] %vm1137_vm2, %v1376_v50  ;;  %v1018_v60 = vadd.f32 %v1004_v26, %v904_v51  ;;  %v907_v48 = vadd.f32 %v1520_v47, %v818_v52  ;;  %v1463_v61 = vpop.f32.mrb[20].mxu0 }
 0x123   : > { %v1521_v62 = vpop.f32.mrb[20].mxu1  ;;  %v1464_v63 = vpop.f32.mrb[21].mxu0 }
 0x124   : > { %vm1032_vm10 = vcmp.gt.f32.partialorder %v1018_v60, 0.5  ;;  %v1019_v1 = vadd.f32 %v1005_v57, %v907_v48  ;;  %v1465_v27 = vadd.f32 %v1464_v63, %v1463_v61  ;;  %v1522_v2 = vpop.f32.mrb[21].mxu1  ;;  %v1466_v3 = vpop.f32.mrb[22].mxu0  ;;  %1047 = vst.msk [vmem:[%s1855_s14 + $0x40] sm:$0xff] %vm1038_vm0, %v1018_v60 }
 0x125   : > { %v1346_v34 = vsel %vm1032_vm10, 1.0, %v1624_v56  ;;  %v1523_v4 = vadd.f32 %v1522_v2, %v1521_v62  ;;  %v1524_v7 = vpop.f32.mrb[22].mxu1  ;;  %v1467_v8 = vpop.f32.mrb[23].mxu0 }
 0x126   : > { %v1377_v9 = vpack.c.bf16 %v1346_v34, %v1346_v34  ;;  %vm1033_vm11 = vcmp.gt.f32.partialorder %v1019_v1, 0.5  ;;  %v823_v37 = vadd.f32 %v1465_v27, %v1825_v6  ;;  %v1468_v10 = vadd.f32 %v1467_v8, %v1466_v3  ;;  %v1525_v11 = vpop.f32.mrb[23].mxu1  ;;  %1048 = vst.msk [vmem:[%s1855_s14 + $0x48] sm:$0xff] %vm1038_vm0, %v1019_v1 }
 0x127   : > { %v1347_v12 = vsel %vm1033_vm11, 1.0, %v1624_v56  ;;  %v1526_v13 = vadd.f32 %v1525_v11, %v1524_v7 }
 0x128   : > { %1146 = vst.msk [vmem:[%s1877_s16 + $0x20] sm:$0xf] %vm1137_vm2, %v1377_v9  ;;  %v1378_v15 = vpack.c.bf16 %v1347_v12, %v1347_v12  ;;  %v912_v16 = vadd.f32 %v1523_v4, %v823_v37  ;;  %v826_v17 = vadd.f32 %v1468_v10, %v1825_v6 }
 0x12a   : > { %1147 = vst.msk [vmem:[%s1877_s16 + $0x24] sm:$0xf] %vm1137_vm2, %v1378_v15  ;;  %v1020_v21 = vadd.f32 %v1006_v5, %v912_v16  ;;  %v915_v22 = vadd.f32 %v1526_v13, %v826_v17  ;;  %v1469_v23 = vpop.f32.mrb[24].mxu0 }
 0x12b   : > { %v1527_v24 = vpop.f32.mrb[24].mxu1  ;;  %v1470_v25 = vpop.f32.mrb[25].mxu0 }
 0x12c   : > { %vm1034_vm12 = vcmp.gt.f32.partialorder %v1020_v21, 0.5  ;;  %v1021_v30 = vadd.f32 %v1007_v14, %v915_v22  ;;  %v1471_v31 = vadd.f32 %v1470_v25, %v1469_v23  ;;  %v1528_v35 = vpop.f32.mrb[25].mxu1  ;;  %v1472_v53 = vpop.f32.mrb[26].mxu0  ;;  %1049 = vst.msk [vmem:[%s1855_s14 + $0x50] sm:$0xff] %vm1038_vm0, %v1020_v21 }
 0x12d   : > { %v1348_v38 = vsel %vm1034_vm12, 1.0, %v1624_v56  ;;  %v1529_v32 = vadd.f32 %v1528_v35, %v1527_v24  ;;  %v1530_v26 = vpop.f32.mrb[26].mxu1  ;;  %v1473_v40 = vpop.f32.mrb[27].mxu0 }
 0x12e   : > { %v1379_v41 = vpack.c.bf16 %v1348_v38, %v1348_v38  ;;  %vm1035_vm13 = vcmp.gt.f32.partialorder %v1021_v30, 0.5  ;;  %v831_v39 = vadd.f32 %v1471_v31, %v1825_v6  ;;  %v1474_v42 = vadd.f32 %v1473_v40, %v1472_v53  ;;  %v1531_v43 = vpop.f32.mrb[27].mxu1  ;;  %1050 = vst.msk [vmem:[%s1855_s14 + $0x58] sm:$0xff] %vm1038_vm0, %v1021_v30 }
 0x12f   : > { %v1349_v33 = vsel %vm1035_vm13, 1.0, %v1624_v56  ;;  %v1532_v44 = vadd.f32 %v1531_v43, %v1530_v26 }
 0x130   : > { %1148 = vst.msk [vmem:[%s1877_s16 + $0x28] sm:$0xf] %vm1137_vm2, %v1379_v41  ;;  %v1380_v45 = vpack.c.bf16 %v1349_v33, %v1349_v33  ;;  %v920_v46 = vadd.f32 %v1529_v32, %v831_v39  ;;  %v834_v47 = vadd.f32 %v1474_v42, %v1825_v6 }
 0x132   : > { %1149 = vst.msk [vmem:[%s1877_s16 + $0x2c] sm:$0xf] %vm1137_vm2, %v1380_v45  ;;  %v1022_v50 = vadd.f32 %v1008_v36, %v920_v46  ;;  %v923_v51 = vadd.f32 %v1532_v44, %v834_v47 }
 0x134   : > { %vm1036_vm14 = vcmp.gt.f32.partialorder %v1022_v50, 0.5  ;;  %v1023_v52 = vadd.f32 %v1009_v49, %v923_v51  ;;  %1051 = vst.msk [vmem:[%s1855_s14 + $0x60] sm:$0xff] %vm1038_vm0, %v1022_v50 }
 0x135   : > { %v1350_v57 = vsel %vm1036_vm14, 1.0, %v1624_v56 }
 0x136   : > { %v1381_v58 = vpack.c.bf16 %v1350_v57, %v1350_v57  ;;  %vm1037_vm15 = vcmp.gt.f32.partialorder %v1023_v52, 0.5  ;;  %1052 = vst.msk [vmem:[%s1855_s14 + $0x68] sm:$0xff] %vm1038_vm0, %v1023_v52 }
 0x137   : > { %v1351_v59 = vsel %vm1037_vm15, 1.0, %v1624_v56 }
 0x138   : > { %1150 = vst.msk [vmem:[%s1877_s16 + $0x30] sm:$0xf] %vm1137_vm2, %v1381_v58  ;;  %v1382_v6 = vpack.c.bf16 %v1351_v59, %v1351_v59 }
 0x13a   : > { %1151 = vst.msk [vmem:[%s1877_s16 + $0x34] sm:$0xf] %vm1137_vm2, %v1382_v6 }
 0x13b PF: > { %s17_s21 = sadd.s32 1, %s1622_s21  }
 0x13c   : > { %p14_p4 = scmp.ge.s32.totalorder %s17_s21, 4  }
 0x13e   :  { %16 = sbr.rel (!%p14_p4) target bundleno = 1 (0x1), region = 88 }

// kernel: closed_call.60
= control target key start
LH: loop header
LB: loop body
LE: loop exit
PB: predicated region body
PF: predicated region fallthrough
CT: control target
= control target key end

     0   :  { %s1047_s21 = smov 0   ;;  %s1181_s0 = inlined_call_operand.vmem [shape: bf16[64,384], index: 0, kind: input, shape index: {}]   ;;  %s1182_s1 = inlined_call_operand.vmem [shape: bf16[384,64], index: 1, kind: input, shape index: {}]   ;;  %s1183_s2 = inlined_call_operand.vmem [shape: f32[1,64], index: 2, kind: input, shape index: {}]   ;;  %s1184_s3 = inlined_call_operand.vmem [shape: f32[64,64], index: 3, kind: input, shape index: {}, may-alias: {3,5}]   ;;  %s1185_s4 = inlined_call_operand.vmem [shape: bf16[64,64], index: 4, kind: input, shape index: {}, may-alias: {4,6}]   ;;  %s1186_s5 = inlined_call_operand.vmem [shape: f32[64,64], index: 5, kind: output, shape index: {0}, may-alias: {3,5}]   ;;  %s1187_s6 = inlined_call_operand.vmem [shape: bf16[64,64], index: 6, kind: output, shape index: {1}, may-alias: {4,6}]  }
   0x1 LB: > { %s834_s22 = sadd.s32 4294967295, %s1009_s21   ;;  %p838_p0 = scmp.ge.s32.totalorder %s1009_s21, 1  ;;  %s1009_s21 = sphi %s1047_s21, %s17_s21  }
   0x2   : > { %p239_p1 = scmp.lt.s32.totalorder %s1009_s21, 3 }
   0x4   : > { %p240_p2 = pnand %p838_p0, %p239_p1 }
   0x5   : > { %v971_v0 = vld [vmem:[%s1182_s1 + $0x40] sm:$0xff] (!%p240_p2)   ;;  %v973_v2 = vld [vmem:[%s1182_s1 + $0x48] sm:$0xff] (!%p240_p2)   ;;  %v976_v5 = vld [vmem:[%s1182_s1 + $0x50] sm:$0xff] (!%p240_p2)   ;;  %s839_s13 = sshll.u32 (!%p240_p2), %s834_s22, 2  ;;  %vm686_vm0 = vcmask (!%p240_p2), 523264   ;;  %vm715_vm2 = vcmask (!%p240_p2), 519168  }
   0x6   : > { %243 = sbr.rel (%p240_p2) target bundleno = 274 (0x112), region = 40  ;;  %v972_v1 = vld [vmem:[%s1182_s1] sm:$0xff] (!%p240_p2)   ;;  %903 = vmatprep.subr.bf16.mxu0 (!%p240_p2), %v971_v0  ;;  %v975_v4 = vld [vmem:[%s1182_s1 + $0x8] sm:$0xff] (!%p240_p2)   ;;  %v978_v7 = vld [vmem:[%s1182_s1 + $0x10] sm:$0xff] (!%p240_p2)   ;;  %p286_p3 = scmp.lt.s32.totalorder (!%p240_p2), %s839_s13, 7 }
   0x7   : > { %904 = vmatpush3.bf16.msra.mxu0 (!%p240_p2), %v972_v1  ;;  %v974_v3 = vld [vmem:[%s1182_s1 + $0x80] sm:$0xff] (!%p240_p2)   ;;  %v977_v6 = vld [vmem:[%s1182_s1 + $0x88] sm:$0xff] (!%p240_p2)   ;;  %v979_v8 = vld [vmem:[%s1182_s1 + $0x58] sm:$0xff] (!%p240_p2)  }
   0x8   : > { %905 = vmatprep.subr.bf16.mxu0 (!%p240_p2), %v973_v2  ;;  %941 = vmatprep.subr.bf16.mxu1 (!%p240_p2), %v974_v3  ;;  %v980_v9 = vld [vmem:[%s1182_s1 + $0x90] sm:$0xff] (!%p240_p2)   ;;  %v981_v10 = vld [vmem:[%s1182_s1 + $0x18] sm:$0xff] (!%p240_p2)   ;;  %v982_v11 = vld [vmem:[%s1182_s1 + $0x60] sm:$0xff] (!%p240_p2)  }
   0x9   : > { %942 = vmatpush3.bf16.msra.mxu1 (!%p240_p2), %v974_v3  ;;  %v983_v12 = vld [vmem:[%s1182_s1 + $0x98] sm:$0xff] (!%p240_p2)   ;;  %v984_v13 = vld [vmem:[%s1182_s1 + $0x20] sm:$0xff] (!%p240_p2)   ;;  %v985_v15 = vld [vmem:[%s1182_s1 + $0x68] sm:$0xff] (!%p240_p2)  }
   0xa   : > { %943 = vmatprep.subr.bf16.mxu1 (!%p240_p2), %v977_v6  ;;  %v986_v14 = vld [vmem:[%s1182_s1 + $0xa0] sm:$0xff] (!%p240_p2)   ;;  %v987_v16 = vld [vmem:[%s1182_s1 + $0x28] sm:$0xff] (!%p240_p2)   ;;  %v988_v18 = vld [vmem:[%s1182_s1 + $0x70] sm:$0xff] (!%p240_p2)  }
   0xb   : > { %906 = vmatpush3.bf16.msra.mxu0 (!%p240_p2), %v975_v4  ;;  %v989_v17 = vld [vmem:[%s1182_s1 + $0xa8] sm:$0xff] (!%p240_p2)   ;;  %v990_v19 = vld [vmem:[%s1182_s1 + $0x30] sm:$0xff] (!%p240_p2)   ;;  %v991_v20 = vld [vmem:[%s1182_s1 + $0x78] sm:$0xff] (!%p240_p2)  }
   0xc   : > { %907 = vmatprep.subr.bf16.mxu0 (!%p240_p2), %v976_v5  ;;  %v992_v21 = vld [vmem:[%s1182_s1 + $0xb0] sm:$0xff] (!%p240_p2)   ;;  %v993_v23 = vld [vmem:[%s1182_s1 + $0x38] sm:$0xff] (!%p240_p2)   ;;  %v849_v40 = vld [vmem:[%s1183_s2] ss:$0 sm:$0xff] (!%p240_p2) }
   0xd   : > { %944 = vmatpush3.bf16.msra.mxu1 %v977_v6  ;;  %s1189_s13 = smov (!%p286_p3, %s839_s13), 7  ;;  %v997_v25 = vld [vmem:[%s1182_s1 + $0xb8] sm:$0xff]  }
   0xe   : > { %945 = vmatprep.subr.bf16.mxu1 %v980_v9  ;;  %s961_s9 = smul.u32 12, %s1189_s13  ;;  %s844_s7 = sshll.u32 %s1189_s13, 2 }
   0xf   : > { %908 = vmatpush3.bf16.msra.mxu0 %v978_v7  ;;  %s302_s10 = scalar_lea.vmem %s1185_s4, %s844_s7  ;;  %s842_s11 = sshll.u32 %s1189_s13, 3  ;;  %v1011_v7 = vmov 0.0  }
  0x10   : > { %909 = vmatprep.subr.bf16.mxu0 %v979_v8  ;;  %s290_s23 = scalar_lea.vmem %s1181_s0, %s961_s9  ;;  %v895_v30 = vld [vmem:[%s302_s10] sm:$0xff]   ;;  %s1145_s15 = scalar_lea.vmem %s1184_s3, %s842_s11  ;;  %v902_v37 = vld [vmem:[%s302_s10 + $0x8] sm:$0xff]  }
  0x11   : > { %946 = vmatpush3.bf16.msra.mxu1 %v980_v9  ;;  %v996_v22 = vld [vmem:[%s290_s23 + $0x4] ss:$12 sps:$4 sm:$0xff]   ;;  %v998_v24 = vld [vmem:[%s290_s23 + $0x8] ss:$12 sps:$4 sm:$0xff]   ;;  %v994_v26 = vld [vmem:[%s290_s23] ss:$12 sps:$4 sm:$0xff]   ;;  %v896_v31 = vunpack.c.l.bf16 %v895_v30  ;;  %v897_v33 = vunpack.c.h.bf16 %v895_v30  ;;  %v900_v47 = vunpack.c.l.bf16 %v902_v37  ;;  %v901_v58 = vunpack.c.h.bf16 %v902_v37  ;;  %s1158_s20 = scalar_lea.vmem %s1186_s5, %s842_s11  ;;  %s314_s24 = scalar_lea.vmem %s1187_s6, %s844_s7 }
  0x12   : > { %947 = vmatprep.subr.bf16.mxu1 %v983_v12  ;;  %588 = vmatprep.mubr.bf16.mxu0 %v996_v22  ;;  %v1000_v27 = vld [vmem:[%s290_s23 + $0x1c] ss:$12 sps:$4 sm:$0xff]   ;;  %v999_v28 = vld [vmem:[%s290_s23 + $0x20] ss:$12 sps:$4 sm:$0xff]   ;;  %v1002_v29 = vld [vmem:[%s290_s23 + $0x18] ss:$12 sps:$4 sm:$0xff]  }
  0x13   : > { %910 = vmatpush3.bf16.msra.mxu0 %v981_v10  ;;  %957 = vmatprep.mubr.bf16.mxu1 %v998_v24  ;;  %v654_v32 = vld [vmem:[%s1145_s15] sm:$0xff]  ;;  %v655_v34 = vld [vmem:[%s1145_s15 + $0x8] sm:$0xff]  ;;  %v670_v38 = vsub.f32 1.0, %v896_v31  ;;  %v671_v44 = vsub.f32 1.0, %v897_v33  ;;  %v656_v57 = vld [vmem:[%s1145_s15 + $0x10] sm:$0xff]  ;;  %v672_v61 = vsub.f32 1.0, %v900_v47 }
  0x14   : > { %911 = vmatprep.subr.bf16.mxu0 %v982_v11  ;;  %v658_v36 = vmul.f32 0.2, %v654_v32  ;;  %v659_v43 = vmul.f32 0.2, %v655_v34  ;;  %v657_v59 = vld [vmem:[%s1145_s15 + $0x18] sm:$0xff]  ;;  %v673_v6 = vsub.f32 1.0, %v901_v58 }
  0x15   : > { %948 = vmatpush3.bf16.msra.mxu1 %v983_v12  ;;  %v660_v60 = vmul.f32 0.2, %v656_v57  ;;  %v661_v2 = vmul.f32 0.2, %v657_v59 }
  0x16   : > { %949 = vmatprep.subr.bf16.mxu1 %v986_v14  ;;  %v674_v51 = vmul.f32 %v670_v38, %v658_v36  ;;  %v675_v56 = vmul.f32 %v671_v44, %v659_v43 }
  0x17   : > { %912 = vmatpush3.bf16.msra.mxu0 %v984_v13  ;;  %v676_v9 = vmul.f32 %v672_v61, %v660_v60 }
  0x18   : > { %913 = vmatprep.subr.bf16.mxu0 %v985_v15 }
  0x19   : > { %950 = vmatpush3.bf16.msra.mxu1 %v986_v14 }
  0x1a   : > { %951 = vmatprep.subr.bf16.mxu1 %v989_v17 }
  0x1b   : > { %914 = vmatpush3.bf16.msra.mxu0 %v987_v16 }
  0x1c   : > { %915 = vmatprep.subr.bf16.mxu0 %v988_v18  ;;  %v677_v18 = vmul.f32 %v673_v6, %v661_v2 }
  0x1d   : > { %952 = vmatpush3.bf16.msra.mxu1 %v989_v17 }
  0x1e   : > { %953 = vmatprep.subr.bf16.mxu1 %v992_v21 }
  0x1f   : > { %916 = vmatpush3.bf16.msra.mxu0 %v990_v19 }
  0x20   : > { %917 = vmatprep.subr.bf16.mxu0 %v991_v20 }
  0x21   : > { %954 = vmatpush3.bf16.msra.mxu1 %v992_v21 }
  0x22   : > { %955 = vmatprep.subr.bf16.mxu1 %v997_v25 }
  0x23   : > { %918 = vmatpush3.bf16.msra.mxu0 %v993_v23 }
  0x25   : > { %956 = vmatpush3.bf16.msra.mxu1 %v997_v25 }
  0x26   : > { %589 = vmatmul.mubr.bf16.vlgmr.msra.gmra.mrb[0].mxu0 %v994_v26 }
  0x27   : > { %596 = vmatprep.mubr.bf16.mxu0 %v1000_v27 }
  0x28   : > { %958 = vmatmul.mubr.bf16.vlgmr.msra.gmra.mrb[0].mxu1 %v999_v28 }
  0x2e   : > { %597 = vmatmul.mubr.bf16.gmra.mrb[4].mxu0 %v1002_v29 }
  0xf9   : > { %v919_v35 = vpop.f32.mrb[0].mxu0 }
  0xfa   : > { %v920_v39 = vpop.f32.mrb[1].mxu0 }
  0xfb   : > { %v921_v41 = vadd.f32 %v920_v39, %v919_v35  ;;  %v922_v42 = vpop.f32.mrb[2].mxu0  ;;  %v959_v46 = vpop.f32.mrb[0].mxu1 }
  0xfc   : > { %v923_v45 = vpop.f32.mrb[3].mxu0  ;;  %v639_v50 = vpop.f32.mrb[1].mxu1 }
  0xfd   : > { %v924_v48 = vadd.f32 %v923_v45, %v922_v42  ;;  %v591_v49 = vadd.f32 %v921_v41, %v849_v40  ;;  %v960_v52 = vpop.f32.mrb[2].mxu1 }
  0xfe   : > { %v642_v55 = vpop.f32.mrb[3].mxu1 }
  0xff   : > { %v640_v53 = vadd.f32 %v639_v50, %v591_v49  ;;  %v594_v54 = vadd.f32 %v924_v48, %v849_v40 }
 0x101   : > { %v678_v62 = vadd.f32 %v674_v51, %v640_v53  ;;  %v643_v63 = vadd.f32 %v642_v55, %v594_v54  ;;  %v925_v0 = vpop.f32.mrb[4].mxu0 }
 0x102   : > { %v926_v1 = vpop.f32.mrb[5].mxu0 }
 0x103   : > { %vm682_vm1 = vcmp.gt.f32.partialorder %v678_v62, 0.5  ;;  %v679_v3 = vadd.f32 %v675_v56, %v643_v63  ;;  %v927_v4 = vadd.f32 %v926_v1, %v925_v0  ;;  %687 = vst.msk [vmem:[%s1158_s20] sm:$0xff] %vm686_vm0, %v678_v62  ;;  %v928_v5 = vpop.f32.mrb[6].mxu0 }
 0x104   : > { %v880_v8 = vsel %vm682_vm1, 1.0, %v1011_v7  ;;  %v929_v10 = vpop.f32.mrb[7].mxu0 }
 0x105   : > { %v890_v11 = vpack.c.bf16 %v880_v8, %v880_v8  ;;  %vm683_vm3 = vcmp.gt.f32.partialorder %v679_v3, 0.5  ;;  %v599_v12 = vadd.f32 %v927_v4, %v849_v40  ;;  %688 = vst.msk [vmem:[%s1158_s20 + $0x8] sm:$0xff] %vm686_vm0, %v679_v3  ;;  %v930_v13 = vadd.f32 %v929_v10, %v928_v5 }
 0x106   : > { %v881_v14 = vsel %vm683_vm3, 1.0, %v1011_v7 }
 0x107   : > { %716 = vst.msk [vmem:[%s314_s24] sm:$0xf] %vm715_vm2, %v890_v11  ;;  %v891_v15 = vpack.c.bf16 %v881_v14, %v881_v14  ;;  %v648_v16 = vadd.f32 %v959_v46, %v599_v12  ;;  %v602_v17 = vadd.f32 %v930_v13, %v849_v40 }
 0x109   : > { %717 = vst.msk [vmem:[%s314_s24 + $0x4] sm:$0xf] %vm715_vm2, %v891_v15  ;;  %v680_v19 = vadd.f32 %v676_v9, %v648_v16  ;;  %v651_v20 = vadd.f32 %v960_v52, %v602_v17 }
 0x10b   : > { %vm684_vm4 = vcmp.gt.f32.partialorder %v680_v19, 0.5  ;;  %689 = vst.msk [vmem:[%s1158_s20 + $0x10] sm:$0xff] %vm686_vm0, %v680_v19  ;;  %v681_v21 = vadd.f32 %v677_v18, %v651_v20 }
 0x10c   : > { %v882_v22 = vsel %vm684_vm4, 1.0, %v1011_v7 }
 0x10d   : > { %v892_v23 = vpack.c.bf16 %v882_v22, %v882_v22  ;;  %vm685_vm5 = vcmp.gt.f32.partialorder %v681_v21, 0.5  ;;  %690 = vst.msk [vmem:[%s1158_s20 + $0x18] sm:$0xff] %vm686_vm0, %v681_v21 }
 0x10e   : > { %v883_v24 = vsel %vm685_vm5, 1.0, %v1011_v7 }
 0x10f   : > { %718 = vst.msk [vmem:[%s314_s24 + $0x8] sm:$0xf] %vm715_vm2, %v892_v23  ;;  %v893_v25 = vpack.c.bf16 %v883_v24, %v883_v24 }
 0x111   : > { %719 = vst.msk [vmem:[%s314_s24 + $0xc] sm:$0xf] %vm715_vm2, %v893_v25 }
 0x112 PF: > { %s17_s21 = sadd.s32 1, %s1009_s21  }
 0x113   : > { %p14_p4 = scmp.ge.s32.totalorder %s17_s21, 4  }
 0x115   :  { %16 = sbr.rel (!%p14_p4) target bundleno = 1 (0x1), region = 88 }

// kernel: closed_call.61
= control target key start
LH: loop header
LB: loop body
LE: loop exit
PB: predicated region body
PF: predicated region fallthrough
CT: control target
= control target key end

     0   :  { %v666_v0 = vmov 0.0   ;;  %vm667_vm0 = vmmov 0   ;;  %vm105_vm1 = vcmask 523264   ;;  %v668_v33 = vmov 1.0|1.0   ;;  %s957_s1 = inlined_call_operand.vmem [shape: bf16[64,128], index: 1, kind: input, shape index: {}]   ;;  %s958_s3 = inlined_call_operand.vmem [shape: bf16[128,128], index: 3, kind: input, shape index: {}]   ;;  %s959_s0 = inlined_call_operand.vmem [shape: bf16[4,64], index: 0, kind: input, shape index: {}]   ;;  %s960_s5 = inlined_call_operand.vmem [shape: bf16[128,32], index: 5, kind: input, shape index: {}]   ;;  %s961_s9 = inlined_call_operand.vmem [shape: f32[4,128], index: 9, kind: input, shape index: {}, may-alias: {9,17}]   ;;  %s962_s10 = inlined_call_operand.vmem [shape: f32[4,128], index: 10, kind: input, shape index: {}, may-alias: {10,18}]   ;;  %s963_s2 = inlined_call_operand.vmem [shape: f32[1,128], index: 2, kind: input, shape index: {}]   ;;  %s964_s17 = inlined_call_operand.vmem [shape: f32[4,128], index: 17, kind: output, shape index: {0}, may-alias: {9,17}]   ;;  %s965_s18 = inlined_call_operand.vmem [shape: f32[4,128], index: 18, kind: output, shape index: {1}, may-alias: {10,18}]   ;;  %s966_s11 = inlined_call_operand.vmem [shape: f32[4,128], index: 11, kind: input, shape index: {}, may-alias: {11,19}]   ;;  %s967_s12 = inlined_call_operand.vmem [shape: f32[4,128], index: 12, kind: input, shape index: {}, may-alias: {12,20}]   ;;  %s968_s4 = inlined_call_operand.vmem [shape: f32[1,128], index: 4, kind: input, shape index: {}]   ;;  %s969_s19 = inlined_call_operand.vmem [shape: f32[4,128], index: 19, kind: output, shape index: {2}, may-alias: {11,19}]   ;;  %s970_s20 = inlined_call_operand.vmem [shape: f32[4,128], index: 20, kind: output, shape index: {3}, may-alias: {12,20}]   ;;  %s971_s7 = inlined_call_operand.vmem [shape: bf16[32,10], index: 7, kind: input, shape index: {}]   ;;  %s972_s13 = inlined_call_operand.vmem [shape: f32[4,32], index: 13, kind: input, shape index: {}, may-alias: {13,21}]   ;;  %s973_s14 = inlined_call_operand.vmem [shape: f32[4,32], index: 14, kind: input, shape index: {}, may-alias: {14,22}]   ;;  %s974_s6 = inlined_call_operand.vmem [shape: f32[1,32], index: 6, kind: input, shape index: {}]   ;;  %s975_s21 = inlined_call_operand.vmem [shape: f32[4,32], index: 21, kind: output, shape index: {4}, may-alias: {13,21}]   ;;  %s976_s22 = inlined_call_operand.vmem [shape: f32[4,32], index: 22, kind: output, shape index: {5}, may-alias: {14,22}]   ;;  %s977_s15 = inlined_call_operand.vmem [shape: f32[4,10], index: 15, kind: input, shape index: {}, may-alias: {15,23}]   ;;  %s978_s16 = inlined_call_operand.vmem [shape: f32[4,10], index: 16, kind: input, shape index: {}, may-alias: {16,24}]   ;;  %s979_s8 = inlined_call_operand.vmem [shape: f32[1,10], index: 8, kind: input, shape index: {}]   ;;  %s980_s23 = inlined_call_operand.vmem [shape: f32[4,10], index: 23, kind: output, shape index: {6}, may-alias: {15,23}]   ;;  %s981_s24 = inlined_call_operand.vmem [shape: f32[4,10], index: 24, kind: output, shape index: {7}, may-alias: {16,24}]  }
   0x1   :  { %985 = sst [smem:[#allocation2_spill]] %s957_s1  ;;  %581 = vmatprep.subr.bf16.mxu0 %v666_v0  ;;  %589 = vmatprep.mubr.msk.bf16.mxu0 %vm667_vm0, %v666_v0  ;;  %v270_v36 = vld [vmem:[%s966_s11] sm:$0xf]  ;;  %v665_v50 = vld [vmem:[%s971_s7 + $0x8] sm:$0xff]   ;;  %vm481_vm6 = vcmask 257024   ;;  %vm424_vm8 = vcmask 261120  }
   0x2   :  { %986 = sst [smem:[#allocation3_spill]] %s958_s3  ;;  %s994_s27 = sld [smem:[#allocation2_spill]]  ;;  %593 = vmatprep.subr.bf16.mxu1 %v666_v0  ;;  %609 = vmatprep.mubr.msk.bf16.mxu1 %vm667_vm0, %v666_v0  ;;  %v272_v37 = vld [vmem:[%s967_s12] sm:$0xf]  ;;  %v271_v38 = vmul.f32 0.2, %v270_v36 }
   0x3   :  { %987 = sst [smem:[#allocation4_spill]] %s959_s0  ;;  %s995_s1 = sld [smem:[#allocation3_spill]]  ;;  %v273_v39 = vsub.f32 1.0, %v272_v37  ;;  %v526_v40 = vld [vmem:[%s968_s4] ss:$0 sm:$0xff]  ;;  %vm484_vm9 = vcmask 76800  }
   0x4   :  { %988 = sst [smem:[#allocation5_spill]] %s960_s5  ;;  %v664_v49 = vld [vmem:[%s971_s7] sm:$0xff]  }
   0x5   :  { %989 = sst [smem:[#allocation6_spill]] %s961_s9  ;;  %s997_s28 = sld [smem:[#allocation5_spill]]  ;;  %v274_v41 = vmul.f32 %v273_v39, %v271_v38  ;;  %v391_v51 = vld [vmem:[%s972_s13] sm:$0xf] }
   0x6   :  { %990 = sst [smem:[#allocation7_spill]] %s962_s10  ;;  %s998_s10 = sld [smem:[#allocation6_spill]]  ;;  %v393_v52 = vld [vmem:[%s973_s14] sm:$0xf]  ;;  %v392_v53 = vmul.f32 0.2, %v391_v51 }
   0x7   :  { %991 = sst [smem:[#allocation8_spill]] %s963_s2  ;;  %s996_s2 = sld [smem:[#allocation4_spill]]  ;;  %v394_v54 = vsub.f32 1.0, %v393_v52  ;;  %v538_v55 = vld [vmem:[%s974_s6] ss:$0 sm:$0xff] }
   0x8   :  { %992 = sst [smem:[#allocation9_spill]] %s964_s17  ;;  %v644_v1 = vld [vmem:[%s994_s27] sm:$0xff]   ;;  %v645_v2 = vld [vmem:[%s994_s27 + $0x8] sm:$0xff]   ;;  %v646_v4 = vld [vmem:[%s994_s27 + $0x10] sm:$0xff]   ;;  %s999_s0 = sld [smem:[#allocation7_spill]] }
   0x9   :  { %993 = sst [smem:[#allocation10_spill]] %s965_s18  ;;  %582 = vmatpush3.bf16.msra.mxu0 %v644_v1  ;;  %v648_v3 = vld [vmem:[%s995_s1] sm:$0xff]   ;;  %v649_v5 = vld [vmem:[%s995_s1 + $0x8] sm:$0xff]   ;;  %v647_v6 = vld [vmem:[%s994_s27 + $0x18] sm:$0xff]   ;;  %s1001_s5 = sld [smem:[#allocation9_spill]]  ;;  %v395_v56 = vmul.f32 %v394_v54, %v392_v53 }
   0xa   :  { %583 = vmatprep.subr.bf16.mxu0 %v666_v0  ;;  %594 = vmatpush3.bf16.msra.mxu1 %v648_v3  ;;  %v650_v7 = vld [vmem:[%s995_s1 + $0x10] sm:$0xff]   ;;  %v651_v9 = vld [vmem:[%s995_s1 + $0x18] sm:$0xff]   ;;  %v652_v10 = vld [vmem:[%s995_s1 + $0x20] sm:$0xff]   ;;  %s1002_s9 = sld [smem:[#allocation10_spill]] }
   0xb   :  { %595 = vmatprep.subr.bf16.mxu1 %v666_v0  ;;  %v653_v11 = vld [vmem:[%s995_s1 + $0x28] sm:$0xff]   ;;  %v654_v12 = vld [vmem:[%s995_s1 + $0x30] sm:$0xff]   ;;  %v655_v13 = vld [vmem:[%s995_s1 + $0x38] sm:$0xff]   ;;  %s1000_s1 = sld [smem:[#allocation8_spill]] }
   0xc   :  { %v656_v14 = vld [vmem:[%s997_s28] sm:$0xff]   ;;  %v657_v15 = vld [vmem:[%s997_s28 + $0x8] sm:$0xff]   ;;  %v658_v16 = vld [vmem:[%s997_s28 + $0x10] sm:$0xff]  }
   0xd   :  { %584 = vmatpush3.bf16.msra.mxu0 %v645_v2  ;;  %v65_v8 = vld [vmem:[%s996_s2] sm:$0x3]  ;;  %v659_v17 = vld [vmem:[%s997_s28 + $0x18] sm:$0xff]   ;;  %v661_v19 = vld [vmem:[%s997_s28 + $0x28] sm:$0xff]  }
   0xe   :  { %585 = vmatprep.subr.bf16.mxu0 %v666_v0  ;;  %596 = vmatpush3.bf16.msra.mxu1 %v649_v5  ;;  %v660_v18 = vld [vmem:[%s997_s28 + $0x20] sm:$0xff]   ;;  %v662_v34 = vld [vmem:[%s997_s28 + $0x30] sm:$0xff]   ;;  %v663_v35 = vld [vmem:[%s997_s28 + $0x38] sm:$0xff]  }
   0xf   :  { %597 = vmatprep.subr.bf16.mxu1 %v666_v0  ;;  %v149_v20 = vld [vmem:[%s998_s10] sm:$0xf] }
  0x10   :  { %v151_v21 = vld [vmem:[%s999_s0] sm:$0xf]  ;;  %v150_v22 = vmul.f32 0.2, %v149_v20 }
  0x11   :  { %586 = vmatpush3.bf16.msra.mxu0 %v646_v4  ;;  %v152_v23 = vsub.f32 1.0, %v151_v21  ;;  %v519_v24 = vld [vmem:[%s1000_s1] ss:$0 sm:$0xff] }
  0x12   :  { %587 = vmatprep.subr.bf16.mxu0 %v666_v0  ;;  %598 = vmatpush3.bf16.msra.mxu1 %v650_v7  ;;  %v468_v2 = vld [vmem:[%s977_s15] sm:$0xf] }
  0x13   :  { %599 = vmatprep.subr.bf16.mxu1 %v666_v0  ;;  %v153_v25 = vmul.f32 %v152_v23, %v150_v22  ;;  %v470_v3 = vld [vmem:[%s978_s16] sm:$0xf]  ;;  %v469_v4 = vmul.f32 0.2, %v468_v2 }
  0x14   :  { %v471_v5 = vsub.f32 1.0, %v470_v3 }
  0x15   :  { %588 = vmatpush3.bf16.msra.mxu0 %v647_v6  ;;  %v550_v6 = vld [vmem:[%s979_s8] ss:$0 sm:$0xff] }
  0x16   :  { %613 = vmatprep.subr.bf16.mxu0 %v666_v0  ;;  %600 = vmatpush3.bf16.msra.mxu1 %v651_v9  ;;  %v472_v7 = vmul.f32 %v471_v5, %v469_v4 }
  0x17   :  { %601 = vmatprep.subr.bf16.mxu1 %v666_v0 }
  0x18   :  { %590 = vmatmul.mubr.msk.bf16.vlgmr.msra.gmra.mrb[0].mxu0 %vm105_vm1, %v65_v8 }
  0x19   :  { %629 = vmatprep.mubr.msk.bf16.mxu0 %vm667_vm0, %v666_v0  ;;  %614 = vmatpush3.bf16.msra.mxu0 %v656_v14 }
  0x1a   :  { %602 = vmatpush3.bf16.msra.mxu1 %v652_v10  ;;  %615 = vmatprep.subr.bf16.mxu0 %v666_v0 }
  0x1b   :  { %603 = vmatprep.subr.bf16.mxu1 %v666_v0 }
  0x1d   :  { %616 = vmatpush3.bf16.msra.mxu0 %v657_v15 }
  0x1e   :  { %604 = vmatpush3.bf16.msra.mxu1 %v653_v11  ;;  %617 = vmatprep.subr.bf16.mxu0 %v666_v0 }
  0x1f   :  { %605 = vmatprep.subr.bf16.mxu1 %v666_v0 }
  0x21   :  { %618 = vmatpush3.bf16.msra.mxu0 %v658_v16 }
  0x22   :  { %606 = vmatpush3.bf16.msra.mxu1 %v654_v12  ;;  %619 = vmatprep.subr.bf16.mxu0 %v666_v0 }
  0x23   :  { %607 = vmatprep.subr.bf16.mxu1 %v666_v0 }
  0x25   :  { %620 = vmatpush3.bf16.msra.mxu0 %v659_v17 }
  0x26   :  { %608 = vmatpush3.bf16.msra.mxu1 %v655_v13  ;;  %621 = vmatprep.subr.bf16.mxu0 %v666_v0 }
  0x27   :  { %633 = vmatprep.subr.bf16.mxu1 %v666_v0 }
  0x29   :  { %622 = vmatpush3.bf16.msra.mxu0 %v660_v18 }
  0x2a   :  { %623 = vmatprep.subr.bf16.mxu0 %v666_v0 }
  0x2d   :  { %624 = vmatpush3.bf16.msra.mxu0 %v661_v19 }
  0x2e   :  { %625 = vmatprep.subr.bf16.mxu0 %v666_v0 }
  0x31   :  { %626 = vmatpush3.bf16.msra.mxu0 %v662_v34 }
  0x32   :  { %627 = vmatprep.subr.bf16.mxu0 %v666_v0 }
  0x35   :  { %628 = vmatpush3.bf16.msra.mxu0 %v663_v35 }
  0xeb   :  { %v143_v26 = vpop.f32.mrb[0].mxu0 }
  0xec   :  { %v144_v27 = vadd.f32 %v519_v24, %v143_v26  ;;  %v591_v28 = vpop.f32.mrb[1].mxu0 }
  0xed   :  { %v146_v29 = vpop.f32.mrb[2].mxu0 }
  0xee   :  { %v154_v30 = vadd.f32 %v153_v25, %v144_v27  ;;  %v592_v31 = vpop.f32.mrb[3].mxu0 }
  0xf0   :  { %477 = vst [vmem:[%s1001_s5] sm:$0xf] %v154_v30  ;;  %vm155_vm2 = vcmp.gt.f32.partialorder %v154_v30, 0.5 }
  0xf1   :  { %v525_v32 = vsel %vm155_vm2, 1.0, %v666_v0  ;;  %vm535_vm3 = vmpackc.low %vm155_vm2, %vm155_vm2 }
  0xf2   :  { %610 = vmatmul.mubr.msk.bf16.vlgmr.msra.gmra.mrb[0].mxu1 %vm535_vm3, %v668_v33  ;;  %478 = vst [vmem:[%s1002_s9] sm:$0xf] %v525_v32 }
  0xf3   :  { %637 = vmatprep.mubr.msk.bf16.mxu1 %vm667_vm0, %v666_v0  ;;  %634 = vmatpush3.bf16.msra.mxu1 %v664_v49 }
  0xf4   :  { %635 = vmatprep.subr.bf16.mxu1 %v666_v0 }
  0xf7   :  { %636 = vmatpush3.bf16.msra.mxu1 %v665_v50 }
 0x1c5   :  { %v264_v42 = vpop.f32.mrb[0].mxu1 }
 0x1c6   :  { %v265_v43 = vadd.f32 %v526_v40, %v264_v42  ;;  %v611_v44 = vpop.f32.mrb[1].mxu1 }
 0x1c7   :  { %v267_v45 = vpop.f32.mrb[2].mxu1 }
 0x1c8   :  { %v275_v46 = vadd.f32 %v274_v41, %v265_v43  ;;  %v612_v47 = vpop.f32.mrb[3].mxu1 }
 0x1ca   :  { %vm276_vm4 = vcmp.gt.f32.partialorder %v275_v46, 0.5  ;;  %479 = vst [vmem:[%s969_s19] sm:$0xf] %v275_v46 }
 0x1cb   :  { %v537_v48 = vsel %vm276_vm4, 1.0, %v666_v0  ;;  %vm547_vm5 = vmpackc.low %vm276_vm4, %vm276_vm4 }
 0x1cc   :  { %480 = vst [vmem:[%s970_s20] sm:$0xf] %v537_v48  ;;  %630 = vmatmul.mubr.msk.bf16.vlgmr.msra.gmra.mrb[4].mxu0 %vm547_vm5, %v668_v33 }
 0x29f   :  { %v385_v57 = vpop.f32.mrb[4].mxu0 }
 0x2a0   :  { %v386_v58 = vadd.f32 %v538_v55, %v385_v57  ;;  %v631_v59 = vpop.f32.mrb[5].mxu0 }
 0x2a1   :  { %v388_v60 = vpop.f32.mrb[6].mxu0 }
 0x2a2   :  { %v396_v61 = vadd.f32 %v395_v56, %v386_v58  ;;  %v632_v62 = vpop.f32.mrb[7].mxu0 }
 0x2a4   :  { %vm397_vm7 = vcmp.gt.f32.partialorder %v396_v61, 0.5  ;;  %482 = vst.msk [vmem:[%s975_s21] sm:$0xf] %vm481_vm6, %v396_v61 }
 0x2a5   :  { %v549_v63 = vsel %vm397_vm7, 1.0, %v666_v0 }
 0x2a6   :  { %v400_v1 = vpack.c.bf16 %v549_v63, %v549_v63  ;;  %483 = vst.msk [vmem:[%s976_s22] sm:$0xf] %vm481_vm6, %v549_v63 }
 0x2a8   :  { %638 = vmatmul.mubr.msk.bf16.vlgmr.msra.gmra.mrb[4].mxu1 %vm424_vm8, %v400_v1 }
 0x37b   :  { %v462_v8 = vpop.f32.mrb[4].mxu1 }
 0x37c   :  { %v463_v9 = vadd.f32 %v550_v6, %v462_v8  ;;  %v639_v10 = vpop.f32.mrb[5].mxu1 }
 0x37d   :  { %v465_v11 = vpop.f32.mrb[6].mxu1 }
 0x37e   :  { %v473_v12 = vadd.f32 %v472_v7, %v463_v9  ;;  %v640_v13 = vpop.f32.mrb[7].mxu1 }
 0x380   :  { %vm474_vm10 = vcmp.gt.f32.partialorder %v473_v12, 0.5  ;;  %485 = vst.msk [vmem:[%s980_s23] sm:$0xf] %vm484_vm9, %v473_v12 }
 0x381   :  { %v554_v14 = vsel %vm474_vm10, 1.0, %v666_v0 }
 0x382   :  { %486 = vst.msk [vmem:[%s981_s24] sm:$0xf] %vm484_vm9, %v554_v14 }

</bundles_post_ra>
